<compile_context>
chip_gen: v6e
topology: v6e:2x2x1
jax: 0.10.0
libtpu: 0.0.40
codegen_flags: <defaults>
</compile_context>

<pallas_src>
import functools

import jax
import jax.numpy as jnp
from jax import lax
from jax.experimental import pallas as pl
from jax.experimental.pallas import tpu as pltpu

_LANES = 128       # batch rows per grid step (packed into the lane dimension)
_SUBLANES = 8      # feature-dim padding granularity (sublanes)


def _round_up(x, m):
    return (x + m - 1) // m * m


def _fusion_kernel(x_ref, w_ref, o_ref, *, d_valid, d_pad):
    """x_ref: (Dp, Bt) batch-in-lanes; w_ref: (3*Dp, Dp); o_ref: (Dp, Bt)."""
    # Fused Q/K/V projection: one MXU matmul, all 128 batch lanes are real rows.
    qkv = jnp.dot(w_ref[...], x_ref[...],
                  preferred_element_type=jnp.float32)          # (3Dp, Bt)
    q = qkv[0 * d_pad:1 * d_pad, :]                            # (Dp, Bt)
    k = qkv[1 * d_pad:2 * d_pad, :]
    v = qkv[2 * d_pad:3 * d_pad, :]

    # Rank-1 scores per batch lane on the VPU: s[i, j, b] = q[i, b] * k[j, b].
    # (Module scale is 1/sqrt(1) == 1, so there is nothing to fold in.)
    # TODO(synk): for large D (Dp*Dp*128*4 B approaching VMEM) tile the query
    # axis i inside the kernel instead of materializing the full cube.
    s = q[:, None, :] * k[None, :, :]                          # (Dp, Dp, Bt)

    # Mask padded key rows (j >= D) out of the softmax with a 1-row bias.
    if d_valid != d_pad:
        j = lax.broadcasted_iota(jnp.int32, (1, d_pad, 1), 1)
        s = s + jnp.where(j < d_valid, 0.0, -1e30).astype(s.dtype)

    # Numerically stable softmax over j (sublane axis), kept in f32.
    m = jnp.max(s, axis=1, keepdims=True)                      # (Dp, 1, Bt)
    p = jnp.exp(s - m)                                         # (Dp, Dp, Bt)
    den = jnp.sum(p, axis=1)                                   # (Dp, Bt)
    num = jnp.sum(p * v[None, :, :], axis=1)                   # (Dp, Bt)

    # EUP approx reciprocal + one Newton-Raphson step (near-f32 accuracy).
    inv = pl.reciprocal(den, approx=True)
    inv = inv * (2.0 - den * inv)

    o_ref[...] = (num * inv).astype(o_ref.dtype)


def fusion_forward(x, w_q, w_k, w_v):
    """x: [B, D]; w_q/w_k/w_v: [D, D] in nn.Linear orientation ([out, in])."""
    B, D = x.shape
    Dp = _round_up(D, _SUBLANES)    # features live on sublanes: pad to 8, not 128
    Bt = _LANES                     # 128 batch rows per grid step (lane-packed)
    Bp = _round_up(B, Bt)
    nb = Bp // Bt

    # Stacked, zero-padded weights: rows [0:Dp)=W_q, [Dp:2Dp)=W_k, [2Dp:3Dp)=W_v.
    def _pad_w(w):
        return jnp.pad(w, ((0, Dp - D), (0, Dp - D)))
    w_all = jnp.concatenate([_pad_w(w_q), _pad_w(w_k), _pad_w(w_v)], axis=0)   # (3Dp, Dp)

    # Compact lane-packed input: column b of x_t is x[b] (pad + transpose; no
    # zero-slab scatter).  Padded batch columns are all-zero and sliced off below.
    x_t = jnp.pad(x, ((0, Bp - B), (0, Dp - D))).T                             # (Dp, Bp)

    kernel = functools.partial(_fusion_kernel, d_valid=D, d_pad=Dp)

    flops_per_tile = 2 * (3 * Dp) * Dp * Bt + 4 * Dp * Dp * Bt
    cost = pl.CostEstimate(
        flops=nb * flops_per_tile,
        transcendentals=nb * Dp * Dp * Bt,
        bytes_accessed=4 * (2 * Dp * Bp + nb * 3 * Dp * Dp),
    )

    out_t = pl.pallas_call(
        kernel,
        out_shape=jax.ShapeDtypeStruct((Dp, Bp), x.dtype),
        grid_spec=pltpu.PrefetchScalarGridSpec(
            num_scalar_prefetch=0,
            grid=(nb,),
            in_specs=[
                pl.BlockSpec((Dp, Bt), lambda b: (0, b)),
                # Grid-invariant weights.  TODO(synk): on v7x with large D, use
                # pipeline_mode=pl.Buffered(1) (or tile the contraction dim) so
                # the constant operand is not double-buffered in 64 MiB VMEM.
                pl.BlockSpec((3 * Dp, Dp), lambda b: (0, 0)),
            ],
            out_specs=pl.BlockSpec((Dp, Bt), lambda b: (0, b)),
        ),
        compiler_params=pltpu.CompilerParams(
            dimension_semantics=("parallel",),   # batch tiles shard across TCs
            vmem_limit_bytes=32 * 1024 * 1024,
        ),
        cost_estimate=cost,
    )(x_t, w_all)

    # Compact post-op: drop padding and restore (B, D) row-major orientation.
    return out_t[:D, :B].T


def fusion_forward_ref(x, w_q, w_k, w_v):
    q = x @ w_q.T
    k = x @ w_k.T
    v = x @ w_v.T
    scores = q[:, :, None] * k[:, None, :]          # bmm(q_col, k_row) / sqrt(1)
    attn = jax.nn.softmax(scores, axis=-1)
    return jnp.einsum("bij,bj->bi", attn, v)


if __name__ == "__main__":
    B, dim = 2, 32

    key = jax.random.PRNGKey(0)
    kx, kq, kk, kv = jax.random.split(key, 4)

    x = jax.random.normal(kx, (B, dim), dtype=jnp.float32)

    # nn.Linear(dim, dim, bias=False) weights, kaiming_normal_-like scale sqrt(2/dim).
    w_scale = (2.0 / dim) ** 0.5
    w_q = jax.random.normal(kq, (dim, dim), dtype=jnp.float32) * w_scale
    w_k = jax.random.normal(kk, (dim, dim), dtype=jnp.float32) * w_scale
    w_v = jax.random.normal(kv, (dim, dim), dtype=jnp.float32) * w_scale

    out = jax.block_until_ready(fusion_forward(x, w_q, w_k, w_v))
    ref = fusion_forward_ref(x, w_q, w_k, w_v)

    assert out.shape == (B, dim)
    assert jnp.allclose(out, ref, atol=2e-4, rtol=2e-4), "mismatch vs reference"

    print("KERNEL_OK")
</pallas_src>

<mosaic_0001>
module attributes {stable_mosaic.version = 11 : i64} {
  func.func @_fusion_kernel(%arg0: i32, %arg1: memref<32x128xf32, #tpu.memory_space<vmem>>, %arg2: memref<96x32xf32, #tpu.memory_space<vmem>>, %arg3: memref<32x128xf32, #tpu.memory_space<vmem>>) attributes {dimension_semantics = [#tpu.dimension_semantics<parallel>], iteration_bounds = array<i64: 1>, scalar_prefetch = 0 : i64, scratch_operands = 0 : i64, tpu.core_type = #tpu.core_type<tc>, window_params = [{transform_indices = @transform_0, window_bounds = array<i64: 32, 128>}, {pipeline_mode = #tpu.pipeline_mode<synchronous>, transform_indices = @transform_1, window_bounds = array<i64: 96, 32>}, {transform_indices = @transform_2, window_bounds = array<i64: 32, 128>}]} {
    %c0 = arith.constant 0 : index
    %c0_0 = arith.constant 0 : index
    %0 = vector.load %arg2[%c0, %c0_0] : memref<96x32xf32, #tpu.memory_space<vmem>>, vector<96x32xf32>
    %c0_1 = arith.constant 0 : index
    %c0_2 = arith.constant 0 : index
    %1 = vector.load %arg1[%c0_1, %c0_2] : memref<32x128xf32, #tpu.memory_space<vmem>>, vector<32x128xf32>
    %cst = arith.constant dense<0.000000e+00> : vector<96x128xf32>
    %2 = tpu.matmul %0, %1, %cst {dimension_numbers = #tpu.dot_dimension_numbers<[1], [0], [0], [1], [0, 0, 1, 1], [], []>} : vector<96x32xf32>, vector<32x128xf32>, vector<96x128xf32> -> vector<96x128xf32>
    %3 = vector.extract_strided_slice %2 {offsets = [0, 0], sizes = [32, 128], strides = [1, 1]} : vector<96x128xf32> to vector<32x128xf32>
    %4 = vector.extract_strided_slice %2 {offsets = [32, 0], sizes = [32, 128], strides = [1, 1]} : vector<96x128xf32> to vector<32x128xf32>
    %5 = vector.extract_strided_slice %2 {offsets = [64, 0], sizes = [32, 128], strides = [1, 1]} : vector<96x128xf32> to vector<32x128xf32>
    %6 = vector.shape_cast %3 : vector<32x128xf32> to vector<32x1x128xf32>
    %7 = vector.shape_cast %4 : vector<32x128xf32> to vector<1x32x128xf32>
    %8 = vector.broadcast %6 : vector<32x1x128xf32> to vector<32x32x128xf32>
    %9 = vector.broadcast %7 : vector<1x32x128xf32> to vector<32x32x128xf32>
    %10 = arith.mulf %8, %9 : vector<32x32x128xf32>
    %cst_3 = arith.constant dense<0xFF800000> : vector<32x128xf32>
    %11 = vector.multi_reduction <maximumf>, %10, %cst_3 [1] : vector<32x32x128xf32> to vector<32x128xf32>
    %12 = vector.shape_cast %11 : vector<32x128xf32> to vector<32x1x128xf32>
    %13 = vector.broadcast %12 : vector<32x1x128xf32> to vector<32x32x128xf32>
    %14 = arith.subf %10, %13 : vector<32x32x128xf32>
    %15 = math.exp %14 : vector<32x32x128xf32>
    %cst_4 = arith.constant dense<0.000000e+00> : vector<32x128xf32>
    %16 = vector.multi_reduction <add>, %15, %cst_4 [1] : vector<32x32x128xf32> to vector<32x128xf32>
    %17 = vector.shape_cast %5 : vector<32x128xf32> to vector<1x32x128xf32>
    %18 = vector.broadcast %17 : vector<1x32x128xf32> to vector<32x32x128xf32>
    %19 = arith.mulf %15, %18 : vector<32x32x128xf32>
    %cst_5 = arith.constant dense<0.000000e+00> : vector<32x128xf32>
    %20 = vector.multi_reduction <add>, %19, %cst_5 [1] : vector<32x32x128xf32> to vector<32x128xf32>
    %21 = tpu.reciprocal %16 {approx = true} : vector<32x128xf32> -> vector<32x128xf32>
    %22 = arith.mulf %16, %21 : vector<32x128xf32>
    %cst_6 = arith.constant 2.000000e+00 : f32
    %23 = vector.broadcast %cst_6 : f32 to vector<32x128xf32>
    %24 = arith.subf %23, %22 : vector<32x128xf32>
    %25 = arith.mulf %21, %24 : vector<32x128xf32>
    %26 = arith.mulf %20, %25 : vector<32x128xf32>
    %c0_7 = arith.constant 0 : index
    %c0_8 = arith.constant 0 : index
    %27 = vector.load %arg3[%c0_7, %c0_8] : memref<32x128xf32, #tpu.memory_space<vmem>>, vector<32x128xf32>
    tpu.vector_store %arg3[%c0_7, %c0_8], %26 {strides = array<i32>} : memref<32x128xf32, #tpu.memory_space<vmem>>, vector<32x128xf32>,
    return
  }
  func.func @transform_0(%arg0: i32) -> (i32, i32) {
    %c0_i32 = arith.constant 0 : i32
    %c0_i32_0 = arith.constant 0 : i32
    return %c0_i32, %arg0 : i32, i32
  }
  func.func @transform_1(%arg0: i32) -> (i32, i32) {
    %c0_i32 = arith.constant 0 : i32
    %c0_i32_0 = arith.constant 0 : i32
    %c0_i32_1 = arith.constant 0 : i32
    return %c0_i32, %c0_i32_0 : i32, i32
  }
  func.func @transform_2(%arg0: i32) -> (i32, i32) {
    %c0_i32 = arith.constant 0 : i32
    %c0_i32_0 = arith.constant 0 : i32
    return %c0_i32, %arg0 : i32, i32
  }
}

</mosaic_0001>

<bundles_post_ra>
// kernel: tpu_custom_call.1
= control target key start
LH: loop header
LB: loop body
LE: loop exit
PB: predicated region body
PF: predicated region fallthrough
CT: control target
= control target key end

     0   :  { %vm28_vm0 = vcmask 261120   ;;  %s5837_s0 = inlined_call_operand.vmem [shape: f32[32,128], index: 0, kind: input, shape index: {}]   ;;  %s5838_s1 = inlined_call_operand.vmem [shape: f32[96,32], index: 1, kind: input, shape index: {}]   ;;  %s5839_s2 = inlined_call_operand.hbm [shape: f32[32,128], index: 2, kind: output, shape index: {}]  }
   0x1   :  { %v27_v0 = vld [vmem:[%s5837_s0 + $0x18] sm:$0xff]  ;;  %v26_v1 = vld [vmem:[%s5837_s0 + $0x10] sm:$0xff]  ;;  %v25_v2 = vld [vmem:[%s5837_s0 + $0x8] sm:$0xff] }
   0x2   :  { %2333 = vmatprep.subr.mxu0 %v27_v0  ;;  %2359 = vmatprep.subr.mxu1 %v27_v0  ;;  %v12_v3 = vld [vmem:[%s5838_s1] sm:$0xff] }
   0x3   :  { %2334 = vmatpush3.msra.mxu0 %v27_v0  ;;  %2363 = vmatpush3.msra.mxu1 %v27_v0  ;;  %v24_v4 = vld [vmem:[%s5837_s0] sm:$0xff] }
   0x4   :  { %2335 = vmatprep.subr.mxu0 %v26_v1  ;;  %2360 = vmatprep.subr.mxu1 %v26_v1 }
   0x5   :  { %2336 = vmatpush3.msra.mxu0 %v26_v1  ;;  %2364 = vmatpush3.msra.mxu1 %v26_v1 }
   0x6   :  { %2337 = vmatprep.subr.mxu0 %v25_v2  ;;  %2341 = vmatprep.mubr.msk.f32.mxu0 %vm28_vm0, %v12_v3 }
   0x7   :  { %7 = vsyncpa [#allocation3], 0  ;;  %2338 = vmatpush3.msra.mxu0 %v25_v2  ;;  %2361 = vmatprep.subr.mxu1 %v25_v2  ;;  %v13_v5 = vld [vmem:[%s5838_s1 + $0x8] sm:$0xff]  ;;  %v14_v6 = vld [vmem:[%s5838_s1 + $0x10] sm:$0xff]  ;;  %v2713_v16 = vmov 1966171168   ;;  %v198_v18 = vlaneseq }
   0x8   :  { %2339 = vmatprep.subr.mxu0 %v24_v4  ;;  %2365 = vmatpush3.msra.mxu1 %v25_v2  ;;  %v18_v7 = vld [vmem:[%s5838_s1 + $0x30] sm:$0xff]  ;;  %v19_v8 = vld [vmem:[%s5838_s1 + $0x38] sm:$0xff]  ;;  %v20_v9 = vld [vmem:[%s5838_s1 + $0x40] sm:$0xff]  ;;  %v196_v17 = vunpack.c.l.s4 %v2713_v16  ;;  %vm2246_vm1 = vcmask 1041409   ;;  %vm2248_vm2 = vcmask 1042434   ;;  %vm2250_vm3 = vcmask 1043459  }
   0x9   :  { %2340 = vmatpush3.msra.mxu0 %v24_v4  ;;  %2362 = vmatprep.subr.mxu1 %v24_v4  ;;  %v15_v10 = vld [vmem:[%s5838_s1 + $0x18] sm:$0xff]  ;;  %v16_v11 = vld [vmem:[%s5838_s1 + $0x20] sm:$0xff]  ;;  %v21_v12 = vld [vmem:[%s5838_s1 + $0x48] sm:$0xff]  ;;  %v199_v20 = vshrl.u32 %v198_v18, 7  ;;  %vm2252_vm4 = vcmask 1044484   ;;  %vm2254_vm5 = vcmask 1045509  }
   0xa   :  { %2342 = vmatmul.mubr.msk.f32.vlgmr.msra.gmra.mxu0 %vm28_vm0, %v13_v5  ;;  %2366 = vmatpush3.msra.mxu1 %v24_v4  ;;  %v22_v13 = vld [vmem:[%s5838_s1 + $0x50] sm:$0xff]  ;;  %v17_v14 = vld [vmem:[%s5838_s1 + $0x28] sm:$0xff]  ;;  %v23_v15 = vld [vmem:[%s5838_s1 + $0x58] sm:$0xff]  ;;  %v197_v19 = vunpack.c.0.s8 %v196_v17  ;;  %vm2256_vm6 = vcmask 1046534   ;;  %vm2258_vm7 = vcmask 1047559   ;;  %s2714_s1 = smov [#allocation2]  }
   0xb   :  { %2344 = vmatprep.mubr.msk.f32.mxu0 %vm28_vm0, %v14_v6  ;;  %2350 = vmatprep.mubr.msk.f32.mxu1 %vm28_vm0, %v18_v7  ;;  %v2792_v38 = vsub.s32 0, %v199_v20  ;;  %s2294_s12 = sshll.u32 %s2714_s1, 4  ;;  %s2295_s12 = int_to_ptr.vmem [resolvable:$true] %s2294_s12 }
   0xc   :  { %2351 = vmatmul.mubr.msk.f32.vlgmr.msra.gmra.mxu1 %vm28_vm0, %v19_v8  ;;  %v200_v22 = vsub.s32 %v197_v19, %v199_v20  ;;  %s2691_s13 = scalar_lea.vmem %s2295_s12, 512  ;;  %p2696_p1 = scmp.lt.s32.totalorder %s2295_s12, %s2295_s12 }
   0xd   :  { %2353 = vmatprep.mubr.msk.f32.mxu1 %vm28_vm0, %v20_v9  ;;  %p2692_p0 = scmp.ne.s32.totalorder %s2295_s12, %s2691_s13  ;;  %p2697_p2 = scmp.lt.s32.totalorder %s2691_s13, %s2691_s13 }
   0xe   :  { %2345 = vmatmul.mubr.msk.f32.gmra.mxu0 %vm28_vm0, %v15_v10 }
   0xf   :  { %2347 = vmatprep.mubr.msk.f32.mxu0 %vm28_vm0, %v16_v11  ;;  %p2698_p3 = por %p2697_p2, %p2696_p1 }
  0x10   :  { %2354 = vmatmul.mubr.msk.f32.gmra.mxu1 %vm28_vm0, %v21_v12 }
  0x11   :  { %2356 = vmatprep.mubr.msk.f32.mxu1 %vm28_vm0, %v22_v13  ;;  %p2699_p4 = pnand %p2698_p3, %p2692_p0 }
  0x12   :  { %2348 = vmatmul.mubr.msk.f32.gmra.mxu0 %vm28_vm0, %v17_v14 }
  0x14   :  { %2357 = vmatmul.mubr.msk.f32.gmra.mxu1 %vm28_vm0, %v23_v15 }
  0xca   :  { %v2343_v21 = vpop.f32.mrf.mxu0 }
  0xcb   :  { %v243_v24 = vcombine.high %v2343_v21, %v2343_v21  ;;  %v250_v25 = vrot.slane %v2343_v21, %v200_v22 }
  0xcc   :  { %v131_v23 = vpop.f32.mrf.mxu0 }
  0xcd   :  { %v257_v27 = vrot.slane %v243_v24, %v200_v22  ;;  %v194_v28 = vcombine.high %v131_v23, %v131_v23  ;;  %v258_v29 = vcombine.high %v250_v25, %v250_v25  ;;  %v201_v32 = vrot.slane %v131_v23, %v200_v22 }
  0xce   :  { %v2346_v26 = vpop.f32.mrf.mxu0  ;;  %v266_v35 = vrot.slane %v250_v25, %v200_v22 }
  0xcf   :  { %v259_v31 = vcombine.high %v257_v27, %v257_v27  ;;  %v208_v33 = vrot.slane %v194_v28, %v200_v22  ;;  %v280_v36 = vrot.slane %v258_v29, %v200_v22  ;;  %v273_v37 = vrot.slane %v257_v27, %v200_v22 }
  0xd0   :  { %v141_v30 = vpop.f32.mrf.mxu0  ;;  %v341_v39 = vcombine.high %v2346_v26, %v2346_v26  ;;  %v209_v42 = vcombine.high %v201_v32, %v201_v32  ;;  %v288_v45 = vcombine.high %v266_v35, %v266_v35  ;;  %v348_v47 = vrot.slane %v2346_v26, %v200_v22 }
  0xd1   :  { %v292_v34 = vcombine.high %v141_v30, %v141_v30  ;;  %v299_v40 = vrot.slane %v141_v30, %v200_v22  ;;  %v287_v41 = vrot.slane %v259_v31, %v200_v22  ;;  %v210_v43 = vcombine.high %v208_v33, %v208_v33 }
  0xd2   :  { %v290_v46 = vcombine.high %v280_v36, %v280_v36  ;;  %v289_v48 = vcombine.high %v273_v37, %v273_v37  ;;  %v2795_v49 = vrot.slane %v266_v35, %v2792_v38  ;;  %v355_v50 = vrot.slane %v341_v39, %v200_v22  ;;  %v2815_v3 = vpop.f32.mrf.mxu0 }
  0xd3   :  { %v306_v44 = vrot.slane %v292_v34, %v200_v22  ;;  %v2798_v51 = vrot.slane %v280_v36, %v2792_v38  ;;  %v217_v52 = vrot.slane %v201_v32, %v200_v22  ;;  %v224_v53 = vrot.slane %v208_v33, %v200_v22 }
  0xd4   :  { %v307_v54 = vcombine.high %v299_v40, %v299_v40  ;;  %v291_v55 = vcombine.high %v287_v41, %v287_v41  ;;  %v231_v56 = vrot.slane %v209_v42, %v200_v22  ;;  %v238_v57 = vrot.slane %v210_v43, %v200_v22  ;;  %v2823_v20 = vpop.f32.mrf.mxu0 }
  0xd5   :  { %v308_v58 = vcombine.high %v306_v44, %v306_v44  ;;  %v2801_v59 = vrot.slane %v288_v45, %v2792_v38  ;;  %v2804_v60 = vrot.slane %v290_v46, %v2792_v38  ;;  %v2807_v61 = vrot.slane %v273_v37, %v2792_v38  ;;  %v2844_v37 = vpop.f32.mrf.mxu1 }
  0xd6   :  { %v356_v62 = vcombine.high %v348_v47, %v348_v47  ;;  %v2810_v63 = vrot.slane %v287_v41, %v2792_v38  ;;  %v2813_v0 = vrot.slane %v289_v48, %v2792_v38  ;;  %v357_v1 = vcombine.high %v355_v50, %v355_v50 }
  0xd7   :  { %v315_v2 = vrot.slane %v299_v40, %v200_v22  ;;  %v239_v4 = vcombine.high %v217_v52, %v217_v52  ;;  %v240_v5 = vcombine.high %v224_v53, %v224_v53  ;;  %v322_v6 = vrot.slane %v306_v44, %v200_v22 }
  0xd8   :  { %v329_v7 = vrot.slane %v307_v54, %v200_v22  ;;  %v2818_v8 = vrot.slane %v291_v55, %v2792_v38  ;;  %v241_v9 = vcombine.high %v231_v56, %v231_v56  ;;  %v242_v10 = vcombine.high %v238_v57, %v238_v57 }
  0xd9   :  { %v336_v11 = vrot.slane %v308_v58, %v200_v22  ;;  %v393_v12 = vrot.slane %v217_v52, %v2792_v38  ;;  %v364_v13 = vrot.slane %v348_v47, %v200_v22  ;;  %v371_v14 = vrot.slane %v355_v50, %v200_v22 }
  0xda   :  { %v378_v15 = vrot.slane %v356_v62, %v200_v22  ;;  %v397_v16 = vrot.slane %v231_v56, %v2792_v38  ;;  %v409_v17 = vrot.slane %v224_v53, %v2792_v38  ;;  %v385_v18 = vrot.slane %v357_v1, %v200_v22  ;;  %v2913_v1 = vpop.f32.mrf.mxu1 }
  0xdb   :  { %v337_v19 = vcombine.high %v315_v2, %v315_v2  ;;  %v401_v21 = vrot.slane %v239_v4, %v2792_v38  ;;  %v413_v23 = vrot.slane %v238_v57, %v2792_v38  ;;  %v338_v24 = vcombine.high %v322_v6, %v322_v6 }
  0xdc   :  { %v339_v25 = vcombine.high %v329_v7, %v329_v7  ;;  %v405_v26 = vrot.slane %v241_v9, %v2792_v38  ;;  %v417_v27 = vrot.slane %v240_v5, %v2792_v38  ;;  %v2830_v28 = vrot.slane %v242_v10, %v2792_v38 }
  0xdd   :  { %v340_v29 = vcombine.high %v336_v11, %v336_v11  ;;  %v386_v30 = vcombine.high %v364_v13, %v364_v13  ;;  %v387_v31 = vcombine.high %v371_v14, %v371_v14  ;;  %v388_v22 = vcombine.high %v378_v15, %v378_v15 }
  0xde   :  { %v2833_v32 = vmul.f32 %v393_v12, %v2823_v20  ;;  %v389_v33 = vcombine.high %v385_v18, %v385_v18  ;;  %v2836_v34 = vrot.slane %v315_v2, %v2792_v38  ;;  %v2839_v35 = vrot.slane %v329_v7, %v2792_v38 }
  0xdf   :  { %v2842_v36 = vrot.slane %v337_v19, %v2792_v38  ;;  %v2847_v39 = vrot.slane %v339_v25, %v2792_v38  ;;  %v2850_v40 = vrot.slane %v322_v6, %v2792_v38  ;;  %v2853_v41 = vrot.slane %v336_v11, %v2792_v38 }
  0xe0   :  { %6179 = vst [vmem:[#allocation5_spill] sm:$0xff] %v2833_v32  ;;  %v2856_v42 = vrot.slane %v338_v24, %v2792_v38  ;;  %v2859_v43 = vrot.slane %v364_v13, %v2792_v38  ;;  %v2862_v44 = vrot.slane %v378_v15, %v2792_v38  ;;  %v2865_v45 = vrot.slane %v371_v14, %v2792_v38 }
  0xe1   :  { %v2868_v46 = vrot.slane %v340_v29, %v2792_v38  ;;  %v2871_v47 = vrot.slane %v386_v30, %v2792_v38  ;;  %v2874_v48 = vrot.slane %v388_v22, %v2792_v38  ;;  %v2877_v50 = vrot.slane %v385_v18, %v2792_v38 }
  0xe2   :  { %v2880_v52 = vrot.slane %v387_v31, %v2792_v38  ;;  %v2883_v53 = vrot.slane %v389_v33, %v2792_v38  ;;  %v2887_v54 = vmul.f32 %v2844_v37, %v2836_v34  ;;  %v2891_v55 = vmul.f32 %v2844_v37, %v2839_v35 }
  0xe3   :  { %v2895_v56 = vmul.f32 %v2844_v37, %v2842_v36  ;;  %v2899_v57 = vmul.f32 %v2844_v37, %v2847_v39  ;;  %v2903_v38 = vmul.f32 %v2844_v37, %v2850_v40  ;;  %v2907_v58 = vmul.f32 %v2844_v37, %v2853_v41 }
  0xe4   :  { %6180 = vst [vmem:[#allocation6_spill] sm:$0xff] %v2887_v54  ;;  %6181 = vst [vmem:[#allocation7_spill] sm:$0xff] %v2891_v55  ;;  %v2911_v62 = vmul.f32 %v2844_v37, %v2856_v42  ;;  %v2917_v2 = vmul.f32 %v2844_v37, %v2868_v46  ;;  %v2920_v4 = vmul.f32 %v2815_v3, %v393_v12 }
  0xe5   :  { %6182 = vst [vmem:[#allocation8_spill] sm:$0xff] %v2895_v56  ;;  %6183 = vst [vmem:[#allocation9_spill] sm:$0xff] %v2899_v57  ;;  %v2923_v5 = vmul.f32 %v393_v12, %v2913_v1  ;;  %v2926_v6 = vmul.f32 %v2844_v37, %v393_v12  ;;  %v2929_v7 = vmul.f32 %v397_v16, %v2823_v20 }
  0xe6   :  { %6184 = vst [vmem:[#allocation10_spill] sm:$0xff] %v2903_v38  ;;  %6185 = vst [vmem:[#allocation11_spill] sm:$0xff] %v2907_v58  ;;  %v2932_v9 = vmul.f32 %v2815_v3, %v397_v16  ;;  %v2935_v10 = vmul.f32 %v397_v16, %v2913_v1  ;;  %v2938_v11 = vmul.f32 %v2844_v37, %v397_v16 }
  0xe7   :  { %6186 = vst [vmem:[#allocation12_spill] sm:$0xff] %v2911_v62  ;;  %6187 = vst [vmem:[#allocation13_spill] sm:$0xff] %v2917_v2  ;;  %v2941_v13 = vmul.f32 %v401_v21, %v2823_v20  ;;  %v2944_v14 = vmul.f32 %v2815_v3, %v401_v21  ;;  %v2947_v12 = vmul.f32 %v401_v21, %v2913_v1 }
  0xe8   :  { %6188 = vst [vmem:[#allocation14_spill] sm:$0xff] %v2920_v4  ;;  %6189 = vst [vmem:[#allocation15_spill] sm:$0xff] %v2923_v5  ;;  %v2950_v15 = vmul.f32 %v2844_v37, %v401_v21  ;;  %v2953_v18 = vmul.f32 %v405_v26, %v2823_v20  ;;  %v2956_v19 = vmul.f32 %v2815_v3, %v405_v26 }
  0xe9   :  { %6190 = vst [vmem:[#allocation16_spill] sm:$0xff] %v2926_v6  ;;  %6191 = vst [vmem:[#allocation17_spill] sm:$0xff] %v2929_v7  ;;  %v2959_v16 = vmul.f32 %v405_v26, %v2913_v1  ;;  %v2962_v24 = vmul.f32 %v2844_v37, %v405_v26  ;;  %v2965_v25 = vmul.f32 %v409_v17, %v2823_v20 }
  0xea   :  { %6192 = vst [vmem:[#allocation18_spill] sm:$0xff] %v2932_v9  ;;  %6193 = vst [vmem:[#allocation19_spill] sm:$0xff] %v2935_v10  ;;  %v2968_v29 = vmul.f32 %v2815_v3, %v409_v17  ;;  %v2971_v21 = vmul.f32 %v409_v17, %v2913_v1  ;;  %v2974_v30 = vmul.f32 %v2844_v37, %v409_v17 }
  0xeb   :  { %6194 = vst [vmem:[#allocation20_spill] sm:$0xff] %v2938_v11  ;;  %6195 = vst [vmem:[#allocation21_spill] sm:$0xff] %v2941_v13  ;;  %v2977_v31 = vmul.f32 %v413_v23, %v2823_v20  ;;  %v2980_v22 = vmul.f32 %v2815_v3, %v413_v23  ;;  %v2983_v26 = vmul.f32 %v413_v23, %v2913_v1 }
  0xec   :  { %6196 = vst [vmem:[#allocation22_spill] sm:$0xff] %v2944_v14  ;;  %6197 = vst [vmem:[#allocation23_spill] sm:$0xff] %v2947_v12  ;;  %v2986_v33 = vmul.f32 %v2844_v37, %v413_v23  ;;  %v2989_v2 = vmul.f32 %v417_v27, %v2823_v20  ;;  %v2992_v62 = vmul.f32 %v2815_v3, %v417_v27 }
  0xed   :  { %6198 = vst [vmem:[#allocation24_spill] sm:$0xff] %v2950_v15  ;;  %6199 = vst [vmem:[#allocation25_spill] sm:$0xff] %v2953_v18  ;;  %v2995_v17 = vmul.f32 %v417_v27, %v2913_v1  ;;  %v2998_v58 = vmul.f32 %v2844_v37, %v417_v27  ;;  %v3002_v38 = vmul.f32 %v2830_v28, %v2823_v20 }
  0xee   :  { %6200 = vst [vmem:[#allocation26_spill] sm:$0xff] %v2956_v19  ;;  %6201 = vst [vmem:[#allocation27_spill] sm:$0xff] %v2959_v16  ;;  %v3006_v23 = vmul.f32 %v2815_v3, %v2830_v28  ;;  %v3010_v57 = vmul.f32 %v2830_v28, %v2913_v1  ;;  %v3014_v56 = vmul.f32 %v2844_v37, %v2830_v28 }
  0xef   :  { %6202 = vst [vmem:[#allocation28_spill] sm:$0xff] %v2962_v24  ;;  %6203 = vst [vmem:[#allocation29_spill] sm:$0xff] %v2965_v25  ;;  %v3018_v27 = vmul.f32 %v2795_v49, %v2823_v20  ;;  %v3022_v55 = vmul.f32 %v2815_v3, %v2795_v49  ;;  %v3026_v54 = vmul.f32 %v2795_v49, %v2913_v1 }
  0xf0   :  { %6204 = vst [vmem:[#allocation30_spill] sm:$0xff] %v2968_v29  ;;  %6205 = vst [vmem:[#allocation31_spill] sm:$0xff] %v2971_v21  ;;  %v3034_v28 = vmul.f32 %v2798_v51, %v2823_v20 }
  0xf1   :  { %6206 = vst [vmem:[#allocation32_spill] sm:$0xff] %v2974_v30  ;;  %6207 = vst [vmem:[#allocation33_spill] sm:$0xff] %v2977_v31 }
  0xf2   :  { %6208 = vst [vmem:[#allocation34_spill] sm:$0xff] %v2980_v22  ;;  %6209 = vst [vmem:[#allocation35_spill] sm:$0xff] %v2983_v26 }
  0xf3   :  { %6210 = vst [vmem:[#allocation36_spill] sm:$0xff] %v2986_v33  ;;  %6211 = vst [vmem:[#allocation37_spill] sm:$0xff] %v2989_v2 }
  0xf4   :  { %6212 = vst [vmem:[#allocation38_spill] sm:$0xff] %v2992_v62  ;;  %6213 = vst [vmem:[#allocation39_spill] sm:$0xff] %v2995_v17 }
  0xf5   :  { %6214 = vst [vmem:[#allocation40_spill] sm:$0xff] %v2998_v58  ;;  %6215 = vst [vmem:[#allocation41_spill] sm:$0xff] %v3002_v38  ;;  %v3030_v58 = vmul.f32 %v2844_v37, %v2795_v49  ;;  %v3050_v49 = vmul.f32 %v2801_v59, %v2823_v20 }
  0xf6   :  { %6216 = vst [vmem:[#allocation42_spill] sm:$0xff] %v3006_v23  ;;  %6217 = vst [vmem:[#allocation43_spill] sm:$0xff] %v3010_v57 }
  0xf7   :  { %6218 = vst [vmem:[#allocation44_spill] sm:$0xff] %v3014_v56  ;;  %6219 = vst [vmem:[#allocation45_spill] sm:$0xff] %v3018_v27  ;;  %v3038_v56 = vmul.f32 %v2815_v3, %v2798_v51  ;;  %v3042_v27 = vmul.f32 %v2798_v51, %v2913_v1 }
  0xf8   :  { %6220 = vst [vmem:[#allocation46_spill] sm:$0xff] %v3022_v55  ;;  %6221 = vst [vmem:[#allocation47_spill] sm:$0xff] %v3026_v54  ;;  %v3046_v55 = vmul.f32 %v2844_v37, %v2798_v51  ;;  %v3058_v54 = vmul.f32 %v2801_v59, %v2913_v1  ;;  %v3066_v51 = vmul.f32 %v2804_v60, %v2823_v20 }
  0xf9   :  { %6222 = vst [vmem:[#allocation48_spill] sm:$0xff] %v3030_v58  ;;  %6223 = vst [vmem:[#allocation49_spill] sm:$0xff] %v3034_v28  ;;  %v3054_v58 = vmul.f32 %v2815_v3, %v2801_v59  ;;  %v3062_v28 = vmul.f32 %v2844_v37, %v2801_v59  ;;  %v3082_v59 = vmul.f32 %v2807_v61, %v2823_v20 }
  0xfa   :  { %6224 = vst [vmem:[#allocation50_spill] sm:$0xff] %v3038_v56  ;;  %6225 = vst [vmem:[#allocation51_spill] sm:$0xff] %v3042_v27  ;;  %v3074_v27 = vmul.f32 %v2804_v60, %v2913_v1 }
  0xfb   :  { %6226 = vst [vmem:[#allocation52_spill] sm:$0xff] %v3046_v55  ;;  %6227 = vst [vmem:[#allocation53_spill] sm:$0xff] %v3050_v49  ;;  %v3070_v55 = vmul.f32 %v2815_v3, %v2804_v60  ;;  %v3078_v49 = vmul.f32 %v2844_v37, %v2804_v60  ;;  %v3098_v60 = vmul.f32 %v2810_v63, %v2823_v20 }
  0xfc   :  { %6228 = vst [vmem:[#allocation54_spill] sm:$0xff] %v3054_v58  ;;  %6229 = vst [vmem:[#allocation55_spill] sm:$0xff] %v3058_v54  ;;  %v3090_v54 = vmul.f32 %v2807_v61, %v2913_v1 }
  0xfd   :  { %6230 = vst [vmem:[#allocation56_spill] sm:$0xff] %v3062_v28  ;;  %6231 = vst [vmem:[#allocation57_spill] sm:$0xff] %v3066_v51  ;;  %v3086_v28 = vmul.f32 %v2815_v3, %v2807_v61  ;;  %v3094_v51 = vmul.f32 %v2844_v37, %v2807_v61  ;;  %v3114_v61 = vmul.f32 %v2813_v0, %v2823_v20 }
  0xfe   :  { %6232 = vst [vmem:[#allocation58_spill] sm:$0xff] %v3070_v55  ;;  %6233 = vst [vmem:[#allocation59_spill] sm:$0xff] %v3074_v27  ;;  %v3106_v27 = vmul.f32 %v2810_v63, %v2913_v1 }
  0xff   :  { %6234 = vst [vmem:[#allocation60_spill] sm:$0xff] %v3078_v49  ;;  %6235 = vst [vmem:[#allocation61_spill] sm:$0xff] %v3082_v59  ;;  %v3102_v49 = vmul.f32 %v2815_v3, %v2810_v63  ;;  %v3110_v59 = vmul.f32 %v2844_v37, %v2810_v63  ;;  %v3130_v63 = vmul.f32 %v2818_v8, %v2823_v20 }
 0x100   :  { %6236 = vst [vmem:[#allocation62_spill] sm:$0xff] %v3086_v28  ;;  %6237 = vst [vmem:[#allocation63_spill] sm:$0xff] %v3090_v54  ;;  %v3122_v54 = vmul.f32 %v2813_v0, %v2913_v1 }
 0x101   :  { %6238 = vst [vmem:[#allocation64_spill] sm:$0xff] %v3094_v51  ;;  %6239 = vst [vmem:[#allocation65_spill] sm:$0xff] %v3098_v60  ;;  %v3118_v51 = vmul.f32 %v2815_v3, %v2813_v0  ;;  %v3126_v60 = vmul.f32 %v2844_v37, %v2813_v0  ;;  %v3146_v0 = vmul.f32 %v2836_v34, %v2823_v20 }
 0x102   :  { %6240 = vst [vmem:[#allocation66_spill] sm:$0xff] %v3102_v49  ;;  %6241 = vst [vmem:[#allocation67_spill] sm:$0xff] %v3106_v27  ;;  %v3138_v27 = vmul.f32 %v2818_v8, %v2913_v1 }
 0x103   :  { %6242 = vst [vmem:[#allocation68_spill] sm:$0xff] %v3110_v59  ;;  %6243 = vst [vmem:[#allocation69_spill] sm:$0xff] %v3114_v61  ;;  %v3134_v59 = vmul.f32 %v2815_v3, %v2818_v8  ;;  %v3142_v61 = vmul.f32 %v2844_v37, %v2818_v8  ;;  %v3162_v8 = vmul.f32 %v2815_v3, %v2839_v35 }
 0x104   :  { %6244 = vst [vmem:[#allocation70_spill] sm:$0xff] %v3118_v51  ;;  %6245 = vst [vmem:[#allocation71_spill] sm:$0xff] %v3122_v54  ;;  %v3154_v54 = vmul.f32 %v2836_v34, %v2913_v1 }
 0x105   :  { %6246 = vst [vmem:[#allocation72_spill] sm:$0xff] %v3126_v60  ;;  %6247 = vst [vmem:[#allocation73_spill] sm:$0xff] %v3130_v63  ;;  %v3150_v60 = vmul.f32 %v2815_v3, %v2836_v34  ;;  %v3158_v63 = vmul.f32 %v2839_v35, %v2823_v20  ;;  %v3174_v34 = vmul.f32 %v2815_v3, %v2842_v36 }
 0x106   :  { %6248 = vst [vmem:[#allocation74_spill] sm:$0xff] %v3134_v59  ;;  %6249 = vst [vmem:[#allocation75_spill] sm:$0xff] %v3138_v27 }
 0x107   :  { %6250 = vst [vmem:[#allocation76_spill] sm:$0xff] %v3142_v61  ;;  %6251 = vst [vmem:[#allocation77_spill] sm:$0xff] %v3146_v0  ;;  %v3166_v61 = vmul.f32 %v2839_v35, %v2913_v1  ;;  %v3170_v0 = vmul.f32 %v2842_v36, %v2823_v20  ;;  %v3186_v35 = vmul.f32 %v2815_v3, %v2847_v39 }
 0x108   :  { %6252 = vst [vmem:[#allocation78_spill] sm:$0xff] %v3150_v60  ;;  %6253 = vst [vmem:[#allocation79_spill] sm:$0xff] %v3154_v54  ;;  %v3178_v54 = vmul.f32 %v2842_v36, %v2913_v1  ;;  %v3198_v36 = vmul.f32 %v2815_v3, %v2850_v40 }
 0x109   :  { %6254 = vst [vmem:[#allocation80_spill] sm:$0xff] %v3158_v63  ;;  %6255 = vst [vmem:[#allocation81_spill] sm:$0xff] %v3162_v8  ;;  %v3182_v63 = vmul.f32 %v2847_v39, %v2823_v20 }
 0x10a   :  { %6256 = vst [vmem:[#allocation82_spill] sm:$0xff] %v3166_v61  ;;  %6257 = vst [vmem:[#allocation83_spill] sm:$0xff] %v3170_v0  ;;  %v3190_v61 = vmul.f32 %v2847_v39, %v2913_v1  ;;  %v3194_v0 = vmul.f32 %v2850_v40, %v2823_v20  ;;  %v3210_v39 = vmul.f32 %v2815_v3, %v2853_v41 }
 0x10b   :  { %6258 = vst [vmem:[#allocation84_spill] sm:$0xff] %v3174_v34  ;;  %6259 = vst [vmem:[#allocation85_spill] sm:$0xff] %v3178_v54  ;;  %v3202_v54 = vmul.f32 %v2850_v40, %v2913_v1  ;;  %v3222_v40 = vmul.f32 %v2815_v3, %v2856_v42 }
 0x10c   :  { %6260 = vst [vmem:[#allocation86_spill] sm:$0xff] %v3182_v63  ;;  %6261 = vst [vmem:[#allocation87_spill] sm:$0xff] %v3186_v35  ;;  %v3206_v63 = vmul.f32 %v2853_v41, %v2823_v20 }
 0x10d   :  { %6262 = vst [vmem:[#allocation88_spill] sm:$0xff] %v3190_v61  ;;  %6263 = vst [vmem:[#allocation89_spill] sm:$0xff] %v3194_v0  ;;  %v3214_v61 = vmul.f32 %v2853_v41, %v2913_v1  ;;  %v3218_v0 = vmul.f32 %v2856_v42, %v2823_v20  ;;  %v3234_v41 = vmul.f32 %v2815_v3, %v2868_v46 }
 0x10e   :  { %6264 = vst [vmem:[#allocation90_spill] sm:$0xff] %v3198_v36  ;;  %6265 = vst [vmem:[#allocation91_spill] sm:$0xff] %v3202_v54  ;;  %v3226_v54 = vmul.f32 %v2856_v42, %v2913_v1  ;;  %v3246_v42 = vmul.f32 %v2815_v3, %v2859_v43 }
 0x10f   :  { %6266 = vst [vmem:[#allocation92_spill] sm:$0xff] %v3206_v63  ;;  %6267 = vst [vmem:[#allocation93_spill] sm:$0xff] %v3210_v39  ;;  %v3230_v63 = vmul.f32 %v2868_v46, %v2823_v20 }
 0x110   :  { %6268 = vst [vmem:[#allocation94_spill] sm:$0xff] %v3214_v61  ;;  %6269 = vst [vmem:[#allocation95_spill] sm:$0xff] %v3218_v0  ;;  %v3238_v61 = vmul.f32 %v2868_v46, %v2913_v1  ;;  %v3242_v0 = vmul.f32 %v2859_v43, %v2823_v20  ;;  %v3258_v46 = vmul.f32 %v2862_v44, %v2823_v20 }
 0x111   :  { %6270 = vst [vmem:[#allocation96_spill] sm:$0xff] %v3222_v40  ;;  %6271 = vst [vmem:[#allocation97_spill] sm:$0xff] %v3226_v54  ;;  %v3250_v54 = vmul.f32 %v2859_v43, %v2913_v1 }
 0x112   :  { %6272 = vst [vmem:[#allocation98_spill] sm:$0xff] %v3230_v63  ;;  %6273 = vst [vmem:[#allocation99_spill] sm:$0xff] %v3234_v41  ;;  %v3254_v63 = vmul.f32 %v2844_v37, %v2859_v43  ;;  %v3276_v43 = vmul.f32 %v2871_v47, %v2823_v20 }
 0x113   :  { %6274 = vst [vmem:[#allocation100_spill] sm:$0xff] %v3238_v61  ;;  %6275 = vst [vmem:[#allocation101_spill] sm:$0xff] %v3242_v0  ;;  %v3262_v61 = vmul.f32 %v2815_v3, %v2862_v44  ;;  %v3266_v0 = vmul.f32 %v2862_v44, %v2913_v1 }
 0x114   :  { %6276 = vst [vmem:[#allocation102_spill] sm:$0xff] %v3246_v42  ;;  %6277 = vst [vmem:[#allocation103_spill] sm:$0xff] %v3250_v54  ;;  %v678_v42 = vmax.f32 %v2833_v32, %v2920_v4  ;;  %v3272_v54 = vmul.f32 %v2844_v37, %v2862_v44  ;;  %v3292_v44 = vmul.f32 %v2874_v48, %v2823_v20 }
 0x115   :  { %6278 = vst [vmem:[#allocation104_spill] sm:$0xff] %v3254_v63  ;;  %6279 = vst [vmem:[#allocation105_spill] sm:$0xff] %v3258_v46  ;;  %v3280_v63 = vmul.f32 %v2815_v3, %v2871_v47  ;;  %v3284_v46 = vmul.f32 %v2871_v47, %v2913_v1  ;;  %v3296_v4 = vmul.f32 %v2815_v3, %v2874_v48 }
 0x116   :  { %6280 = vst [vmem:[#allocation106_spill] sm:$0xff] %v3262_v61  ;;  %6281 = vst [vmem:[#allocation107_spill] sm:$0xff] %v3266_v0  ;;  %v3288_v0 = vmul.f32 %v2844_v37, %v2871_v47  ;;  %v3300_v32 = vmul.f32 %v2874_v48, %v2913_v1  ;;  %v687_v47 = vmax.f32 %v2929_v7, %v2932_v9 }
 0x117   :  { %6282 = vst [vmem:[#allocation108_spill] sm:$0xff] %v3272_v54  ;;  %6283 = vst [vmem:[#allocation109_spill] sm:$0xff] %v3276_v43  ;;  %v3304_v54 = vmul.f32 %v2844_v37, %v2874_v48  ;;  %v732_v48 = vmax.f32 %v2989_v2, %v2992_v62  ;;  %v3321_v9 = vmul.f32 %v2865_v45, %v2823_v20 }
 0x118   :  { %6284 = vst [vmem:[#allocation110_spill] sm:$0xff] %v3280_v63  ;;  %6285 = vst [vmem:[#allocation111_spill] sm:$0xff] %v3284_v46  ;;  %v705_v46 = vmax.f32 %v2953_v18, %v2956_v19  ;;  %v3339_v62 = vmul.f32 %v2877_v50, %v2823_v20  ;;  %v3343_v2 = vmul.f32 %v2815_v3, %v2877_v50 }
 0x119   :  { %6286 = vst [vmem:[#allocation112_spill] sm:$0xff] %v3288_v0  ;;  %6287 = vst [vmem:[#allocation113_spill] sm:$0xff] %v3292_v44  ;;  %v696_v0 = vmax.f32 %v2941_v13, %v2944_v14  ;;  %v679_v44 = vmax.f32 %v678_v42, %v2923_v5  ;;  %v3325_v14 = vmul.f32 %v2815_v3, %v2865_v45 }
 0x11a   :  { %6288 = vst [vmem:[#allocation114_spill] sm:$0xff] %v3296_v4  ;;  %6289 = vst [vmem:[#allocation115_spill] sm:$0xff] %v3300_v32  ;;  %v714_v4 = vmax.f32 %v2965_v25, %v2968_v29  ;;  %v723_v32 = vmax.f32 %v2977_v31, %v2980_v22  ;;  %v3329_v42 = vmul.f32 %v2865_v45, %v2913_v1 }
 0x11b   :  { %6290 = vst [vmem:[#allocation116_spill] sm:$0xff] %v3304_v54  ;;  %6291 = vst [vmem:[#allocation117_spill] sm:$0xff] %v3321_v9  ;;  %v741_v29 = vmax.f32 %v3002_v38, %v3006_v23  ;;  %v3335_v22 = vmul.f32 %v2844_v37, %v2865_v45  ;;  %v3347_v31 = vmul.f32 %v2877_v50, %v2913_v1  ;;  %v6324_v54 = vld [vmem:[#allocation71_spill] sm:$0xff] }
 0x11c   :  { %6292 = vst [vmem:[#allocation118_spill] sm:$0xff] %v3325_v14  ;;  %6293 = vst [vmem:[#allocation119_spill] sm:$0xff] %v3329_v42  ;;  %v3351_v25 = vmul.f32 %v2844_v37, %v2877_v50  ;;  %v688_v23 = vmax.f32 %v687_v47, %v2935_v10  ;;  %v697_v45 = vmax.f32 %v696_v0, %v2947_v12  ;;  %v6309_v12 = vld [vmem:[#allocation46_spill] sm:$0xff]  ;;  %v6310_v10 = vld [vmem:[#allocation45_spill] sm:$0xff] }
 0x11d   :  { %6294 = vst [vmem:[#allocation120_spill] sm:$0xff] %v3335_v22  ;;  %6295 = vst [vmem:[#allocation121_spill] sm:$0xff] %v3339_v62  ;;  %v706_v38 = vmax.f32 %v705_v46, %v2959_v16  ;;  %v680_v19 = vmax.f32 %v679_v44, %v2926_v6  ;;  %v715_v18 = vmax.f32 %v714_v4, %v2971_v21  ;;  %v6308_v16 = vld [vmem:[#allocation44_spill] sm:$0xff] }
 0x11e   :  { %6296 = vst [vmem:[#allocation122_spill] sm:$0xff] %v3343_v2  ;;  %6297 = vst [vmem:[#allocation123_spill] sm:$0xff] %v3347_v31  ;;  %v724_v13 = vmax.f32 %v723_v32, %v2983_v26  ;;  %v733_v7 = vmax.f32 %v732_v48, %v2995_v17  ;;  %v3362_v5 = vmul.f32 %v2880_v52, %v2823_v20  ;;  %v6307_v26 = vld [vmem:[#allocation40_spill] sm:$0xff] }
 0x11f   :  { %6298 = vst [vmem:[#allocation124_spill] sm:$0xff] %v3351_v25  ;;  %v3366_v50 = vmul.f32 %v2815_v3, %v2880_v52  ;;  %v3370_v0 = vmul.f32 %v2880_v52, %v2913_v1  ;;  %v742_v46 = vmax.f32 %v741_v29, %v3010_v57  ;;  %v3375_v4 = vmul.f32 %v2844_v37, %v2880_v52  ;;  %v6323_v25 = vld [vmem:[#allocation67_spill] sm:$0xff] }
 0x120   :  { %6299 = vst [vmem:[#allocation125_spill] sm:$0xff] %v3362_v5  ;;  %v3379_v32 = vmul.f32 %v2883_v53, %v2823_v20  ;;  %v3383_v44 = vmul.f32 %v2815_v3, %v2883_v53  ;;  %v3387_v47 = vmul.f32 %v2883_v53, %v2913_v1  ;;  %v3391_v48 = vmul.f32 %v2844_v37, %v2883_v53  ;;  %v6311_v37 = vld [vmem:[#allocation49_spill] sm:$0xff] }
 0x121   :  { %6300 = vst [vmem:[#allocation126_spill] sm:$0xff] %v3366_v50  ;;  %6301 = vst [vmem:[#allocation127_spill] sm:$0xff] %v3370_v0  ;;  %v689_v29 = vmax.f32 %v688_v23, %v2938_v11  ;;  %v698_v52 = vmax.f32 %v697_v45, %v2950_v15  ;;  %v707_v57 = vmax.f32 %v706_v38, %v2962_v24  ;;  %v681_v20 = vrot.slane %v680_v19, 4  ;;  %v6312_v23 = vld [vmem:[#allocation53_spill] sm:$0xff] }
 0x122   :  { %6302 = vst [vmem:[#allocation128_spill] sm:$0xff] %v3375_v4  ;;  %6303 = vst [vmem:[#allocation129_spill] sm:$0xff] %v3379_v32  ;;  %v716_v17 = vmax.f32 %v715_v18, %v2974_v30  ;;  %v725_v3 = vmax.f32 %v724_v13, %v2986_v33  ;;  %v734_v21 = vmax.f32 %v733_v7, %v6307_v26  ;;  %v6313_v38 = vld [vmem:[#allocation57_spill] sm:$0xff] }
 0x123   :  { %6304 = vst [vmem:[#allocation130_spill] sm:$0xff] %v3383_v44  ;;  %6305 = vst [vmem:[#allocation131_spill] sm:$0xff] %v3387_v47  ;;  %v743_v1 = vmax.f32 %v742_v46, %v6308_v16  ;;  %v750_v6 = vmax.f32 %v6310_v10, %v6309_v12  ;;  %v759_v53 = vmax.f32 %v6311_v37, %v3038_v56  ;;  %v6314_v18 = vld [vmem:[#allocation61_spill] sm:$0xff]  ;;  %v690_v26 = vrot.slane %v689_v29, 4 }
 0x124   :  { %6306 = vst [vmem:[#allocation132_spill] sm:$0xff] %v3391_v48  ;;  %v768_v45 = vmax.f32 %v6312_v23, %v3054_v58  ;;  %v777_v24 = vmax.f32 %v6313_v38, %v3070_v55  ;;  %v786_v30 = vmax.f32 %v6314_v18, %v3086_v28  ;;  %v6315_v13 = vld [vmem:[#allocation65_spill] sm:$0xff]  ;;  %v699_v12 = vrot.slane %v698_v52, 4  ;;  %v6318_v38 = vld [vmem:[#allocation47_spill] sm:$0xff] }
 0x125   :  { %v795_v7 = vmax.f32 %v6315_v13, %v3102_v49  ;;  %v6316_v46 = vld [vmem:[#allocation69_spill] sm:$0xff]  ;;  %v708_v10 = vrot.slane %v707_v57, 4  ;;  %v682_v33 = vmax.f32 %v680_v19, %v681_v20  ;;  %v717_v58 = vrot.slane %v716_v17, 4  ;;  %v6319_v28 = vld [vmem:[#allocation51_spill] sm:$0xff] }
 0x126   :  { %v804_v16 = vmax.f32 %v6316_v46, %v3118_v51  ;;  %v6317_v56 = vld [vmem:[#allocation73_spill] sm:$0xff]  ;;  %v726_v23 = vrot.slane %v725_v3, 4  ;;  %v735_v15 = vrot.slane %v734_v21, 4  ;;  %v744_v55 = vrot.slane %v743_v1, 4  ;;  %v6320_v48 = vld [vmem:[#allocation55_spill] sm:$0xff] }
 0x127   :  { %v813_v37 = vmax.f32 %v6317_v56, %v3134_v59  ;;  %v751_v11 = vmax.f32 %v750_v6, %v6318_v38  ;;  %v760_v18 = vmax.f32 %v759_v53, %v6319_v28  ;;  %v769_v49 = vmax.f32 %v768_v45, %v6320_v48  ;;  %v6321_v13 = vld [vmem:[#allocation59_spill] sm:$0xff]  ;;  %v6325_v28 = vld [vmem:[#allocation48_spill] sm:$0xff] }
 0x128   :  { %v778_v4 = vmax.f32 %v777_v24, %v6321_v13  ;;  %v6322_v51 = vld [vmem:[#allocation63_spill] sm:$0xff]  ;;  %v796_v22 = vmax.f32 %v795_v7, %v6323_v25  ;;  %v805_v47 = vmax.f32 %v804_v16, %v6324_v54  ;;  %v691_v59 = vmax.f32 %v689_v29, %v690_v26  ;;  %v6326_v48 = vld [vmem:[#allocation52_spill] sm:$0xff] }
 0x129   :  { %v787_v46 = vmax.f32 %v786_v30, %v6322_v51  ;;  %v700_v19 = vmax.f32 %v698_v52, %v699_v12  ;;  %v709_v20 = vmax.f32 %v707_v57, %v708_v10  ;;  %v814_v56 = vmax.f32 %v813_v37, %v3138_v27  ;;  %v6327_v13 = vld [vmem:[#allocation56_spill] sm:$0xff] }
 0x12a   :  { %v683_v0 = vrot.slane %v682_v33, 2  ;;  %v718_v31 = vmax.f32 %v716_v17, %v717_v58  ;;  %v727_v6 = vmax.f32 %v725_v3, %v726_v23  ;;  %v736_v38 = vmax.f32 %v734_v21, %v735_v15  ;;  %v6328_v51 = vld [vmem:[#allocation60_spill] sm:$0xff] }
 0x12b   :  { %v745_v53 = vmax.f32 %v743_v1, %v744_v55  ;;  %v752_v45 = vmax.f32 %v751_v11, %v6325_v28  ;;  %v761_v24 = vmax.f32 %v760_v18, %v6326_v48  ;;  %v770_v30 = vmax.f32 %v769_v49, %v6327_v13  ;;  %v6329_v25 = vld [vmem:[#allocation64_spill] sm:$0xff] }
 0x12c   :  { %v779_v7 = vmax.f32 %v778_v4, %v6328_v51  ;;  %v788_v16 = vmax.f32 %v787_v46, %v6329_v25  ;;  %v6330_v26 = vld [vmem:[#allocation68_spill] sm:$0xff]  ;;  %v692_v29 = vrot.slane %v691_v59, 2  ;;  %v701_v52 = vrot.slane %v700_v19, 2 }
 0x12d   :  { %v797_v12 = vmax.f32 %v796_v22, %v6330_v26  ;;  %v6331_v57 = vld [vmem:[#allocation72_spill] sm:$0xff]  ;;  %v710_v58 = vrot.slane %v709_v20, 2  ;;  %v684_v55 = vmax.f32 %v682_v33, %v683_v0  ;;  %v719_v21 = vrot.slane %v718_v31, 2 }
 0x12e   :  { %v806_v10 = vmax.f32 %v805_v47, %v6331_v57  ;;  %v6332_v17 = vld [vmem:[#allocation76_spill] sm:$0xff]  ;;  %v728_v11 = vrot.slane %v727_v6, 2  ;;  %v737_v3 = vrot.slane %v736_v38, 2  ;;  %v746_v1 = vrot.slane %v745_v53, 2 }
 0x12f   :  { %v815_v15 = vmax.f32 %v814_v56, %v6332_v17  ;;  %v753_v37 = vrot.slane %v752_v45, 4  ;;  %v762_v49 = vrot.slane %v761_v24, 4  ;;  %v771_v23 = vrot.slane %v770_v30, 4 }
 0x130   :  { %v780_v4 = vrot.slane %v779_v7, 4  ;;  %v789_v18 = vrot.slane %v788_v16, 4  ;;  %v798_v46 = vrot.slane %v797_v12, 4  ;;  %v807_v27 = vrot.slane %v806_v10, 4 }
 0x131   :  { %v693_v22 = vmax.f32 %v691_v59, %v692_v29  ;;  %v702_v54 = vmax.f32 %v700_v19, %v701_v52  ;;  %v711_v47 = vmax.f32 %v709_v20, %v710_v58  ;;  %v816_v57 = vrot.slane %v815_v15, 4  ;;  %v6333_v58 = vld [vmem:[#allocation77_spill] sm:$0xff] }
 0x132   :  { %v685_v26 = vrot.slane %v684_v55, 1  ;;  %v720_v25 = vmax.f32 %v718_v31, %v719_v21  ;;  %v729_v51 = vmax.f32 %v727_v6, %v728_v11  ;;  %v738_v56 = vmax.f32 %v736_v38, %v737_v3 }
 0x133   :  { %v747_v33 = vmax.f32 %v745_v53, %v746_v1  ;;  %v754_v0 = vmax.f32 %v752_v45, %v753_v37  ;;  %v763_v17 = vmax.f32 %v761_v24, %v762_v49  ;;  %v772_v13 = vmax.f32 %v770_v30, %v771_v23  ;;  %v6336_v23 = vld [vmem:[#allocation86_spill] sm:$0xff] }
 0x134   :  { %v781_v48 = vmax.f32 %v779_v7, %v780_v4  ;;  %v790_v28 = vmax.f32 %v788_v16, %v789_v18  ;;  %v799_v42 = vmax.f32 %v797_v12, %v798_v46  ;;  %v808_v32 = vmax.f32 %v806_v10, %v807_v27  ;;  %v6337_v18 = vld [vmem:[#allocation79_spill] sm:$0xff] }
 0x135   :  { %v694_v44 = vrot.slane %v693_v22, 1  ;;  %v703_v5 = vrot.slane %v702_v54, 1  ;;  %v712_v50 = vrot.slane %v711_v47, 1  ;;  %v817_v62 = vmax.f32 %v815_v15, %v816_v57 }
 0x136   :  { %v3432_v59 = vmax.f32 %v684_v55, %v685_v26  ;;  %v721_v19 = vrot.slane %v720_v25, 1  ;;  %v730_v20 = vrot.slane %v729_v51, 1  ;;  %v739_v29 = vrot.slane %v738_v56, 1 }
 0x137   :  { %v748_v31 = vrot.slane %v747_v33, 1  ;;  %v755_v6 = vrot.slane %v754_v0, 2  ;;  %v764_v38 = vrot.slane %v763_v17, 2  ;;  %v773_v53 = vrot.slane %v772_v13, 2 }
 0x138   :  { %v782_v45 = vrot.slane %v781_v48, 2  ;;  %v791_v24 = vrot.slane %v790_v28, 2  ;;  %v800_v30 = vrot.slane %v799_v42, 2  ;;  %v809_v7 = vrot.slane %v808_v32, 2 }
 0x139   :  { %v3434_v16 = vmax.f32 %v693_v22, %v694_v44  ;;  %v3436_v27 = vmax.f32 %v702_v54, %v703_v5  ;;  %v3438_v12 = vmax.f32 %v711_v47, %v712_v50  ;;  %v818_v57 = vrot.slane %v817_v62, 2  ;;  %v6338_v22 = vld [vmem:[#allocation89_spill] sm:$0xff] }
 0x13a   :  { %v3440_v26 = vmax.f32 %v720_v25, %v721_v19  ;;  %v3442_v10 = vmax.f32 %v729_v51, %v730_v20  ;;  %v3444_v52 = vmax.f32 %v738_v56, %v739_v29  ;;  %v822_v15 = vmax.f32 %v6333_v58, %v3150_v60  ;;  %v6334_v25 = vld [vmem:[#allocation80_spill] sm:$0xff]  ;;  %v6335_v51 = vld [vmem:[#allocation83_spill] sm:$0xff]  ;;  %v6341_v56 = vld [vmem:[#allocation98_spill] sm:$0xff] }
 0x13b   :  { %v3448_v55 = vmax.f32 %v747_v33, %v748_v31  ;;  %v756_v21 = vmax.f32 %v754_v0, %v755_v6  ;;  %v765_v11 = vmax.f32 %v763_v17, %v764_v38  ;;  %v774_v44 = vmax.f32 %v772_v13, %v773_v53  ;;  %v6342_v6 = vld [vmem:[#allocation82_spill] sm:$0xff]  ;;  %v6343_v53 = vld [vmem:[#allocation85_spill] sm:$0xff] }
 0x13c   :  { %v783_v3 = vmax.f32 %v781_v48, %v782_v45  ;;  %v792_v54 = vmax.f32 %v790_v28, %v791_v24  ;;  %v801_v5 = vmax.f32 %v799_v42, %v800_v30  ;;  %v810_v50 = vmax.f32 %v808_v32, %v809_v7  ;;  %v6339_v48 = vld [vmem:[#allocation92_spill] sm:$0xff]  ;;  %v6340_v42 = vld [vmem:[#allocation95_spill] sm:$0xff]  ;;  %v6345_v7 = vld [vmem:[#allocation6_spill] sm:$0xff] }
 0x13d   :  { %v819_v1 = vmax.f32 %v817_v62, %v818_v57  ;;  %v831_v37 = vmax.f32 %v6334_v25, %v3162_v8  ;;  %v840_v49 = vmax.f32 %v6335_v51, %v3174_v34  ;;  %v849_v4 = vmax.f32 %v6336_v23, %v3186_v35  ;;  %v6344_v24 = vld [vmem:[#allocation88_spill] sm:$0xff] }
 0x13e   :  { %v823_v46 = vmax.f32 %v822_v15, %v6337_v18  ;;  %v858_v17 = vmax.f32 %v6338_v22, %v3198_v36  ;;  %v867_v28 = vmax.f32 %v6339_v48, %v3210_v39  ;;  %v876_v62 = vmax.f32 %v6340_v42, %v3222_v40  ;;  %v6346_v15 = vld [vmem:[#allocation91_spill] sm:$0xff]  ;;  %v6347_v42 = vld [vmem:[#allocation94_spill] sm:$0xff]  ;;  %v6348_v48 = vld [vmem:[#allocation97_spill] sm:$0xff] }
 0x13f   :  { %v757_v32 = vrot.slane %v756_v21, 1  ;;  %v766_v13 = vrot.slane %v765_v11, 1  ;;  %v775_v47 = vrot.slane %v774_v44, 1  ;;  %v885_v33 = vmax.f32 %v6341_v56, %v3234_v41  ;;  %v6351_v35 = vld [vmem:[#allocation100_spill] sm:$0xff] }
 0x140   :  { %v784_v0 = vrot.slane %v783_v3, 1  ;;  %v793_v19 = vrot.slane %v792_v54, 1  ;;  %v802_v20 = vrot.slane %v801_v5, 1  ;;  %v811_v29 = vrot.slane %v810_v50, 1 }
 0x141   :  { %v820_v31 = vrot.slane %v819_v1, 1  ;;  %v832_v38 = vmax.f32 %v831_v37, %v6342_v6  ;;  %v841_v45 = vmax.f32 %v840_v49, %v6343_v53  ;;  %v850_v30 = vmax.f32 %v849_v4, %v6344_v24  ;;  %v6380_v24 = vld [vmem:[#allocation127_spill] sm:$0xff]  ;;  %v6386_v53 = vld [vmem:[#allocation120_spill] sm:$0xff] }
 0x142   :  { %v824_v57 = vmax.f32 %v823_v46, %v6345_v7  ;;  %v859_v40 = vmax.f32 %v858_v17, %v6346_v15  ;;  %v868_v39 = vmax.f32 %v867_v28, %v6347_v42  ;;  %v877_v36 = vmax.f32 %v876_v62, %v6348_v48  ;;  %v6357_v28 = vld [vmem:[#allocation7_spill] sm:$0xff] }
 0x143   :  { %v3472_v41 = vmax.f32 %v756_v21, %v757_v32  ;;  %v3474_v56 = vmax.f32 %v765_v11, %v766_v13  ;;  %v3476_v22 = vmax.f32 %v774_v44, %v775_v47  ;;  %v886_v37 = vmax.f32 %v885_v33, %v6351_v35  ;;  %v6358_v21 = vld [vmem:[#allocation8_spill] sm:$0xff]  ;;  %v6359_v11 = vld [vmem:[#allocation9_spill] sm:$0xff]  ;;  %v6360_v47 = vld [vmem:[#allocation10_spill] sm:$0xff] }
 0x144   :  { %v3479_v23 = vmax.f32 %v783_v3, %v784_v0  ;;  %v3481_v49 = vmax.f32 %v792_v54, %v793_v19  ;;  %v3483_v4 = vmax.f32 %v801_v5, %v802_v20  ;;  %v3485_v46 = vmax.f32 %v810_v50, %v811_v29  ;;  %v6361_v33 = vld [vmem:[#allocation11_spill] sm:$0xff]  ;;  %v6362_v0 = vld [vmem:[#allocation12_spill] sm:$0xff]  ;;  %v6363_v19 = vld [vmem:[#allocation13_spill] sm:$0xff] }
 0x145   :  { %6349 = vst [vmem:[#allocation133_spill] sm:$0xff] %v3474_v56  ;;  %6350 = vst [vmem:[#allocation134_spill] sm:$0xff] %v3476_v22  ;;  %v3487_v17 = vmax.f32 %v819_v1, %v820_v31  ;;  %v833_v62 = vmax.f32 %v832_v38, %v6357_v28  ;;  %v842_v32 = vmax.f32 %v841_v45, %v6358_v21  ;;  %v825_v44 = vrot.slane %v824_v57, 4  ;;  %v6364_v20 = vld [vmem:[#allocation102_spill] sm:$0xff]  ;;  %v6365_v50 = vld [vmem:[#allocation101_spill] sm:$0xff] }
 0x146   :  { %6352 = vst [vmem:[#allocation135_spill] sm:$0xff] %v3479_v23  ;;  %6353 = vst [vmem:[#allocation136_spill] sm:$0xff] %v3481_v49  ;;  %v851_v13 = vmax.f32 %v850_v30, %v6359_v11  ;;  %v860_v48 = vmax.f32 %v859_v40, %v6360_v47  ;;  %v869_v3 = vmax.f32 %v868_v39, %v6361_v33  ;;  %v6366_v1 = vld [vmem:[#allocation105_spill] sm:$0xff]  ;;  %v6367_v45 = vld [vmem:[#allocation114_spill] sm:$0xff] }
 0x147   :  { %6354 = vst [vmem:[#allocation137_spill] sm:$0xff] %v3483_v4  ;;  %6355 = vst [vmem:[#allocation138_spill] sm:$0xff] %v3485_v46  ;;  %v878_v54 = vmax.f32 %v877_v36, %v6362_v0  ;;  %v887_v5 = vmax.f32 %v886_v37, %v6363_v19  ;;  %v894_v29 = vmax.f32 %v6365_v50, %v6364_v20  ;;  %v6368_v30 = vld [vmem:[#allocation113_spill] sm:$0xff]  ;;  %v6370_v0 = vld [vmem:[#allocation126_spill] sm:$0xff] }
 0x148   :  { %6356 = vst [vmem:[#allocation139_spill] sm:$0xff] %v3487_v17  ;;  %v903_v31 = vmax.f32 %v6366_v1, %v3262_v61  ;;  %v912_v38 = vmax.f32 %v3276_v43, %v3280_v63  ;;  %v921_v35 = vmax.f32 %v6368_v30, %v6367_v45  ;;  %v930_v40 = vmax.f32 %v3321_v9, %v3325_v14  ;;  %v6369_v39 = vld [vmem:[#allocation121_spill] sm:$0xff]  ;;  %v6372_v33 = vld [vmem:[#allocation103_spill] sm:$0xff]  ;;  %v6375_v47 = vld [vmem:[#allocation130_spill] sm:$0xff] }
 0x149   :  { %v939_v36 = vmax.f32 %v6369_v39, %v3343_v2  ;;  %v6371_v37 = vld [vmem:[#allocation125_spill] sm:$0xff]  ;;  %v895_v20 = vmax.f32 %v894_v29, %v6372_v33  ;;  %v6373_v50 = vld [vmem:[#allocation107_spill] sm:$0xff]  ;;  %v6381_v39 = vld [vmem:[#allocation104_spill] sm:$0xff] }
 0x14a   :  { %v948_v19 = vmax.f32 %v6371_v37, %v6370_v0  ;;  %v904_v42 = vmax.f32 %v903_v31, %v6373_v50  ;;  %v6374_v61 = vld [vmem:[#allocation111_spill] sm:$0xff]  ;;  %v6376_v63 = vld [vmem:[#allocation129_spill] sm:$0xff]  ;;  %v6382_v0 = vld [vmem:[#allocation108_spill] sm:$0xff] }
 0x14b   :  { %v913_v1 = vmax.f32 %v912_v38, %v6374_v61  ;;  %v957_v43 = vmax.f32 %v6376_v63, %v6375_v47  ;;  %v6377_v15 = vld [vmem:[#allocation115_spill] sm:$0xff]  ;;  %v896_v21 = vmax.f32 %v895_v20, %v6381_v39  ;;  %v6383_v29 = vld [vmem:[#allocation112_spill] sm:$0xff]  ;;  %v861_v20 = vrot.slane %v860_v48, 4 }
 0x14c   :  { %v922_v45 = vmax.f32 %v921_v35, %v6377_v15  ;;  %v6378_v30 = vld [vmem:[#allocation119_spill] sm:$0xff]  ;;  %v949_v2 = vmax.f32 %v948_v19, %v6380_v24  ;;  %v905_v37 = vmax.f32 %v904_v42, %v6382_v0  ;;  %v6385_v38 = vld [vmem:[#allocation116_spill] sm:$0xff]  ;;  %v870_v39 = vrot.slane %v869_v3, 4 }
 0x14d   :  { %v931_v11 = vmax.f32 %v930_v40, %v6378_v30  ;;  %v6379_v14 = vld [vmem:[#allocation123_spill] sm:$0xff]  ;;  %v914_v33 = vmax.f32 %v913_v1, %v6383_v29  ;;  %v6387_v63 = vld [vmem:[#allocation124_spill] sm:$0xff]  ;;  %v834_v30 = vrot.slane %v833_v62, 4  ;;  %v879_v42 = vrot.slane %v878_v54, 4 }
 0x14e   :  { %v940_v9 = vmax.f32 %v939_v36, %v6379_v14  ;;  %v6384_v31 = vld [vmem:[#allocation131_spill] sm:$0xff]  ;;  %v923_v61 = vmax.f32 %v922_v45, %v6385_v38  ;;  %v6388_v15 = vld [vmem:[#allocation128_spill] sm:$0xff]  ;;  %v843_v36 = vrot.slane %v842_v32, 4  ;;  %v852_v14 = vrot.slane %v851_v13, 4  ;;  %v6450_v22 = vld [vmem:[#allocation137_spill] sm:$0xff] }
 0x14f   :  { %v958_v50 = vmax.f32 %v957_v43, %v6384_v31  ;;  %v932_v47 = vmax.f32 %v931_v11, %v6386_v53  ;;  %v950_v40 = vmax.f32 %v949_v2, %v6388_v15  ;;  %v6389_v19 = vld [vmem:[#allocation132_spill] sm:$0xff]  ;;  %v888_v0 = vrot.slane %v887_v5, 4  ;;  %v6455_v23 = vld [vmem:[#allocation138_spill] sm:$0xff]  ;;  %v6460_v56 = vld [vmem:[#allocation139_spill] sm:$0xff] }
 0x150   :  { %v941_v35 = vmax.f32 %v940_v9, %v6387_v63  ;;  %v897_v1 = vrot.slane %v896_v21, 4  ;;  %v906_v29 = vrot.slane %v905_v37, 4  ;;  %v915_v43 = vrot.slane %v914_v33, 4 }
 0x151   :  { %v959_v24 = vmax.f32 %v958_v50, %v6389_v19  ;;  %v924_v31 = vrot.slane %v923_v61, 4  ;;  %v933_v45 = vrot.slane %v932_v47, 4  ;;  %v951_v11 = vrot.slane %v950_v40, 4 }
 0x152   :  { %v942_v38 = vrot.slane %v941_v35, 4  ;;  %v826_v9 = vmax.f32 %v824_v57, %v825_v44  ;;  %v835_v63 = vmax.f32 %v833_v62, %v834_v30  ;;  %v844_v2 = vmax.f32 %v842_v32, %v843_v36 }
 0x153   :  { %v960_v53 = vrot.slane %v959_v24, 4  ;;  %v853_v15 = vmax.f32 %v851_v13, %v852_v14  ;;  %v862_v34 = vmax.f32 %v860_v48, %v861_v20  ;;  %v871_v51 = vmax.f32 %v869_v3, %v870_v39 }
 0x154   :  { %v880_v28 = vmax.f32 %v878_v54, %v879_v42  ;;  %v889_v50 = vmax.f32 %v887_v5, %v888_v0  ;;  %v898_v19 = vmax.f32 %v896_v21, %v897_v1  ;;  %v907_v6 = vmax.f32 %v905_v37, %v906_v29 }
 0x155   :  { %v916_v8 = vmax.f32 %v914_v33, %v915_v43  ;;  %v925_v25 = vmax.f32 %v923_v61, %v924_v31  ;;  %v934_v7 = vmax.f32 %v932_v47, %v933_v45  ;;  %v943_v18 = vmax.f32 %v941_v35, %v942_v38 }
 0x156   :  { %v952_v60 = vmax.f32 %v950_v40, %v951_v11  ;;  %v961_v58 = vmax.f32 %v959_v24, %v960_v53  ;;  %v827_v17 = vrot.slane %v826_v9, 2  ;;  %v836_v46 = vrot.slane %v835_v63, 2 }
 0x157   :  { %v845_v4 = vrot.slane %v844_v2, 2  ;;  %v854_v49 = vrot.slane %v853_v15, 2  ;;  %v863_v57 = vrot.slane %v862_v34, 2  ;;  %v872_v62 = vrot.slane %v871_v51, 2 }
 0x158   :  { %v881_v32 = vrot.slane %v880_v28, 2  ;;  %v890_v14 = vrot.slane %v889_v50, 2  ;;  %v899_v48 = vrot.slane %v898_v19, 2  ;;  %v908_v13 = vrot.slane %v907_v6, 2 }
 0x159   :  { %v917_v44 = vrot.slane %v916_v8, 2  ;;  %v926_v3 = vrot.slane %v925_v25, 2  ;;  %v935_v21 = vrot.slane %v934_v7, 2  ;;  %v944_v0 = vrot.slane %v943_v18, 2 }
 0x15a   :  { %v953_v33 = vrot.slane %v952_v60, 2  ;;  %v962_v61 = vrot.slane %v961_v58, 2  ;;  %v828_v47 = vmax.f32 %v826_v9, %v827_v17  ;;  %v837_v54 = vmax.f32 %v835_v63, %v836_v46 }
 0x15b   :  { %v846_v5 = vmax.f32 %v844_v2, %v845_v4  ;;  %v855_v53 = vmax.f32 %v853_v15, %v854_v49  ;;  %v864_v24 = vmax.f32 %v862_v34, %v863_v57  ;;  %v873_v30 = vmax.f32 %v871_v51, %v872_v62 }
 0x15c   :  { %v882_v39 = vmax.f32 %v880_v28, %v881_v32  ;;  %v891_v37 = vmax.f32 %v889_v50, %v890_v14  ;;  %v900_v29 = vmax.f32 %v898_v19, %v899_v48  ;;  %v909_v31 = vmax.f32 %v907_v6, %v908_v13 }
 0x15d   :  { %v918_v38 = vmax.f32 %v916_v8, %v917_v44  ;;  %v927_v35 = vmax.f32 %v925_v25, %v926_v3  ;;  %v936_v40 = vmax.f32 %v934_v7, %v935_v21  ;;  %v945_v36 = vmax.f32 %v943_v18, %v944_v0  ;;  %v6397_v21 = vld [vmem:[#allocation5_spill] sm:$0xff] }
 0x15e   :  { %v954_v20 = vmax.f32 %v952_v60, %v953_v33  ;;  %v963_v42 = vmax.f32 %v961_v58, %v962_v61  ;;  %v829_v1 = vrot.slane %v828_v47, 1  ;;  %v838_v43 = vrot.slane %v837_v54, 1  ;;  %v6398_v33 = vld [vmem:[#allocation14_spill] sm:$0xff] }
 0x15f   :  { %v847_v45 = vrot.slane %v846_v5, 1  ;;  %v856_v11 = vrot.slane %v855_v53, 1  ;;  %v865_v17 = vrot.slane %v864_v24, 1  ;;  %v874_v63 = vrot.slane %v873_v30, 1  ;;  %v6477_v61 = vld [vmem:[#allocation86_spill] sm:$0xff] }
 0x160   :  { %v883_v4 = vrot.slane %v882_v39, 1  ;;  %v892_v15 = vrot.slane %v891_v37, 1  ;;  %v901_v34 = vrot.slane %v900_v29, 1  ;;  %v910_v51 = vrot.slane %v909_v31, 1 }
 0x161   :  { %v919_v49 = vrot.slane %v918_v38, 1  ;;  %v928_v46 = vrot.slane %v927_v35, 1  ;;  %v937_v28 = vrot.slane %v936_v40, 1  ;;  %v946_v6 = vrot.slane %v945_v36, 1 }
 0x162   :  { %v955_v8 = vrot.slane %v954_v20, 1  ;;  %v964_v25 = vrot.slane %v963_v42, 1  ;;  %v3528_v7 = vmax.f32 %v828_v47, %v829_v1  ;;  %v3530_v60 = vmax.f32 %v837_v54, %v838_v43  ;;  %v6399_v47 = vld [vmem:[#allocation15_spill] sm:$0xff]  ;;  %v6476_v54 = vld [vmem:[#allocation8_spill] sm:$0xff] }
 0x163   :  { %v3532_v58 = vmax.f32 %v846_v5, %v847_v45  ;;  %v3534_v18 = vmax.f32 %v855_v53, %v856_v11  ;;  %v3536_v19 = vmax.f32 %v864_v24, %v865_v17  ;;  %v3538_v9 = vmax.f32 %v873_v30, %v874_v63  ;;  %v6400_v5 = vld [vmem:[#allocation16_spill] sm:$0xff]  ;;  %v6401_v24 = vld [vmem:[#allocation17_spill] sm:$0xff]  ;;  %v6407_v1 = vld [vmem:[#allocation23_spill] sm:$0xff] }
 0x164   :  { %v3540_v2 = vmax.f32 %v882_v39, %v883_v4  ;;  %v3542_v50 = vmax.f32 %v891_v37, %v892_v15  ;;  %v3544_v57 = vmax.f32 %v900_v29, %v901_v34  ;;  %v3546_v62 = vmax.f32 %v909_v31, %v910_v51  ;;  %v6402_v39 = vld [vmem:[#allocation18_spill] sm:$0xff]  ;;  %v6403_v29 = vld [vmem:[#allocation19_spill] sm:$0xff]  ;;  %v6408_v45 = vld [vmem:[#allocation24_spill] sm:$0xff] }
 0x165   :  { %6390 = vst [vmem:[#allocation140_spill] sm:$0xff] %v3534_v18  ;;  %v3548_v32 = vmax.f32 %v918_v38, %v919_v49  ;;  %v3550_v14 = vmax.f32 %v927_v35, %v928_v46  ;;  %v3552_v48 = vmax.f32 %v936_v40, %v937_v28  ;;  %v3554_v13 = vmax.f32 %v945_v36, %v946_v6  ;;  %v6404_v38 = vld [vmem:[#allocation20_spill] sm:$0xff]  ;;  %v6405_v40 = vld [vmem:[#allocation21_spill] sm:$0xff]  ;;  %v6410_v4 = vld [vmem:[#allocation26_spill] sm:$0xff] }
 0x166   :  { %v3556_v44 = vmax.f32 %v954_v20, %v955_v8  ;;  %v3558_v3 = vmax.f32 %v963_v42, %v964_v25  ;;  %v6406_v20 = vld [vmem:[#allocation22_spill] sm:$0xff]  ;;  %v6409_v17 = vld [vmem:[#allocation25_spill] sm:$0xff]  ;;  %v6411_v34 = vld [vmem:[#allocation27_spill] sm:$0xff]  ;;  %v6482_v43 = vsub.f32 %v6397_v21, %v3432_v59  ;;  %v6483_v42 = vsub.f32 %v6398_v33, %v3432_v59 }
 0x167   :  { %6391 = vst [vmem:[#allocation141_spill] sm:$0xff] %v3548_v32  ;;  %6392 = vst [vmem:[#allocation142_spill] sm:$0xff] %v3550_v14  ;;  %v6412_v49 = vld [vmem:[#allocation28_spill] sm:$0xff]  ;;  %v6413_v28 = vld [vmem:[#allocation29_spill] sm:$0xff]  ;;  %v6484_v35 = vsub.f32 %v6399_v47, %v3432_v59  ;;  %v6488_v21 = vsub.f32 %v6400_v5, %v3432_v59  ;;  %v6494_v59 = vsub.f32 %v6402_v39, %v3434_v16 }
 0x168   :  { %6393 = vst [vmem:[#allocation143_spill] sm:$0xff] %v3552_v48  ;;  %6394 = vst [vmem:[#allocation144_spill] sm:$0xff] %v3554_v13  ;;  %v6414_v8 = vld [vmem:[#allocation30_spill] sm:$0xff]  ;;  %v6415_v11 = vld [vmem:[#allocation31_spill] sm:$0xff]  ;;  %v1094_v53 = vmul.f32 1.442695, %v6482_v43  ;;  %v6500_v39 = vsub.f32 %v6404_v38, %v3434_v16 }
 0x169   :  { %6395 = vst [vmem:[#allocation145_spill] sm:$0xff] %v3556_v44  ;;  %6396 = vst [vmem:[#allocation146_spill] sm:$0xff] %v3558_v3  ;;  %v6416_v63 = vld [vmem:[#allocation32_spill] sm:$0xff]  ;;  %v6417_v15 = vld [vmem:[#allocation33_spill] sm:$0xff]  ;;  %v1096_v36 = vmul.f32 1.442695, %v6483_v42 }
 0x16a   :  { %v6418_v51 = vld [vmem:[#allocation34_spill] sm:$0xff]  ;;  %v6419_v46 = vld [vmem:[#allocation35_spill] sm:$0xff]  ;;  %v1098_v0 = vmul.f32 1.442695, %v6484_v35  ;;  %v1100_v43 = vmul.f32 1.442695, %v6488_v21  ;;  %2371 = vpow2.f32 %v1094_v53  ;;  %v6491_v35 = vsub.f32 %v6401_v24, %v3434_v16 }
 0x16b   :  { %v6485_v31 = vld [vmem:[#allocation90_spill] sm:$0xff]  ;;  %v6489_v33 = vld [vmem:[#allocation92_spill] sm:$0xff]  ;;  %v6490_v18 = vld [vmem:[#allocation93_spill] sm:$0xff]  ;;  %2373 = vpow2.f32 %v1096_v36  ;;  %v1104_v5 = vmul.f32 1.442695, %v6494_v59  ;;  %v6497_v24 = vsub.f32 %v6403_v29, %v3434_v16  ;;  %v6503_v29 = vsub.f32 %v6405_v40, %v3436_v27 }
 0x16c   :  { %v1102_v3 = vmul.f32 1.442695, %v6491_v35  ;;  %v6493_v25 = vld [vmem:[#allocation11_spill] sm:$0xff]  ;;  %v6496_v53 = vld [vmem:[#allocation96_spill] sm:$0xff]  ;;  %2375 = vpow2.f32 %v1098_v0  ;;  %v1108_v59 = vmul.f32 1.442695, %v6500_v39  ;;  %v6506_v16 = vsub.f32 %v6406_v20, %v3436_v27 }
 0x16d   :  { %v1106_v35 = vmul.f32 1.442695, %v6497_v24  ;;  %v6499_v36 = vld [vmem:[#allocation12_spill] sm:$0xff]  ;;  %2377 = vpow2.f32 %v1100_v43  ;;  %v6501_v42 = vld [vmem:[#allocation98_spill] sm:$0xff]  ;;  %v6502_v0 = vld [vmem:[#allocation99_spill] sm:$0xff]  ;;  %v6509_v40 = vsub.f32 %v6407_v1, %v3436_v27  ;;  %v6512_v20 = vsub.f32 %v6408_v45, %v3436_v27 }
 0x16e   :  { %2379 = vpow2.f32 %v1102_v3  ;;  %v1110_v24 = vmul.f32 1.442695, %v6503_v29  ;;  %v6505_v43 = vld [vmem:[#allocation13_spill] sm:$0xff]  ;;  %v1112_v38 = vmul.f32 1.442695, %v6506_v16  ;;  %v6508_v3 = vld [vmem:[#allocation102_spill] sm:$0xff]  ;;  %v6515_v1 = vsub.f32 %v6409_v17, %v3438_v12 }
 0x16f   :  { %2381 = vpow2.f32 %v1104_v5  ;;  %v1114_v29 = vmul.f32 1.442695, %v6509_v40  ;;  %v6511_v5 = vld [vmem:[#allocation104_spill] sm:$0xff]  ;;  %v1116_v16 = vmul.f32 1.442695, %v6512_v20  ;;  %v6513_v21 = vld [vmem:[#allocation105_spill] sm:$0xff]  ;;  %v6518_v27 = vsub.f32 %v6410_v4, %v3438_v12 }
 0x170   :  { %2383 = vpow2.f32 %v1106_v35  ;;  %v1118_v40 = vmul.f32 1.442695, %v6515_v1  ;;  %v6521_v17 = vsub.f32 %v6411_v34, %v3438_v12  ;;  %v6524_v4 = vsub.f32 %v6412_v49, %v3438_v12  ;;  %v6608_v32 = vld [vmem:[#allocation55_spill] sm:$0xff] }
 0x171   :  { %2385 = vpow2.f32 %v1108_v59  ;;  %v1120_v45 = vmul.f32 1.442695, %v6518_v27  ;;  %v6527_v34 = vsub.f32 %v6413_v28, %v3440_v26  ;;  %v6531_v49 = vsub.f32 %v6414_v8, %v3440_v26  ;;  %v6561_v8 = vld [vmem:[#allocation37_spill] sm:$0xff] }
 0x172   :  { %2387 = vpow2.f32 %v1110_v24  ;;  %v1122_v1 = vmul.f32 1.442695, %v6521_v17  ;;  %v1124_v27 = vmul.f32 1.442695, %v6524_v4  ;;  %v6539_v47 = vsub.f32 %v6416_v63, %v3440_v26 }
 0x173   :  { %2389 = vpow2.f32 %v1112_v38  ;;  %v1126_v17 = vmul.f32 1.442695, %v6527_v34  ;;  %v1128_v4 = vmul.f32 1.442695, %v6531_v49  ;;  %v6543_v12 = vsub.f32 %v6417_v15, %v3442_v10 }
 0x174   :  { %2391 = vpow2.f32 %v1114_v29  ;;  %v6551_v49 = vsub.f32 %v6419_v46, %v3442_v10  ;;  %v6562_v63 = vsub.f32 %v6561_v8, %v3444_v52 }
 0x175   :  { %2393 = vpow2.f32 %v1116_v16  ;;  %v6535_v16 = vsub.f32 %v6415_v11, %v3440_v26  ;;  %v6555_v26 = vld [vmem:[#allocation36_spill] sm:$0xff] }
 0x176   :  { %2395 = vpow2.f32 %v1118_v40  ;;  %v1132_v40 = vmul.f32 1.442695, %v6539_v47  ;;  %v6547_v47 = vsub.f32 %v6418_v51, %v3442_v10 }
 0x177   :  { %v3831_v6 = vpop.eup %2371  ;;  %2397 = vpow2.f32 %v1120_v45  ;;  %v1130_v30 = vmul.f32 1.442695, %v6535_v16  ;;  %v1134_v45 = vmul.f32 1.442695, %v6543_v12  ;;  %v6556_v16 = vsub.f32 %v6555_v26, %v3442_v10  ;;  %v6566_v26 = vld [vmem:[#allocation38_spill] sm:$0xff] }
 0x178   :  { %6528 = vst [vmem:[#allocation5_spill] sm:$0xff] %v3831_v6  ;;  %v3840_v20 = vpop.eup %2373  ;;  %2399 = vpow2.f32 %v1122_v1  ;;  %v1136_v34 = vmul.f32 1.442695, %v6547_v47  ;;  %v6567_v15 = vsub.f32 %v6566_v26, %v3444_v52  ;;  %v6573_v47 = vld [vmem:[#allocation41_spill] sm:$0xff]  ;;  %v6576_v26 = vld [vmem:[#allocation42_spill] sm:$0xff] }
 0x179   :  { %6532 = vst [vmem:[#allocation14_spill] sm:$0xff] %v3840_v20  ;;  %v3849_v29 = vpop.eup %2375  ;;  %2401 = vpow2.f32 %v1124_v27  ;;  %v1138_v27 = vmul.f32 1.442695, %v6551_v49  ;;  %v6571_v49 = vld [vmem:[#allocation40_spill] sm:$0xff] }
 0x17a   :  { %6536 = vst [vmem:[#allocation15_spill] sm:$0xff] %v3849_v29  ;;  %v3858_v38 = vpop.eup %2377  ;;  %2403 = vpow2.f32 %v1126_v17  ;;  %v1140_v17 = vmul.f32 1.442695, %v6556_v16  ;;  %v1144_v12 = vmul.f32 1.442695, %v6567_v15  ;;  %v6572_v46 = vsub.f32 %v6571_v49, %v3444_v52 }
 0x17b   :  { %6540 = vst [vmem:[#allocation16_spill] sm:$0xff] %v3858_v38  ;;  %v3867_v28 = vpop.eup %2379  ;;  %2405 = vpow2.f32 %v1128_v4  ;;  %v1142_v4 = vmul.f32 1.442695, %v6562_v63  ;;  %v6577_v15 = vsub.f32 %v6576_v26, %v3448_v55 }
 0x17c   :  { %6544 = vst [vmem:[#allocation17_spill] sm:$0xff] %v3867_v28  ;;  %v3876_v1 = vpop.eup %2381  ;;  %2407 = vpow2.f32 %v1130_v30  ;;  %v1148_v44 = vmul.f32 1.442695, %v6572_v46 }
 0x17d   :  { %6548 = vst [vmem:[#allocation18_spill] sm:$0xff] %v3876_v1  ;;  %v3885_v11 = vpop.eup %2383  ;;  %2409 = vpow2.f32 %v1132_v40  ;;  %v6574_v40 = vsub.f32 %v6573_v47, %v3448_v55  ;;  %v1152_v10 = vmul.f32 1.442695, %v6577_v15  ;;  %v6583_v47 = vld [vmem:[#allocation45_spill] sm:$0xff]  ;;  %v6587_v15 = vld [vmem:[#allocation47_spill] sm:$0xff] }
 0x17e   :  { %6552 = vst [vmem:[#allocation19_spill] sm:$0xff] %v3885_v11  ;;  %v3894_v13 = vpop.eup %2385  ;;  %2411 = vpow2.f32 %v1134_v45  ;;  %v6569_v45 = vld [vmem:[#allocation39_spill] sm:$0xff]  ;;  %v6584_v49 = vsub.f32 %v6583_v47, %v3472_v41  ;;  %v6588_v14 = vsub.f32 %v6587_v15, %v3472_v41 }
 0x17f   :  { %6557 = vst [vmem:[#allocation20_spill] sm:$0xff] %v3894_v13  ;;  %v3903_v48 = vpop.eup %2387  ;;  %2413 = vpow2.f32 %v1136_v34  ;;  %v6570_v8 = vsub.f32 %v6569_v45, %v3444_v52  ;;  %v1150_v16 = vmul.f32 1.442695, %v6574_v40  ;;  %v6598_v15 = vld [vmem:[#allocation51_spill] sm:$0xff] }
 0x180   :  { %6563 = vst [vmem:[#allocation21_spill] sm:$0xff] %v3903_v48  ;;  %v3912_v51 = vpop.eup %2389  ;;  %2415 = vpow2.f32 %v1138_v27  ;;  %v6578_v27 = vld [vmem:[#allocation43_spill] sm:$0xff]  ;;  %v1158_v40 = vmul.f32 1.442695, %v6584_v49  ;;  %v6595_v49 = vld [vmem:[#allocation50_spill] sm:$0xff] }
 0x181   :  { %6568 = vst [vmem:[#allocation22_spill] sm:$0xff] %v3912_v51  ;;  %v1146_v63 = vmul.f32 1.442695, %v6570_v8  ;;  %v3923_v34 = vpop.eup %2391  ;;  %2417 = vpow2.f32 %v1140_v17  ;;  %v6579_v30 = vsub.f32 %v6578_v27, %v3448_v55  ;;  %v6580_v8 = vld [vmem:[#allocation44_spill] sm:$0xff]  ;;  %v6585_v17 = vld [vmem:[#allocation46_spill] sm:$0xff] }
 0x182   :  { %6575 = vst [vmem:[#allocation23_spill] sm:$0xff] %v3923_v34  ;;  %v6581_v13 = vsub.f32 %v6580_v8, %v3448_v55  ;;  %v3934_v46 = vpop.eup %2393  ;;  %2419 = vpow2.f32 %v1142_v4  ;;  %v6586_v38 = vsub.f32 %v6585_v17, %v3472_v41  ;;  %v1162_v27 = vmul.f32 1.442695, %v6588_v14  ;;  %v6590_v55 = vld [vmem:[#allocation48_spill] sm:$0xff]  ;;  %v6592_v4 = vld [vmem:[#allocation49_spill] sm:$0xff] }
 0x183   :  { %v1154_v45 = vmul.f32 1.442695, %v6579_v30  ;;  %6582 = vst [vmem:[#allocation24_spill] sm:$0xff] %v3934_v46  ;;  %v3945_v30 = vpop.eup %2395  ;;  %2421 = vpow2.f32 %v1144_v12  ;;  %v6593_v46 = vld [vmem:[#allocation133_spill] sm:$0xff]  ;;  %v6600_v12 = vld [vmem:[#allocation52_spill] sm:$0xff] }
 0x184   :  { %v1156_v52 = vmul.f32 1.442695, %v6581_v13  ;;  %v1160_v26 = vmul.f32 1.442695, %v6586_v38  ;;  %6589 = vst [vmem:[#allocation25_spill] sm:$0xff] %v3945_v30  ;;  %v6591_v13 = vsub.f32 %v6590_v55, %v3472_v41  ;;  %v6594_v39 = vsub.f32 %v6592_v4, %v6593_v46  ;;  %v3956_v38 = vpop.eup %2397  ;;  %v6602_v55 = vld [vmem:[#allocation53_spill] sm:$0xff] }
 0x185   :  { %v6596_v34 = vsub.f32 %v6595_v49, %v6593_v46  ;;  %6597 = vst [vmem:[#allocation26_spill] sm:$0xff] %v3956_v38  ;;  %2423 = vpow2.f32 %v1146_v63  ;;  %v6599_v14 = vsub.f32 %v6598_v15, %v6593_v46  ;;  %v6601_v37 = vsub.f32 %v6600_v12, %v6593_v46  ;;  %v6610_v46 = vld [vmem:[#allocation56_spill] sm:$0xff] }
 0x186   :  { %v1164_v8 = vmul.f32 1.442695, %v6591_v13  ;;  %v1166_v47 = vmul.f32 1.442695, %v6594_v39  ;;  %v6603_v13 = vld [vmem:[#allocation134_spill] sm:$0xff]  ;;  %v3969_v39 = vpop.eup %2399  ;;  %2425 = vpow2.f32 %v1148_v44  ;;  %v6614_v44 = vld [vmem:[#allocation135_spill] sm:$0xff] }
 0x187   :  { %v1168_v17 = vmul.f32 1.442695, %v6596_v34  ;;  %v1170_v11 = vmul.f32 1.442695, %v6599_v14  ;;  %v1172_v41 = vmul.f32 1.442695, %v6601_v37  ;;  %v6604_v24 = vsub.f32 %v6602_v55, %v6603_v13 }
 0x188   :  { %6605 = vst [vmem:[#allocation27_spill] sm:$0xff] %v3969_v39  ;;  %v6606_v34 = vld [vmem:[#allocation54_spill] sm:$0xff]  ;;  %v6609_v15 = vsub.f32 %v6608_v32, %v6603_v13  ;;  %v6611_v37 = vsub.f32 %v6610_v46, %v6603_v13  ;;  %2427 = vpow2.f32 %v1150_v16  ;;  %v6613_v55 = vld [vmem:[#allocation57_spill] sm:$0xff]  ;;  %v6618_v32 = vld [vmem:[#allocation59_spill] sm:$0xff] }
 0x189   :  { %v3967_v4 = vmul.f32 1.442695, %v6604_v24  ;;  %v6607_v49 = vsub.f32 %v6606_v34, %v6603_v13  ;;  %v3986_v24 = vpop.eup %2401  ;;  %v6615_v39 = vsub.f32 %v6613_v55, %v6614_v44  ;;  %v6616_v34 = vld [vmem:[#allocation58_spill] sm:$0xff]  ;;  %2429 = vpow2.f32 %v1152_v10  ;;  %v6621_v46 = vld [vmem:[#allocation60_spill] sm:$0xff] }
 0x18a   :  { %v3979_v14 = vmul.f32 1.442695, %v6609_v15  ;;  %v3984_v12 = vmul.f32 1.442695, %v6611_v37  ;;  %6612 = vst [vmem:[#allocation28_spill] sm:$0xff] %v3986_v24  ;;  %v6619_v15 = vsub.f32 %v6618_v32, %v6614_v44  ;;  %v4003_v13 = vpop.eup %2403  ;;  %v6622_v16 = vsub.f32 %v6621_v46, %v6614_v44  ;;  %v6624_v55 = vld [vmem:[#allocation136_spill] sm:$0xff] }
 0x18b   :  { %v3974_v63 = vmul.f32 1.442695, %v6607_v49  ;;  %v3991_v29 = vmul.f32 1.442695, %v6615_v39  ;;  %v6617_v49 = vsub.f32 %v6616_v34, %v6614_v44  ;;  %6620 = vst [vmem:[#allocation29_spill] sm:$0xff] %v4003_v13  ;;  %v6623_v39 = vld [vmem:[#allocation61_spill] sm:$0xff]  ;;  %v4020_v32 = vpop.eup %2405  ;;  %2431 = vpow2.f32 %v1154_v45 }
 0x18c   :  { %v4001_v38 = vmul.f32 1.442695, %v6619_v15  ;;  %v4008_v37 = vmul.f32 1.442695, %v6622_v16  ;;  %v6625_v24 = vsub.f32 %v6623_v39, %v6624_v55  ;;  %v6627_v34 = vld [vmem:[#allocation62_spill] sm:$0xff]  ;;  %6629 = vst [vmem:[#allocation31_spill] sm:$0xff] %v4020_v32  ;;  %2433 = vpow2.f32 %v1156_v52 }
 0x18d   :  { %v3996_v59 = vmul.f32 1.442695, %v6617_v49  ;;  %v6628_v49 = vsub.f32 %v6627_v34, %v6624_v55  ;;  %v6630_v15 = vld [vmem:[#allocation63_spill] sm:$0xff]  ;;  %v6633_v44 = vld [vmem:[#allocation64_spill] sm:$0xff]  ;;  %v4037_v34 = vpop.eup %2407  ;;  %2435 = vpow2.f32 %v1158_v40 }
 0x18e   :  { %v4013_v30 = vmul.f32 1.442695, %v6625_v24  ;;  %v6631_v10 = vsub.f32 %v6630_v15, %v6624_v55  ;;  %v6634_v46 = vsub.f32 %v6633_v44, %v6624_v55  ;;  %v6635_v24 = vld [vmem:[#allocation65_spill] sm:$0xff]  ;;  %6637 = vst [vmem:[#allocation33_spill] sm:$0xff] %v4037_v34  ;;  %v6641_v15 = vld [vmem:[#allocation67_spill] sm:$0xff]  ;;  %v6644_v55 = vld [vmem:[#allocation68_spill] sm:$0xff]  ;;  %2437 = vpow2.f32 %v1160_v26 }
 0x18f   :  { %v4018_v35 = vmul.f32 1.442695, %v6628_v49  ;;  %v6636_v39 = vsub.f32 %v6635_v24, %v6450_v22  ;;  %v6638_v49 = vld [vmem:[#allocation66_spill] sm:$0xff]  ;;  %v6645_v44 = vsub.f32 %v6644_v55, %v6450_v22  ;;  %v4054_v24 = vpop.eup %2409  ;;  %v6656_v55 = vld [vmem:[#allocation72_spill] sm:$0xff]  ;;  %2439 = vpow2.f32 %v1162_v27 }
 0x190   :  { %6626 = vst [vmem:[#allocation30_spill] sm:$0xff] %v4013_v30  ;;  %v4025_v13 = vmul.f32 1.442695, %v6631_v10  ;;  %v4030_v16 = vmul.f32 1.442695, %v6634_v46  ;;  %v6639_v45 = vsub.f32 %v6638_v49, %v6450_v22  ;;  %v6642_v10 = vsub.f32 %v6641_v15, %v6450_v22  ;;  %6646 = vst [vmem:[#allocation137_spill] sm:$0xff] %v4054_v24  ;;  %v4071_v22 = vpop.eup %2411 }
 0x191   :  { %v4035_v30 = vmul.f32 1.442695, %v6636_v39  ;;  %v4052_v46 = vmul.f32 1.442695, %v6645_v44  ;;  %v6647_v39 = vld [vmem:[#allocation69_spill] sm:$0xff]  ;;  %v6649_v49 = vld [vmem:[#allocation70_spill] sm:$0xff]  ;;  %v6657_v40 = vsub.f32 %v6656_v55, %v6455_v23  ;;  %2441 = vpow2.f32 %v1164_v8 }
 0x192   :  { %6632 = vst [vmem:[#allocation32_spill] sm:$0xff] %v4025_v13  ;;  %v4042_v32 = vmul.f32 1.442695, %v6639_v45  ;;  %v4047_v13 = vmul.f32 1.442695, %v6642_v10  ;;  %v6648_v52 = vsub.f32 %v6647_v39, %v6455_v23  ;;  %v6650_v45 = vsub.f32 %v6649_v49, %v6455_v23  ;;  %v6652_v15 = vld [vmem:[#allocation71_spill] sm:$0xff] }
 0x193   :  { %v6653_v10 = vsub.f32 %v6652_v15, %v6455_v23  ;;  %6655 = vst [vmem:[#allocation8_spill] sm:$0xff] %v4071_v22  ;;  %v4076_v44 = vmul.f32 1.442695, %v6657_v40  ;;  %v6658_v39 = vld [vmem:[#allocation73_spill] sm:$0xff]  ;;  %v6661_v49 = vld [vmem:[#allocation74_spill] sm:$0xff]  ;;  %v4088_v15 = vpop.eup %2413  ;;  %v6668_v23 = vld [vmem:[#allocation76_spill] sm:$0xff]  ;;  %2443 = vpow2.f32 %v1166_v47 }
 0x194   :  { %6640 = vst [vmem:[#allocation34_spill] sm:$0xff] %v4042_v32  ;;  %6643 = vst [vmem:[#allocation35_spill] sm:$0xff] %v4047_v13  ;;  %v4059_v34 = vmul.f32 1.442695, %v6648_v52  ;;  %v4064_v32 = vmul.f32 1.442695, %v6650_v45  ;;  %v6659_v52 = vsub.f32 %v6658_v39, %v6460_v56  ;;  %v6662_v45 = vsub.f32 %v6661_v49, %v6460_v56  ;;  %v4105_v49 = vpop.eup %2415 }
 0x195   :  { %v4069_v13 = vmul.f32 1.442695, %v6653_v10  ;;  %6664 = vst [vmem:[#allocation92_spill] sm:$0xff] %v4088_v15  ;;  %v6665_v10 = vld [vmem:[#allocation75_spill] sm:$0xff]  ;;  %v6669_v55 = vsub.f32 %v6668_v23, %v6460_v56  ;;  %v6670_v39 = vld [vmem:[#allocation77_spill] sm:$0xff]  ;;  %6673 = vst [vmem:[#allocation96_spill] sm:$0xff] %v4105_v49  ;;  %2445 = vpow2.f32 %v1168_v17 }
 0x196   :  { %6651 = vst [vmem:[#allocation138_spill] sm:$0xff] %v4064_v32  ;;  %v4081_v24 = vmul.f32 1.442695, %v6659_v52  ;;  %v4086_v32 = vmul.f32 1.442695, %v6662_v45  ;;  %v6666_v26 = vsub.f32 %v6665_v10, %v6460_v56  ;;  %v6671_v52 = vsub.f32 %v6670_v39, %v3528_v7  ;;  %v6674_v45 = vld [vmem:[#allocation78_spill] sm:$0xff]  ;;  %v4122_v39 = vpop.eup %2417 }
 0x197   :  { %6654 = vst [vmem:[#allocation139_spill] sm:$0xff] %v4069_v13  ;;  %v4098_v40 = vmul.f32 1.442695, %v6669_v55  ;;  %v6675_v27 = vsub.f32 %v6674_v45, %v3528_v7  ;;  %v6677_v10 = vld [vmem:[#allocation79_spill] sm:$0xff]  ;;  %v6680_v56 = vld [vmem:[#allocation6_spill] sm:$0xff]  ;;  %6682 = vst [vmem:[#allocation99_spill] sm:$0xff] %v4122_v39  ;;  %2447 = vpow2.f32 %v1170_v11 }
 0x198   :  { %6660 = vst [vmem:[#allocation86_spill] sm:$0xff] %v4081_v24  ;;  %6663 = vst [vmem:[#allocation90_spill] sm:$0xff] %v4086_v32  ;;  %v4093_v13 = vmul.f32 1.442695, %v6666_v26  ;;  %v4103_v24 = vmul.f32 1.442695, %v6671_v52  ;;  %v6678_v26 = vsub.f32 %v6677_v10, %v3528_v7  ;;  %v6681_v23 = vsub.f32 %v6680_v56, %v3528_v7  ;;  %v4139_v7 = vpop.eup %2419 }
 0x199   :  { %v4110_v32 = vmul.f32 1.442695, %v6675_v27  ;;  %v6683_v52 = vld [vmem:[#allocation80_spill] sm:$0xff]  ;;  %v6686_v45 = vld [vmem:[#allocation81_spill] sm:$0xff]  ;;  %v6689_v10 = vld [vmem:[#allocation82_spill] sm:$0xff]  ;;  %6692 = vst [vmem:[#allocation105_spill] sm:$0xff] %v4139_v7  ;;  %2449 = vpow2.f32 %v1172_v41 }
 0x19a   :  { %6667 = vst [vmem:[#allocation93_spill] sm:$0xff] %v4093_v13  ;;  %6672 = vst [vmem:[#allocation11_spill] sm:$0xff] %v4103_v24  ;;  %v4115_v13 = vmul.f32 1.442695, %v6678_v26  ;;  %v4120_v55 = vmul.f32 1.442695, %v6681_v23  ;;  %v6684_v8 = vsub.f32 %v6683_v52, %v3530_v60  ;;  %v6687_v27 = vsub.f32 %v6686_v45, %v3530_v60 }
 0x19b   :  { %6676 = vst [vmem:[#allocation12_spill] sm:$0xff] %v4110_v32  ;;  %v6690_v26 = vsub.f32 %v6689_v10, %v3530_v60  ;;  %v6693_v56 = vld [vmem:[#allocation7_spill] sm:$0xff]  ;;  %v6697_v45 = vld [vmem:[#allocation84_spill] sm:$0xff]  ;;  %v4156_v10 = vpop.eup %2421  ;;  %2451 = vpow2.f32 %v3967_v4  ;;  %v6714_v41 = vld [vmem:[#allocation89_spill] sm:$0xff] }
 0x19c   :  { %6679 = vst [vmem:[#allocation98_spill] sm:$0xff] %v4115_v13  ;;  %v4127_v24 = vmul.f32 1.442695, %v6684_v8  ;;  %v4132_v32 = vmul.f32 1.442695, %v6687_v27  ;;  %v6694_v47 = vsub.f32 %v6693_v56, %v3530_v60  ;;  %v6695_v52 = vld [vmem:[#allocation83_spill] sm:$0xff]  ;;  %v6698_v27 = vsub.f32 %v6697_v45, %v3532_v58  ;;  %v4173_v45 = vpop.eup %2423 }
 0x19d   :  { %v4137_v13 = vmul.f32 1.442695, %v6690_v26  ;;  %v6696_v8 = vsub.f32 %v6695_v52, %v3532_v58  ;;  %6700 = vst [vmem:[#allocation37_spill] sm:$0xff] %v4156_v10  ;;  %v6701_v26 = vld [vmem:[#allocation85_spill] sm:$0xff]  ;;  %v6704_v60 = vsub.f32 %v6476_v54, %v3532_v58  ;;  %2453 = vpow2.f32 %v3974_v63  ;;  %v6721_v4 = vld [vmem:[#allocation10_spill] sm:$0xff] }
 0x19e   :  { %6685 = vst [vmem:[#allocation13_spill] sm:$0xff] %v4127_v24  ;;  %6688 = vst [vmem:[#allocation102_spill] sm:$0xff] %v4132_v32  ;;  %v4144_v23 = vmul.f32 1.442695, %v6694_v47  ;;  %v4154_v32 = vmul.f32 1.442695, %v6698_v27  ;;  %v6702_v17 = vsub.f32 %v6701_v26, %v3532_v58  ;;  %2455 = vpow2.f32 %v3979_v14 }
 0x19f   :  { %6691 = vst [vmem:[#allocation104_spill] sm:$0xff] %v4137_v13  ;;  %v4149_v24 = vmul.f32 1.442695, %v6696_v8  ;;  %v4166_v56 = vmul.f32 1.442695, %v6704_v60  ;;  %v6705_v47 = vld [vmem:[#allocation140_spill] sm:$0xff]  ;;  %v6736_v14 = vsub.f32 %v6496_v53, %v3540_v2 }
 0x1a0   :  { %6699 = vst [vmem:[#allocation36_spill] sm:$0xff] %v4154_v32  ;;  %v4161_v13 = vmul.f32 1.442695, %v6702_v17  ;;  %v6706_v52 = vsub.f32 %v6477_v61, %v6705_v47  ;;  %v6707_v27 = vld [vmem:[#allocation87_spill] sm:$0xff]  ;;  %v6709_v26 = vld [vmem:[#allocation88_spill] sm:$0xff]  ;;  %v6712_v58 = vld [vmem:[#allocation9_spill] sm:$0xff]  ;;  %v4190_v61 = vpop.eup %2425  ;;  %2457 = vpow2.f32 %v3984_v12  ;;  %v6743_v12 = vsub.f32 %v6501_v42, %v3542_v50 }
 0x1a1   :  { %v6708_v11 = vsub.f32 %v6707_v27, %v6705_v47  ;;  %v6710_v17 = vsub.f32 %v6709_v26, %v6705_v47  ;;  %v6713_v54 = vsub.f32 %v6712_v58, %v6705_v47  ;;  %v4208_v58 = vpop.eup %2427  ;;  %v6727_v63 = vld [vmem:[#allocation94_spill] sm:$0xff]  ;;  %2459 = vpow2.f32 %v3991_v29 }
 0x1a2   :  { %6703 = vst [vmem:[#allocation38_spill] sm:$0xff] %v4161_v13  ;;  %v4171_v8 = vmul.f32 1.442695, %v6706_v52  ;;  %v6715_v52 = vsub.f32 %v6714_v41, %v3536_v19  ;;  %6720 = vst [vmem:[#allocation41_spill] sm:$0xff] %v4208_v58  ;;  %v4268_v53 = vmul.f32 1.442695, %v6743_v12  ;;  %v6751_v29 = vsub.f32 %v6505_v43, %v3542_v50 }
 0x1a3   :  { %v4178_v32 = vmul.f32 1.442695, %v6708_v11  ;;  %v4183_v13 = vmul.f32 1.442695, %v6710_v17  ;;  %v4188_v60 = vmul.f32 1.442695, %v6713_v54  ;;  %v6716_v11 = vsub.f32 %v6485_v31, %v3536_v19 }
 0x1a4   :  { %v4196_v27 = vmul.f32 1.442695, %v6715_v52  ;;  %v6717_v17 = vld [vmem:[#allocation91_spill] sm:$0xff]  ;;  %v6722_v54 = vsub.f32 %v6721_v4, %v3536_v19  ;;  %v6723_v52 = vsub.f32 %v6489_v33, %v3538_v9  ;;  %v6730_v4 = vsub.f32 %v6493_v25, %v3538_v9  ;;  %6744 = vst [vmem:[#allocation50_spill] sm:$0xff] %v4268_v53 }
 0x1a5   :  { %6711 = vst [vmem:[#allocation39_spill] sm:$0xff] %v4183_v13  ;;  %v4201_v26 = vmul.f32 1.442695, %v6716_v11  ;;  %v6718_v13 = vsub.f32 %v6717_v17, %v3536_v19  ;;  %v6724_v11 = vsub.f32 %v6490_v18, %v3538_v9  ;;  %v6741_v25 = vsub.f32 %v6499_v36, %v3540_v2 }
 0x1a6   :  { %v4214_v41 = vmul.f32 1.442695, %v6722_v54  ;;  %v4219_v31 = vmul.f32 1.442695, %v6723_v52  ;;  %v4237_v33 = vmul.f32 1.442695, %v6730_v4 }
 0x1a7   :  { %v4206_v47 = vmul.f32 1.442695, %v6718_v13  ;;  %v4224_v17 = vmul.f32 1.442695, %v6724_v11  ;;  %v4226_v13 = vpop.eup %2429  ;;  %v6732_v54 = vld [vmem:[#allocation95_spill] sm:$0xff]  ;;  %2461 = vpow2.f32 %v3996_v59  ;;  %v6757_v59 = vsub.f32 %v6508_v3, %v3544_v57 }
 0x1a8   :  { %6726 = vst [vmem:[#allocation43_spill] sm:$0xff] %v4226_v13  ;;  %6731 = vst [vmem:[#allocation45_spill] sm:$0xff] %v4237_v33  ;;  %v6733_v52 = vsub.f32 %v6732_v54, %v3540_v2  ;;  %v4244_v11 = vpop.eup %2431  ;;  %v4260_v4 = vmul.f32 1.442695, %v6741_v25  ;;  %v4286_v42 = vmul.f32 1.442695, %v6751_v29  ;;  %2463 = vpow2.f32 %v4001_v38 }
 0x1a9   :  { %6719 = vst [vmem:[#allocation40_spill] sm:$0xff] %v4206_v47  ;;  %6725 = vst [vmem:[#allocation42_spill] sm:$0xff] %v4224_v17  ;;  %v6728_v47 = vsub.f32 %v6727_v63, %v3538_v9  ;;  %v4250_v63 = vmul.f32 1.442695, %v6736_v14  ;;  %v4262_v54 = vpop.eup %2433  ;;  %v6753_v25 = vld [vmem:[#allocation101_spill] sm:$0xff]  ;;  %2465 = vpow2.f32 %v4008_v37  ;;  %v6764_v38 = vsub.f32 %v6513_v21, %v3546_v62  ;;  %v6770_v37 = vld [vmem:[#allocation107_spill] sm:$0xff] }
 0x1aa   :  { %v4242_v18 = vmul.f32 1.442695, %v6733_v52  ;;  %6735 = vst [vmem:[#allocation47_spill] sm:$0xff] %v4244_v11  ;;  %6742 = vst [vmem:[#allocation133_spill] sm:$0xff] %v4260_v4  ;;  %v6745_v52 = vsub.f32 %v6502_v0, %v3542_v50  ;;  %v4280_v36 = vpop.eup %2435  ;;  %v6754_v12 = vsub.f32 %v6753_v25, %v3544_v57  ;;  %v6762_v25 = vsub.f32 %v6511_v5, %v3544_v57  ;;  %v6767_v5 = vld [vmem:[#allocation106_spill] sm:$0xff] }
 0x1ab   :  { %v4232_v19 = vmul.f32 1.442695, %v6728_v47  ;;  %6737 = vst [vmem:[#allocation48_spill] sm:$0xff] %v4250_v63  ;;  %v6738_v47 = vld [vmem:[#allocation97_spill] sm:$0xff]  ;;  %6750 = vst [vmem:[#allocation53_spill] sm:$0xff] %v4280_v36  ;;  %v6771_v21 = vsub.f32 %v6770_v37, %v3546_v62 }
 0x1ac   :  { %6734 = vst [vmem:[#allocation46_spill] sm:$0xff] %v4242_v18  ;;  %v4273_v14 = vmul.f32 1.442695, %v6745_v52  ;;  %6752 = vst [vmem:[#allocation134_spill] sm:$0xff] %v4286_v42  ;;  %v4291_v0 = vmul.f32 1.442695, %v6754_v12  ;;  %v1350_v52 = vadd.f32 %v3840_v20, %v3831_v6 }
 0x1ad   :  { %6729 = vst [vmem:[#allocation44_spill] sm:$0xff] %v4232_v19  ;;  %v6739_v19 = vsub.f32 %v6738_v47, %v3540_v2  ;;  %v4311_v12 = vmul.f32 1.442695, %v6762_v25  ;;  %v4319_v3 = vmul.f32 1.442695, %v6764_v38  ;;  %v6768_v25 = vsub.f32 %v6767_v5, %v3546_v62  ;;  %v6779_v5 = vld [vmem:[#allocation15_spill] sm:$0xff] }
 0x1ae   :  { %6746 = vst [vmem:[#allocation51_spill] sm:$0xff] %v4273_v14  ;;  %6755 = vst [vmem:[#allocation54_spill] sm:$0xff] %v4291_v0  ;;  %v4336_v38 = vmul.f32 1.442695, %v6771_v21  ;;  %v6783_v21 = vld [vmem:[#allocation32_spill] sm:$0xff] }
 0x1af   :  { %v4255_v9 = vmul.f32 1.442695, %v6739_v19  ;;  %v6747_v19 = vld [vmem:[#allocation100_spill] sm:$0xff]  ;;  %6763 = vst [vmem:[#allocation135_spill] sm:$0xff] %v4311_v12  ;;  %6765 = vst [vmem:[#allocation58_spill] sm:$0xff] %v4319_v3  ;;  %v6773_v3 = vld [vmem:[#allocation25_spill] sm:$0xff] }
 0x1b0   :  { %v6748_v47 = vsub.f32 %v6747_v19, %v3542_v50  ;;  %v4295_v19 = vpop.eup %2437  ;;  %v6759_v50 = vld [vmem:[#allocation103_spill] sm:$0xff]  ;;  %v4331_v6 = vmul.f32 1.442695, %v6768_v25  ;;  %6772 = vst [vmem:[#allocation60_spill] sm:$0xff] %v4336_v38  ;;  %v6774_v12 = vld [vmem:[#allocation26_spill] sm:$0xff]  ;;  %v1351_v25 = vadd.f32 %v6779_v5, %v1350_v52  ;;  %v6784_v38 = vld [vmem:[#allocation109_spill] sm:$0xff] }
 0x1b1   :  { %6740 = vst [vmem:[#allocation49_spill] sm:$0xff] %v4255_v9  ;;  %6756 = vst [vmem:[#allocation55_spill] sm:$0xff] %v4295_v19  ;;  %v6760_v43 = vsub.f32 %v6759_v50, %v3544_v57  ;;  %v4313_v20 = vpop.eup %2439  ;;  %v1368_v50 = vadd.f32 %v3912_v51, %v3903_v48  ;;  %v6766_v57 = vld [vmem:[#allocation30_spill] sm:$0xff]  ;;  %v6776_v51 = vld [vmem:[#allocation108_spill] sm:$0xff] }
 0x1b2   :  { %v4278_v2 = vmul.f32 1.442695, %v6748_v47  ;;  %v4301_v47 = vmul.f32 1.442695, %v6757_v59  ;;  %v1359_v59 = vadd.f32 %v3876_v1, %v3867_v28  ;;  %2467 = vpow2.f32 %v6766_v57  ;;  %6769 = vst [vmem:[#allocation59_spill] sm:$0xff] %v4331_v6  ;;  %v6780_v6 = vld [vmem:[#allocation29_spill] sm:$0xff] }
 0x1b3   :  { %v4306_v29 = vmul.f32 1.442695, %v6760_v43  ;;  %v4325_v43 = vpop.eup %2441  ;;  %v1377_v1 = vadd.f32 %v6774_v12, %v6773_v3  ;;  %2469 = vpow2.f32 %v4018_v35  ;;  %v6777_v57 = vsub.f32 %v6776_v51, %v3546_v62  ;;  %v6785_v12 = vld [vmem:[#allocation141_spill] sm:$0xff]  ;;  %v6788_v35 = vld [vmem:[#allocation110_spill] sm:$0xff] }
 0x1b4   :  { %6749 = vst [vmem:[#allocation52_spill] sm:$0xff] %v4278_v2  ;;  %6758 = vst [vmem:[#allocation56_spill] sm:$0xff] %v4301_v47  ;;  %v4340_v28 = vpop.eup %2443  ;;  %2471 = vpow2.f32 %v6783_v21  ;;  %v6786_v3 = vsub.f32 %v6784_v38, %v6785_v12  ;;  %v6789_v42 = vsub.f32 %v6788_v35, %v6785_v12  ;;  %v1395_v51 = vadd.f32 %v4088_v15, %v4071_v22  ;;  %v6794_v38 = vld [vmem:[#allocation19_spill] sm:$0xff]  ;;  %v6799_v22 = vld [vmem:[#allocation113_spill] sm:$0xff] }
 0x1b5   :  { %6761 = vst [vmem:[#allocation57_spill] sm:$0xff] %v4306_v29  ;;  %6775 = vst [vmem:[#allocation61_spill] sm:$0xff] %v4340_v28  ;;  %v4346_v48 = vmul.f32 1.442695, %v6777_v57  ;;  %v6781_v29 = vld [vmem:[#allocation31_spill] sm:$0xff]  ;;  %v4351_v37 = vpop.eup %2445  ;;  %2473 = vpow2.f32 %v4030_v16  ;;  %v6800_v16 = vld [vmem:[#allocation142_spill] sm:$0xff] }
 0x1b6   :  { %v1386_v47 = vadd.f32 %v6781_v29, %v6780_v6  ;;  %6782 = vst [vmem:[#allocation62_spill] sm:$0xff] %v4351_v37  ;;  %v4357_v0 = vmul.f32 1.442695, %v6786_v3  ;;  %v4362_v62 = vmul.f32 1.442695, %v6789_v42  ;;  %v4366_v52 = vpop.eup %2447  ;;  %v6791_v57 = vld [vmem:[#allocation111_spill] sm:$0xff]  ;;  %v1360_v3 = vadd.f32 %v6794_v38, %v1359_v59 }
 0x1b7   :  { %6778 = vst [vmem:[#allocation136_spill] sm:$0xff] %v4346_v48  ;;  %v6792_v21 = vsub.f32 %v6791_v57, %v6785_v12  ;;  %v6795_v6 = vld [vmem:[#allocation23_spill] sm:$0xff]  ;;  %2475 = vpow2.f32 %v4035_v30  ;;  %v6796_v42 = vld [vmem:[#allocation112_spill] sm:$0xff]  ;;  %v6805_v59 = vld [vmem:[#allocation34_spill] sm:$0xff] }
 0x1b8   :  { %6787 = vst [vmem:[#allocation63_spill] sm:$0xff] %v4357_v0  ;;  %6790 = vst [vmem:[#allocation64_spill] sm:$0xff] %v4362_v62  ;;  %v1369_v5 = vadd.f32 %v6795_v6, %v1368_v50  ;;  %v4376_v0 = vpop.eup %2449  ;;  %v6797_v35 = vsub.f32 %v6796_v42, %v6785_v12  ;;  %v6801_v62 = vsub.f32 %v6799_v22, %v6800_v16  ;;  %v6803_v57 = vld [vmem:[#allocation27_spill] sm:$0xff]  ;;  %2477 = vpow2.f32 %v6805_v59  ;;  %v6806_v50 = vld [vmem:[#allocation114_spill] sm:$0xff] }
 0x1b9   :  { %v4372_v29 = vmul.f32 1.442695, %v6792_v21  ;;  %v1378_v21 = vadd.f32 %v6803_v57, %v1377_v1  ;;  %v6807_v6 = vsub.f32 %v6806_v50, %v6800_v16  ;;  %v6809_v38 = vld [vmem:[#allocation16_spill] sm:$0xff]  ;;  %v6810_v42 = vld [vmem:[#allocation33_spill] sm:$0xff]  ;;  %v6812_v22 = vld [vmem:[#allocation35_spill] sm:$0xff] }
 0x1ba   :  { %v4382_v15 = vmul.f32 1.442695, %v6797_v35  ;;  %v4387_v48 = vmul.f32 1.442695, %v6801_v62  ;;  %v1352_v12 = vadd.f32 %v6809_v38, %v1351_v25  ;;  %v1387_v35 = vadd.f32 %v6810_v42, %v1386_v47  ;;  %v6813_v62 = vld [vmem:[#allocation115_spill] sm:$0xff]  ;;  %v6819_v47 = vld [vmem:[#allocation117_spill] sm:$0xff] }
 0x1bb   :  { %6793 = vst [vmem:[#allocation65_spill] sm:$0xff] %v4372_v29  ;;  %v4390_v29 = vpop.eup %2451  ;;  %v4396_v30 = vmul.f32 1.442695, %v6807_v6  ;;  %2479 = vpow2.f32 %v6812_v22  ;;  %v6814_v1 = vsub.f32 %v6813_v62, %v6800_v16  ;;  %v1396_v6 = vadd.f32 %v4105_v49, %v1395_v51  ;;  %v6820_v25 = vld [vmem:[#allocation143_spill] sm:$0xff] }
 0x1bc   :  { %6798 = vst [vmem:[#allocation66_spill] sm:$0xff] %v4382_v15  ;;  %6802 = vst [vmem:[#allocation67_spill] sm:$0xff] %v4387_v48  ;;  %v4400_v15 = vpop.eup %2453  ;;  %v6816_v48 = vld [vmem:[#allocation116_spill] sm:$0xff]  ;;  %2481 = vpow2.f32 %v4052_v46  ;;  %v6821_v42 = vsub.f32 %v6819_v47, %v6820_v25 }
 0x1bd   :  { %6804 = vst [vmem:[#allocation68_spill] sm:$0xff] %v4390_v29  ;;  %6808 = vst [vmem:[#allocation69_spill] sm:$0xff] %v4396_v30  ;;  %v4406_v57 = vmul.f32 1.442695, %v6814_v1  ;;  %v6817_v59 = vsub.f32 %v6816_v48, %v6800_v16  ;;  %v4414_v50 = vpop.eup %2455  ;;  %v6823_v30 = vld [vmem:[#allocation20_spill] sm:$0xff]  ;;  %2483 = vpow2.f32 %v4059_v34  ;;  %v6825_v48 = vld [vmem:[#allocation118_spill] sm:$0xff] }
 0x1be   :  { %6811 = vst [vmem:[#allocation70_spill] sm:$0xff] %v4400_v15  ;;  %v4420_v22 = vmul.f32 1.442695, %v6821_v42  ;;  %v1361_v62 = vadd.f32 %v6823_v30, %v1360_v3  ;;  %v6824_v1 = vld [vmem:[#allocation24_spill] sm:$0xff]  ;;  %v4424_v38 = vpop.eup %2457  ;;  %v6826_v51 = vsub.f32 %v6825_v48, %v6820_v25  ;;  %v6833_v3 = vld [vmem:[#allocation138_spill] sm:$0xff]  ;;  %v1353_v30 = vrot.slane %v1352_v12, 4 }
 0x1bf   :  { %6815 = vst [vmem:[#allocation71_spill] sm:$0xff] %v4406_v57  ;;  %v4411_v2 = vmul.f32 1.442695, %v6817_v59  ;;  %v1370_v57 = vadd.f32 %v6824_v1, %v1369_v5  ;;  %v6828_v59 = vld [vmem:[#allocation119_spill] sm:$0xff]  ;;  %v6831_v42 = vld [vmem:[#allocation28_spill] sm:$0xff]  ;;  %2485 = vpow2.f32 %v6833_v3  ;;  %v6837_v48 = vld [vmem:[#allocation137_spill] sm:$0xff] }
 0x1c0   :  { %6822 = vst [vmem:[#allocation73_spill] sm:$0xff] %v4420_v22  ;;  %v4430_v16 = vmul.f32 1.442695, %v6826_v51  ;;  %v6829_v46 = vsub.f32 %v6828_v59, %v6820_v25  ;;  %v1379_v47 = vadd.f32 %v6831_v42, %v1378_v21  ;;  %v4438_v22 = vpop.eup %2459  ;;  %v6834_v5 = vld [vmem:[#allocation120_spill] sm:$0xff]  ;;  %v1388_v51 = vadd.f32 %v6837_v48, %v1387_v35  ;;  %v6840_v59 = vld [vmem:[#allocation121_spill] sm:$0xff]  ;;  %v6844_v42 = vld [vmem:[#allocation122_spill] sm:$0xff] }
 0x1c1   :  { %6818 = vst [vmem:[#allocation72_spill] sm:$0xff] %v4411_v2  ;;  %6832 = vst [vmem:[#allocation76_spill] sm:$0xff] %v4438_v22  ;;  %v6835_v1 = vsub.f32 %v6834_v5, %v6820_v25  ;;  %v6839_v2 = vld [vmem:[#allocation139_spill] sm:$0xff]  ;;  %v1397_v25 = vadd.f32 %v4122_v39, %v1396_v6  ;;  %v1362_v48 = vrot.slane %v1361_v62, 4  ;;  %v6856_v6 = vld [vmem:[#allocation125_spill] sm:$0xff] }
 0x1c2   :  { %6827 = vst [vmem:[#allocation74_spill] sm:$0xff] %v4430_v16  ;;  %v4435_v49 = vmul.f32 1.442695, %v6829_v46  ;;  %v4447_v16 = vpop.eup %2461  ;;  %2487 = vpow2.f32 %v6839_v2  ;;  %v6841_v46 = vld [vmem:[#allocation144_spill] sm:$0xff]  ;;  %v6848_v35 = vld [vmem:[#allocation123_spill] sm:$0xff]  ;;  %v6857_v39 = vld [vmem:[#allocation145_spill] sm:$0xff] }
 0x1c3   :  { %v4444_v34 = vmul.f32 1.442695, %v6835_v1  ;;  %6838 = vst [vmem:[#allocation78_spill] sm:$0xff] %v4447_v16  ;;  %v6845_v3 = vsub.f32 %v6844_v42, %v6841_v46  ;;  %v4461_v1 = vpop.eup %2463  ;;  %2489 = vpow2.f32 %v4076_v44  ;;  %v6849_v5 = vsub.f32 %v6848_v35, %v6841_v46  ;;  %v6853_v42 = vld [vmem:[#allocation124_spill] sm:$0xff] }
 0x1c4   :  { %6830 = vst [vmem:[#allocation75_spill] sm:$0xff] %v4435_v49  ;;  %v6842_v49 = vsub.f32 %v6840_v59, %v6841_v46  ;;  %6847 = vst [vmem:[#allocation80_spill] sm:$0xff] %v4461_v1  ;;  %v1371_v59 = vrot.slane %v1370_v57, 4  ;;  %v1380_v53 = vrot.slane %v1379_v47, 4  ;;  %v1389_v63 = vrot.slane %v1388_v51, 4 }
 0x1c5   :  { %6836 = vst [vmem:[#allocation77_spill] sm:$0xff] %v4444_v34  ;;  %v4458_v14 = vmul.f32 1.442695, %v6845_v3  ;;  %v4467_v2 = vmul.f32 1.442695, %v6849_v5  ;;  %v6854_v3 = vsub.f32 %v6853_v42, %v6841_v46  ;;  %v6858_v34 = vsub.f32 %v6856_v6, %v6857_v39  ;;  %v6861_v5 = vld [vmem:[#allocation90_spill] sm:$0xff] }
 0x1c6   :  { %v4453_v21 = vmul.f32 1.442695, %v6842_v49  ;;  %v4469_v49 = vpop.eup %2465  ;;  %v6866_v42 = vld [vmem:[#allocation93_spill] sm:$0xff]  ;;  %v1398_v18 = vrot.slane %v1397_v25, 4  ;;  %v1372_v33 = vadd.f32 %v1371_v59, %v1370_v57  ;;  %v1381_v17 = vadd.f32 %v1380_v53, %v1379_v47 }
 0x1c7   :  { %6846 = vst [vmem:[#allocation6_spill] sm:$0xff] %v4458_v14  ;;  %6850 = vst [vmem:[#allocation81_spill] sm:$0xff] %v4467_v2  ;;  %v4475_v14 = vmul.f32 1.442695, %v6854_v3  ;;  %v4480_v44 = vmul.f32 1.442695, %v6858_v34  ;;  %v4482_v35 = vpop.eup %2467  ;;  %v1413_v53 = vadd.f32 %v4226_v13, %v4208_v58 }
 0x1c8   :  { %6843 = vst [vmem:[#allocation79_spill] sm:$0xff] %v4453_v21  ;;  %6851 = vst [vmem:[#allocation82_spill] sm:$0xff] %v4469_v49  ;;  %v6852_v21 = vld [vmem:[#allocation86_spill] sm:$0xff]  ;;  %v4490_v46 = vpop.eup %2469  ;;  %v6867_v3 = vld [vmem:[#allocation127_spill] sm:$0xff] }
 0x1c9   :  { %2491 = vpow2.f32 %v6852_v21  ;;  %6855 = vst [vmem:[#allocation7_spill] sm:$0xff] %v4475_v14  ;;  %6859 = vst [vmem:[#allocation83_spill] sm:$0xff] %v4480_v44  ;;  %v6862_v2 = vld [vmem:[#allocation126_spill] sm:$0xff]  ;;  %v1354_v21 = vadd.f32 %v1353_v30, %v1352_v12  ;;  %v6868_v34 = vsub.f32 %v6867_v3, %v6857_v39  ;;  %v6870_v44 = vld [vmem:[#allocation128_spill] sm:$0xff] }
 0x1ca   :  { %6860 = vst [vmem:[#allocation84_spill] sm:$0xff] %v4482_v35  ;;  %2493 = vpow2.f32 %v6861_v5  ;;  %v6863_v4 = vsub.f32 %v6862_v2, %v6857_v39  ;;  %6865 = vst [vmem:[#allocation140_spill] sm:$0xff] %v4490_v46  ;;  %v6871_v14 = vsub.f32 %v6870_v44, %v6857_v39  ;;  %v4503_v2 = vpop.eup %2471  ;;  %v6874_v30 = vld [vmem:[#allocation146_spill] sm:$0xff]  ;;  %v6879_v44 = vld [vmem:[#allocation131_spill] sm:$0xff] }
 0x1cb   :  { %2495 = vpow2.f32 %v6866_v42  ;;  %v4496_v6 = vmul.f32 1.442695, %v6868_v34  ;;  %v1363_v42 = vadd.f32 %v1362_v48, %v1361_v62  ;;  %v4511_v3 = vpop.eup %2473  ;;  %v6876_v34 = vld [vmem:[#allocation11_spill] sm:$0xff]  ;;  %v1355_v57 = vrot.slane %v1354_v21, 2 }
 0x1cc   :  { %v4488_v9 = vmul.f32 1.442695, %v6863_v4  ;;  %v4501_v5 = vmul.f32 1.442695, %v6871_v14  ;;  %2497 = vpow2.f32 %v4098_v40  ;;  %v6873_v4 = vld [vmem:[#allocation129_spill] sm:$0xff]  ;;  %v1390_v62 = vadd.f32 %v1389_v63, %v1388_v51 }
 0x1cd   :  { %6869 = vst [vmem:[#allocation87_spill] sm:$0xff] %v4496_v6  ;;  %v6875_v12 = vsub.f32 %v6873_v4, %v6874_v30  ;;  %2499 = vpow2.f32 %v6876_v34  ;;  %v6877_v6 = vld [vmem:[#allocation130_spill] sm:$0xff]  ;;  %v4524_v4 = vpop.eup %2475  ;;  %v1404_v48 = vadd.f32 %v4156_v10, %v4139_v7  ;;  %v6884_v34 = vld [vmem:[#allocation132_spill] sm:$0xff]  ;;  %v1364_v63 = vrot.slane %v1363_v42, 2 }
 0x1ce   :  { %6864 = vst [vmem:[#allocation85_spill] sm:$0xff] %v4488_v9  ;;  %6872 = vst [vmem:[#allocation88_spill] sm:$0xff] %v4501_v5  ;;  %v6878_v39 = vsub.f32 %v6877_v6, %v6874_v30  ;;  %v6880_v5 = vsub.f32 %v6879_v44, %v6874_v30  ;;  %v4529_v59 = vpop.eup %2477  ;;  %v6883_v6 = vld [vmem:[#allocation98_spill] sm:$0xff]  ;;  %v1373_v51 = vrot.slane %v1372_v33, 2  ;;  %v1391_v13 = vrot.slane %v1390_v62, 2 }
 0x1cf   :  { %v4509_v9 = vmul.f32 1.442695, %v6875_v12  ;;  %v6881_v12 = vld [vmem:[#allocation12_spill] sm:$0xff]  ;;  %6882 = vst [vmem:[#allocation9_spill] sm:$0xff] %v4529_v59  ;;  %v4539_v47 = vpop.eup %2479  ;;  %v1405_v58 = vadd.f32 %v4173_v45, %v1404_v48  ;;  %v1414_v7 = vadd.f32 %v4244_v11, %v1413_v53 }
 0x1d0   :  { %v4517_v14 = vmul.f32 1.442695, %v6878_v39  ;;  %v4522_v40 = vmul.f32 1.442695, %v6880_v5  ;;  %2501 = vpow2.f32 %v6881_v12  ;;  %v6885_v39 = vsub.f32 %v6884_v34, %v6874_v30  ;;  %6886 = vst [vmem:[#allocation89_spill] sm:$0xff] %v4539_v47  ;;  %v4544_v10 = vpop.eup %2481 }
 0x1d1   :  { %2503 = vpow2.f32 %v6883_v6  ;;  %v1399_v5 = vadd.f32 %v1398_v18, %v1397_v25  ;;  %v1422_v12 = vadd.f32 %v4295_v19, %v4280_v36  ;;  %6887 = vst [vmem:[#allocation91_spill] sm:$0xff] %v4544_v10  ;;  %v6888_v6 = vld [vmem:[#allocation13_spill] sm:$0xff]  ;;  %v1382_v30 = vrot.slane %v1381_v17, 2  ;;  %v4551_v34 = vpop.eup %2483  ;;  %v6892_v36 = vld [vmem:[#allocation104_spill] sm:$0xff] }
 0x1d2   :  { %v4535_v44 = vmul.f32 1.442695, %v6885_v39  ;;  %2505 = vpow2.f32 %v4120_v55  ;;  %v1431_v18 = vadd.f32 %v4351_v37, %v4340_v28  ;;  %v1440_v25 = vadd.f32 %v4400_v15, %v4390_v29  ;;  %6889 = vst [vmem:[#allocation10_spill] sm:$0xff] %v4551_v34  ;;  %v6890_v39 = vld [vmem:[#allocation102_spill] sm:$0xff]  ;;  %v4555_v19 = vpop.eup %2485 }
 0x1d3   :  { %2507 = vpow2.f32 %v6888_v6  ;;  %v1356_v55 = vadd.f32 %v1355_v57, %v1354_v21  ;;  %6891 = vst [vmem:[#allocation94_spill] sm:$0xff] %v4555_v19  ;;  %v1400_v6 = vrot.slane %v1399_v5, 2  ;;  %v1449_v37 = vadd.f32 %v4447_v16, %v4438_v22  ;;  %v4561_v28 = vpop.eup %2487  ;;  %v6896_v16 = vld [vmem:[#allocation36_spill] sm:$0xff] }
 0x1d4   :  { %2509 = vpow2.f32 %v6890_v39  ;;  %6893 = vst [vmem:[#allocation95_spill] sm:$0xff] %v4561_v28  ;;  %v1365_v15 = vadd.f32 %v1364_v63, %v1363_v42  ;;  %v1374_v39 = vadd.f32 %v1373_v51, %v1372_v33  ;;  %v1423_v21 = vadd.f32 %v4313_v20, %v1422_v12  ;;  %v4565_v57 = vpop.eup %2489  ;;  %v6898_v42 = vld [vmem:[#allocation38_spill] sm:$0xff] }
 0x1d5   :  { %2511 = vpow2.f32 %v6892_v36  ;;  %6894 = vst [vmem:[#allocation97_spill] sm:$0xff] %v4565_v57  ;;  %v1383_v48 = vadd.f32 %v1382_v30, %v1381_v17  ;;  %v1432_v36 = vadd.f32 %v4366_v52, %v1431_v18  ;;  %v1441_v53 = vadd.f32 %v4414_v50, %v1440_v25 }
 0x1d6   :  { %2513 = vpow2.f32 %v4144_v23  ;;  %v4570_v29 = vpop.eup %2491  ;;  %v1357_v22 = vrot.slane %v1356_v55, 1  ;;  %v4573_v11 = vadd.f32 %v1391_v13, %v1390_v62  ;;  %v1406_v23 = vadd.f32 %v4190_v61, %v1405_v58 }
 0x1d7   :  { %2515 = vpow2.f32 %v4149_v24  ;;  %6895 = vst [vmem:[#allocation100_spill] sm:$0xff] %v4570_v29  ;;  %v4576_v33 = vpop.eup %2493  ;;  %v4579_v63 = vadd.f32 %v1400_v6, %v1399_v5  ;;  %v1415_v24 = vadd.f32 %v4262_v54, %v1414_v7  ;;  %v1450_v17 = vadd.f32 %v4461_v1, %v1449_v37  ;;  %v6904_v6 = vld [vmem:[#allocation39_spill] sm:$0xff] }
 0x1d8   :  { %2517 = vpow2.f32 %v6896_v16  ;;  %6897 = vst [vmem:[#allocation101_spill] sm:$0xff] %v4576_v33  ;;  %v4583_v51 = vpop.eup %2495  ;;  %v1366_v16 = vrot.slane %v1365_v15, 1  ;;  %v1375_v12 = vrot.slane %v1374_v39, 1  ;;  %v1424_v13 = vadd.f32 %v4325_v43, %v1423_v21 }
 0x1d9   :  { %2519 = vpow2.f32 %v6898_v42  ;;  %6899 = vst [vmem:[#allocation103_spill] sm:$0xff] %v4583_v51  ;;  %v4587_v62 = vpop.eup %2497  ;;  %v1384_v58 = vrot.slane %v1383_v48, 1  ;;  %v1433_v5 = vadd.f32 %v4376_v0, %v1432_v36  ;;  %v1442_v30 = vadd.f32 %v4424_v38, %v1441_v53 }
 0x1da   :  { %2521 = vpow2.f32 %v4166_v56  ;;  %6900 = vst [vmem:[#allocation30_spill] sm:$0xff] %v4587_v62  ;;  %v4592_v7 = vpop.eup %2499  ;;  %v4595_v37 = vadd.f32 %v1357_v22, %v1356_v55  ;;  %v1393_v56 = vrot.slane %v4573_v11, 1  ;;  %v1407_v18 = vrot.slane %v1406_v23, 4 }
 0x1db   :  { %2523 = vpow2.f32 %v4171_v8  ;;  %6901 = vst [vmem:[#allocation106_spill] sm:$0xff] %v4592_v7  ;;  %v1402_v8 = vrot.slane %v4579_v63, 1  ;;  %v1416_v21 = vrot.slane %v1415_v24, 4  ;;  %v1451_v36 = vadd.f32 %v4469_v49, %v1450_v17 }
 0x1dc   :  { %2525 = vpow2.f32 %v4178_v32  ;;  %6902 = vst [vmem:[#allocation107_spill] sm:$0xff] %v4595_v37  ;;  %v4606_v53 = vadd.f32 %v1366_v16, %v1365_v15  ;;  %v1425_v32 = vrot.slane %v1424_v13, 4  ;;  %v1458_v22 = vadd.f32 %v4490_v46, %v4482_v35  ;;  %v6910_v46 = vld [vmem:[#allocation40_spill] sm:$0xff] }
 0x1dd   :  { %v4598_v25 = vpop.eup %2501  ;;  %2527 = vpow2.f32 %v6904_v6  ;;  %v1434_v6 = vrot.slane %v1433_v5, 4  ;;  %v1443_v37 = vrot.slane %v1442_v30, 4  ;;  %v1467_v1 = vadd.f32 %v4529_v59, %v4524_v4 }
 0x1de   :  { %6903 = vst [vmem:[#allocation108_spill] sm:$0xff] %v4598_v25  ;;  %v4603_v42 = vpop.eup %2503  ;;  %2529 = vpow2.f32 %v4188_v60  ;;  %6906 = vst [vmem:[#allocation109_spill] sm:$0xff] %v4606_v53  ;;  %v1408_v60 = vadd.f32 %v1407_v18, %v1406_v23  ;;  %v1476_v15 = vadd.f32 %v4555_v19, %v4551_v34  ;;  %v1485_v16 = vadd.f32 %v4576_v33, %v4570_v29 }
 0x1df   :  { %6905 = vst [vmem:[#allocation32_spill] sm:$0xff] %v4603_v42  ;;  %v4610_v55 = vpop.eup %2505  ;;  %2531 = vpow2.f32 %v4196_v27  ;;  %v4625_v27 = vadd.f32 %v1375_v12, %v1374_v39  ;;  %v1417_v35 = vadd.f32 %v1416_v21, %v1415_v24  ;;  %v1452_v49 = vrot.slane %v1451_v36, 4  ;;  %v6913_v24 = vld [vmem:[#allocation42_spill] sm:$0xff] }
 0x1e0   :  { %6907 = vst [vmem:[#allocation141_spill] sm:$0xff] %v4610_v55  ;;  %v4615_v17 = vpop.eup %2507  ;;  %2533 = vpow2.f32 %v4201_v26  ;;  %v4630_v26 = vadd.f32 %v1384_v58, %v1383_v48  ;;  %v1426_v23 = vadd.f32 %v1425_v32, %v1424_v13  ;;  %v1459_v18 = vadd.f32 %v4503_v2, %v1458_v22  ;;  %v6915_v58 = vld [vmem:[#allocation44_spill] sm:$0xff] }
 0x1e1   :  { %6908 = vst [vmem:[#allocation110_spill] sm:$0xff] %v4615_v17  ;;  %v4622_v53 = vpop.eup %2509  ;;  %2535 = vpow2.f32 %v6910_v46  ;;  %6911 = vst [vmem:[#allocation112_spill] sm:$0xff] %v4625_v27  ;;  %v1435_v33 = vadd.f32 %v1434_v6, %v1433_v5  ;;  %v1444_v29 = vadd.f32 %v1443_v37, %v1442_v30  ;;  %v1468_v46 = vadd.f32 %v4539_v47, %v1467_v1  ;;  %v6918_v1 = vld [vmem:[#allocation45_spill] sm:$0xff] }
 0x1e2   :  { %6909 = vst [vmem:[#allocation111_spill] sm:$0xff] %v4622_v53  ;;  %v4627_v59 = vpop.eup %2511  ;;  %2537 = vpow2.f32 %v4214_v41  ;;  %6912 = vst [vmem:[#allocation113_spill] sm:$0xff] %v4630_v26  ;;  %v1409_v12 = vrot.slane %v1408_v60, 2  ;;  %v1477_v41 = vadd.f32 %v4561_v28, %v1476_v15  ;;  %v1486_v48 = vadd.f32 %v4583_v51, %v1485_v16  ;;  %v6920_v15 = vld [vmem:[#allocation46_spill] sm:$0xff] }
 0x1e3   :  { %v4633_v19 = vpop.eup %2513  ;;  %2539 = vpow2.f32 %v4219_v31  ;;  %v4646_v21 = vadd.f32 %v1393_v56, %v4573_v11  ;;  %v1418_v31 = vrot.slane %v1417_v35, 2  ;;  %v1453_v5 = vadd.f32 %v1452_v49, %v1451_v36  ;;  %v6922_v49 = vld [vmem:[#allocation48_spill] sm:$0xff]  ;;  %v6935_v28 = vld [vmem:[#allocation54_spill] sm:$0xff] }
 0x1e4   :  { %v4637_v39 = vpop.eup %2515  ;;  %2541 = vpow2.f32 %v6913_v24  ;;  %v1427_v37 = vrot.slane %v1426_v23, 2  ;;  %v1460_v32 = vadd.f32 %v4511_v3, %v1459_v18  ;;  %v1494_v22 = vadd.f32 %v4598_v25, %v4592_v7  ;;  %v6927_v7 = vld [vmem:[#allocation133_spill] sm:$0xff] }
 0x1e5   :  { %v4642_v13 = vpop.eup %2517  ;;  %2543 = vpow2.f32 %v6915_v58  ;;  %6916 = vst [vmem:[#allocation34_spill] sm:$0xff] %v4646_v21  ;;  %v1436_v16 = vrot.slane %v1435_v33, 2  ;;  %v1445_v24 = vrot.slane %v1444_v29, 2  ;;  %v1469_v11 = vadd.f32 %v4544_v10, %v1468_v46  ;;  %v6924_v21 = vld [vmem:[#allocation49_spill] sm:$0xff]  ;;  %v4671_v46 = vpop.f32.mrf.mxu1 }
 0x1e6   :  { %6914 = vst [vmem:[#allocation142_spill] sm:$0xff] %v4642_v13  ;;  %v4648_v30 = vpop.eup %2519  ;;  %2545 = vpow2.f32 %v6918_v1  ;;  %v1410_v36 = vadd.f32 %v1409_v12, %v1408_v60  ;;  %v1478_v58 = vadd.f32 %v4565_v57, %v1477_v41  ;;  %v1487_v18 = vadd.f32 %v4587_v62, %v1486_v48 }
 0x1e7   :  { %6917 = vst [vmem:[#allocation114_spill] sm:$0xff] %v4648_v30  ;;  %v4654_v6 = vpop.eup %2521  ;;  %2547 = vpow2.f32 %v6920_v15  ;;  %v4667_v26 = vadd.f32 %v1402_v8, %v4579_v63  ;;  %v1419_v15 = vadd.f32 %v1418_v31, %v1417_v35  ;;  %v1454_v27 = vrot.slane %v1453_v5, 2  ;;  %v6930_v35 = vld [vmem:[#allocation51_spill] sm:$0xff] }
 0x1e8   :  { %6919 = vst [vmem:[#allocation35_spill] sm:$0xff] %v4654_v6  ;;  %v4658_v56 = vpop.eup %2523  ;;  %2549 = vpow2.f32 %v6922_v49  ;;  %v1428_v60 = vadd.f32 %v1427_v37, %v1426_v23  ;;  %v1461_v12 = vrot.slane %v1460_v32, 4  ;;  %v1495_v41 = vadd.f32 %v4603_v42, %v1494_v22  ;;  %v6928_v49 = vld [vmem:[#allocation50_spill] sm:$0xff] }
 0x1e9   :  { %6921 = vst [vmem:[#allocation115_spill] sm:$0xff] %v4658_v56  ;;  %v4663_v1 = vpop.eup %2525  ;;  %2551 = vpow2.f32 %v6924_v21  ;;  %6925 = vst [vmem:[#allocation117_spill] sm:$0xff] %v4667_v26  ;;  %v1437_v21 = vadd.f32 %v1436_v16, %v1435_v33  ;;  %v1446_v62 = vadd.f32 %v1445_v24, %v1444_v29  ;;  %v1470_v63 = vrot.slane %v1469_v11, 4  ;;  %v4688_v29 = vpop.f32.mrf.mxu1  ;;  %v6934_v33 = vld [vmem:[#allocation134_spill] sm:$0xff] }
 0x1ea   :  { %6923 = vst [vmem:[#allocation116_spill] sm:$0xff] %v4663_v1  ;;  %v4669_v25 = vpop.eup %2527  ;;  %2553 = vpow2.f32 %v6927_v7  ;;  %v1411_v31 = vrot.slane %v1410_v36, 1  ;;  %v1479_v26 = vrot.slane %v1478_v58, 4  ;;  %v1488_v51 = vrot.slane %v1487_v18, 4  ;;  %v6932_v7 = vld [vmem:[#allocation52_spill] sm:$0xff] }
 0x1eb   :  { %6926 = vst [vmem:[#allocation143_spill] sm:$0xff] %v4669_v25  ;;  %v4675_v48 = vpop.eup %2529  ;;  %2555 = vpow2.f32 %v6928_v49  ;;  %v1420_v23 = vrot.slane %v1419_v15, 1  ;;  %v1455_v37 = vadd.f32 %v1454_v27, %v1453_v5  ;;  %v1503_v22 = vadd.f32 %v4622_v53, %v4615_v17  ;;  %v6937_v53 = vld [vmem:[#allocation56_spill] sm:$0xff] }
 0x1ec   :  { %v4678_v8 = vpop.eup %2531  ;;  %2557 = vpow2.f32 %v6930_v35  ;;  %v1429_v16 = vrot.slane %v1428_v60, 1  ;;  %v1462_v24 = vadd.f32 %v1461_v12, %v1460_v32  ;;  %v1496_v35 = vadd.f32 %v4610_v55, %v1495_v41  ;;  %v6940_v32 = vld [vmem:[#allocation57_spill] sm:$0xff] }
 0x1ed   :  { %6929 = vst [vmem:[#allocation118_spill] sm:$0xff] %v4678_v8  ;;  %v4681_v57 = vpop.eup %2533  ;;  %2559 = vpow2.f32 %v6932_v7  ;;  %v1438_v7 = vrot.slane %v1437_v21, 1  ;;  %v1447_v34 = vrot.slane %v1446_v62, 1  ;;  %v1471_v27 = vadd.f32 %v1470_v63, %v1469_v11  ;;  %v4708_v11 = vpop.f32.mrf.mxu1  ;;  %v6942_v63 = vld [vmem:[#allocation135_spill] sm:$0xff] }
 0x1ee   :  { %6931 = vst [vmem:[#allocation119_spill] sm:$0xff] %v4681_v57  ;;  %v4686_v49 = vpop.eup %2535  ;;  %2561 = vpow2.f32 %v6934_v33  ;;  %v4698_v17 = vadd.f32 %v1411_v31, %v1410_v36  ;;  %v1480_v10 = vadd.f32 %v1479_v26, %v1478_v58  ;;  %v1489_v47 = vadd.f32 %v1488_v51, %v1487_v18  ;;  %v6944_v58 = vld [vmem:[#allocation58_spill] sm:$0xff] }
 0x1ef   :  { %6933 = vst [vmem:[#allocation138_spill] sm:$0xff] %v4686_v49  ;;  %v4692_v42 = vpop.eup %2537  ;;  %2563 = vpow2.f32 %v6935_v28  ;;  %v4703_v12 = vadd.f32 %v1420_v23, %v1419_v15  ;;  %v1456_v41 = vrot.slane %v1455_v37, 1  ;;  %v1504_v28 = vadd.f32 %v4627_v59, %v1503_v22  ;;  %v6947_v22 = vld [vmem:[#allocation59_spill] sm:$0xff] }
 0x1f0   :  { %v4695_v5 = vpop.eup %2539  ;;  %2565 = vpow2.f32 %v6937_v53  ;;  %6938 = vst [vmem:[#allocation139_spill] sm:$0xff] %v4698_v17  ;;  %v4711_v53 = vadd.f32 %v1429_v16, %v1428_v60  ;;  %v1463_v36 = vrot.slane %v1462_v24, 2  ;;  %v1497_v26 = vrot.slane %v1496_v35, 4 }
 0x1f1   :  { %6936 = vst [vmem:[#allocation120_spill] sm:$0xff] %v4695_v5  ;;  %v4700_v33 = vpop.eup %2541  ;;  %2567 = vpow2.f32 %v6940_v32  ;;  %6941 = vst [vmem:[#allocation144_spill] sm:$0xff] %v4703_v12  ;;  %v4716_v18 = vadd.f32 %v1438_v7, %v1437_v21  ;;  %v4718_v15 = vadd.f32 %v1447_v34, %v1446_v62  ;;  %v1472_v31 = vrot.slane %v1471_v27, 2  ;;  %v6951_v34 = vld [vmem:[#allocation5_spill] sm:$0xff] }
 0x1f2   :  { %6939 = vst [vmem:[#allocation121_spill] sm:$0xff] %v4700_v33  ;;  %v4706_v55 = vpop.eup %2543  ;;  %2569 = vpow2.f32 %v6942_v63  ;;  %6943 = vst [vmem:[#allocation122_spill] sm:$0xff] %v4711_v53  ;;  %v1481_v32 = vrot.slane %v1480_v10, 2  ;;  %v1490_v12 = vrot.slane %v1489_v47, 2  ;;  %v1512_v60 = vadd.f32 %v4642_v13, %v4637_v39  ;;  %v6949_v63 = vld [vmem:[#allocation60_spill] sm:$0xff] }
 0x1f3   :  { %v4713_v51 = vpop.eup %2545  ;;  %2571 = vpow2.f32 %v6944_v58  ;;  %6945 = vst [vmem:[#allocation123_spill] sm:$0xff] %v4716_v18  ;;  %6946 = vst [vmem:[#allocation86_spill] sm:$0xff] %v4718_v15  ;;  %v4728_v53 = vadd.f32 %v1456_v41, %v1455_v37  ;;  %v1505_v21 = vadd.f32 %v4633_v19, %v1504_v28  ;;  %v4733_v62 = vmul.f32 %v6951_v34, %v4688_v29  ;;  %v4737_v58 = vpop.f32.mrf.mxu1  ;;  %v6954_v37 = vld [vmem:[#allocation63_spill] sm:$0xff]  ;;  %v6955_v34 = vld [vmem:[#allocation14_spill] sm:$0xff] }
 0x1f4   :  { %v4720_v23 = vpop.eup %2547  ;;  %2573 = vpow2.f32 %v6947_v22  ;;  %v6953_v22 = vld [vmem:[#allocation136_spill] sm:$0xff]  ;;  %v1464_v15 = vadd.f32 %v1463_v36, %v1462_v24  ;;  %v1498_v18 = vadd.f32 %v1497_v26, %v1496_v35  ;;  %v1521_v17 = vadd.f32 %v4663_v1, %v4658_v56  ;;  %v6959_v1 = vld [vmem:[#allocation65_spill] sm:$0xff] }
 0x1f5   :  { %v4725_v16 = vpop.eup %2549  ;;  %2575 = vpow2.f32 %v6949_v63  ;;  %6950 = vst [vmem:[#allocation125_spill] sm:$0xff] %v4728_v53  ;;  %6952 = vst [vmem:[#allocation145_spill] sm:$0xff] %v4733_v62  ;;  %v1473_v41 = vadd.f32 %v1472_v31, %v1471_v27  ;;  %v1530_v28 = vadd.f32 %v4681_v57, %v4678_v8  ;;  %v4749_v53 = vmul.f32 %v6955_v34, %v4671_v46  ;;  %v6963_v57 = vld [vmem:[#allocation66_spill] sm:$0xff] }
 0x1f6   :  { %6948 = vst [vmem:[#allocation124_spill] sm:$0xff] %v4725_v16  ;;  %v4735_v7 = vpop.eup %2551  ;;  %2577 = vpow2.f32 %v6953_v22  ;;  %v6957_v22 = vld [vmem:[#allocation64_spill] sm:$0xff]  ;;  %v1482_v24 = vadd.f32 %v1481_v32, %v1480_v10  ;;  %v1491_v35 = vadd.f32 %v1490_v12, %v1489_v47  ;;  %v1513_v36 = vadd.f32 %v4648_v30, %v1512_v60  ;;  %v6964_v60 = vld [vmem:[#allocation67_spill] sm:$0xff] }
 0x1f7   :  { %v4742_v63 = vpop.eup %2553  ;;  %2579 = vpow2.f32 %v6954_v37  ;;  %6956 = vst [vmem:[#allocation90_spill] sm:$0xff] %v4749_v53  ;;  %v1506_v27 = vrot.slane %v1505_v21, 4  ;;  %v1539_v31 = vadd.f32 %v4700_v33, %v4695_v5  ;;  %v6960_v37 = vld [vmem:[#allocation15_spill] sm:$0xff]  ;;  %v1465_v10 = vrot.slane %v1464_v15, 1  ;;  %v6965_v33 = vld [vmem:[#allocation16_spill] sm:$0xff] }
 0x1f8   :  { %v4751_v62 = vpop.eup %2555  ;;  %2581 = vpow2.f32 %v6957_v22  ;;  %v4762_v34 = vmul.f32 %v6960_v37, %v4737_v58  ;;  %v1499_v47 = vrot.slane %v1498_v18, 2  ;;  %v1522_v12 = vadd.f32 %v4669_v25, %v1521_v17  ;;  %v6970_v25 = vld [vmem:[#allocation71_spill] sm:$0xff] }
 0x1f9   :  { %v4755_v26 = vpop.eup %2557  ;;  %2583 = vpow2.f32 %v6959_v1  ;;  %v1474_v1 = vrot.slane %v1473_v41, 1  ;;  %v1531_v22 = vadd.f32 %v4686_v49, %v1530_v28  ;;  %v4774_v5 = vmul.f32 %v6965_v33, %v4708_v11 }
 0x1fa   :  { %6958 = vst [vmem:[#allocation126_spill] sm:$0xff] %v4755_v26  ;;  %6961 = vst [vmem:[#allocation93_spill] sm:$0xff] %v4762_v34  ;;  %v4764_v53 = vpop.eup %2559  ;;  %2585 = vpow2.f32 %v6963_v57  ;;  %v6968_v34 = vld [vmem:[#allocation69_spill] sm:$0xff]  ;;  %v1483_v57 = vrot.slane %v1482_v24, 1  ;;  %v1492_v8 = vrot.slane %v1491_v35, 1  ;;  %v1514_v56 = vadd.f32 %v4654_v6, %v1513_v36 }
 0x1fb   :  { %6962 = vst [vmem:[#allocation127_spill] sm:$0xff] %v4764_v53  ;;  %v4768_v32 = vpop.eup %2561  ;;  %2587 = vpow2.f32 %v6964_v60  ;;  %6966 = vst [vmem:[#allocation128_spill] sm:$0xff] %v4774_v5  ;;  %v1507_v60 = vadd.f32 %v1506_v27, %v1505_v21  ;;  %v1540_v30 = vadd.f32 %v4706_v55, %v1539_v31  ;;  %v1548_v28 = vadd.f32 %v4725_v16, %v4720_v23  ;;  %v6972_v5 = vld [vmem:[#allocation72_spill] sm:$0xff]  ;;  %v6975_v6 = vld [vmem:[#allocation73_spill] sm:$0xff] }
 0x1fc   :  { %v4776_v37 = vpop.eup %2563  ;;  %2589 = vpow2.f32 %v6968_v34  ;;  %v4789_v49 = vadd.f32 %v1465_v10, %v1464_v15  ;;  %v1500_v34 = vadd.f32 %v1499_v47, %v1498_v18  ;;  %v1523_v13 = vadd.f32 %v4675_v48, %v1522_v12  ;;  %v6978_v16 = vld [vmem:[#allocation74_spill] sm:$0xff] }
 0x1fd   :  { %6967 = vst [vmem:[#allocation129_spill] sm:$0xff] %v4776_v37  ;;  %v4780_v17 = vpop.eup %2565  ;;  %2591 = vpow2.f32 %v6970_v25  ;;  %v4795_v25 = vadd.f32 %v1474_v1, %v1473_v41  ;;  %v1532_v21 = vadd.f32 %v4692_v42, %v1531_v22  ;;  %v1557_v27 = vadd.f32 %v4755_v26, %v4751_v62  ;;  %v6983_v22 = vld [vmem:[#allocation77_spill] sm:$0xff] }
 0x1fe   :  { %6969 = vst [vmem:[#allocation146_spill] sm:$0xff] %v4780_v17  ;;  %v4786_v33 = vpop.eup %2567  ;;  %2593 = vpow2.f32 %v6972_v5  ;;  %6973 = vst [vmem:[#allocation130_spill] sm:$0xff] %v4789_v49  ;;  %v4803_v5 = vadd.f32 %v1483_v57, %v1482_v24  ;;  %v1515_v18 = vrot.slane %v1514_v56, 4  ;;  %v1566_v15 = vadd.f32 %v4780_v17, %v4776_v37 }
 0x1ff   :  { %6971 = vst [vmem:[#allocation11_spill] sm:$0xff] %v4786_v33  ;;  %v4792_v36 = vpop.eup %2569  ;;  %2595 = vpow2.f32 %v6975_v6  ;;  %6976 = vst [vmem:[#allocation12_spill] sm:$0xff] %v4795_v25  ;;  %v6981_v6 = vld [vmem:[#allocation75_spill] sm:$0xff]  ;;  %v1508_v41 = vrot.slane %v1507_v60, 2  ;;  %v1541_v47 = vadd.f32 %v4713_v51, %v1540_v30  ;;  %v1549_v12 = vadd.f32 %v4735_v7, %v1548_v28  ;;  %v6987_v28 = vld [vmem:[#allocation6_spill] sm:$0xff] }
 0x200   :  { %6974 = vst [vmem:[#allocation131_spill] sm:$0xff] %v4792_v36  ;;  %v4800_v31 = vpop.eup %2571  ;;  %2597 = vpow2.f32 %v6978_v16  ;;  %6979 = vst [vmem:[#allocation132_spill] sm:$0xff] %v4803_v5  ;;  %v4815_v16 = vadd.f32 %v1492_v8, %v1491_v35  ;;  %v1501_v24 = vrot.slane %v1500_v34, 1  ;;  %v1524_v57 = vrot.slane %v1523_v13, 4  ;;  %v6985_v25 = vld [vmem:[#allocation79_spill] sm:$0xff]  ;;  %v6988_v35 = vld [vmem:[#allocation17_spill] sm:$0xff] }
 0x201   :  { %6977 = vst [vmem:[#allocation98_spill] sm:$0xff] %v4800_v31  ;;  %v4807_v10 = vpop.eup %2573  ;;  %2599 = vpow2.f32 %v6981_v6  ;;  %v1533_v49 = vrot.slane %v1532_v21, 4  ;;  %v1558_v6 = vadd.f32 %v4764_v53, %v1557_v27  ;;  %v1516_v37 = vadd.f32 %v1515_v18, %v1514_v56 }
 0x202   :  { %6980 = vst [vmem:[#allocation13_spill] sm:$0xff] %v4807_v10  ;;  %v4812_v1 = vpop.eup %2575  ;;  %2601 = vpow2.f32 %v6983_v22  ;;  %6984 = vst [vmem:[#allocation104_spill] sm:$0xff] %v4815_v16  ;;  %v1575_v30 = vadd.f32 %v4807_v10, %v4800_v31  ;;  %v1567_v8 = vadd.f32 %v4786_v33, %v1566_v15  ;;  %v4829_v22 = vmul.f32 %v6988_v35, %v4688_v29  ;;  %v6993_v31 = vld [vmem:[#allocation7_spill] sm:$0xff] }
 0x203   :  { %6982 = vst [vmem:[#allocation102_spill] sm:$0xff] %v4812_v1  ;;  %v4817_v5 = vpop.eup %2577  ;;  %2603 = vpow2.f32 %v6985_v25  ;;  %v6991_v25 = vld [vmem:[#allocation81_spill] sm:$0xff]  ;;  %v1509_v26 = vadd.f32 %v1508_v41, %v1507_v60  ;;  %v1542_v27 = vrot.slane %v1541_v47, 4  ;;  %v1550_v53 = vadd.f32 %v4742_v63, %v1549_v12  ;;  %v6996_v35 = vld [vmem:[#allocation83_spill] sm:$0xff] }
 0x204   :  { %v4823_v17 = vpop.eup %2579  ;;  %2605 = vpow2.f32 %v6987_v28  ;;  %6989 = vst [vmem:[#allocation38_spill] sm:$0xff] %v4829_v22  ;;  %v4838_v28 = vadd.f32 %v1501_v24, %v1500_v34  ;;  %v1525_v56 = vadd.f32 %v1524_v57, %v1523_v13  ;;  %v1534_v22 = vadd.f32 %v1533_v49, %v1532_v21  ;;  %v6999_v13 = vld [vmem:[#allocation18_spill] sm:$0xff] }
 0x205   :  { %6986 = vst [vmem:[#allocation36_spill] sm:$0xff] %v4823_v17  ;;  %v4831_v16 = vpop.eup %2581  ;;  %2607 = vpow2.f32 %v6991_v25  ;;  %v1559_v60 = vadd.f32 %v4768_v32, %v1558_v6  ;;  %v1576_v41 = vadd.f32 %v4812_v1, %v1575_v30  ;;  %v6998_v25 = vld [vmem:[#allocation85_spill] sm:$0xff]  ;;  %v1568_v34 = vadd.f32 %v4792_v36, %v1567_v8  ;;  %v7004_v30 = vld [vmem:[#allocation88_spill] sm:$0xff] }
 0x206   :  { %6990 = vst [vmem:[#allocation39_spill] sm:$0xff] %v4831_v16  ;;  %v4835_v10 = vpop.eup %2583  ;;  %2609 = vpow2.f32 %v6993_v31  ;;  %6994 = vst [vmem:[#allocation42_spill] sm:$0xff] %v4838_v28  ;;  %v1584_v18 = vadd.f32 %v4831_v16, %v4823_v17  ;;  %v1517_v31 = vrot.slane %v1516_v37, 2  ;;  %v4853_v24 = vmul.f32 %v6999_v13, %v4671_v46  ;;  %v7002_v28 = vld [vmem:[#allocation87_spill] sm:$0xff] }
 0x207   :  { %6992 = vst [vmem:[#allocation40_spill] sm:$0xff] %v4835_v10  ;;  %v4842_v15 = vpop.eup %2585  ;;  %2611 = vpow2.f32 %v6996_v35  ;;  %v1510_v49 = vrot.slane %v1509_v26, 1  ;;  %v1543_v21 = vadd.f32 %v1542_v27, %v1541_v47  ;;  %v1551_v6 = vrot.slane %v1550_v53, 4 }
 0x208   :  { %6995 = vst [vmem:[#allocation44_spill] sm:$0xff] %v4842_v15  ;;  %v4847_v12 = vpop.eup %2587  ;;  %2613 = vpow2.f32 %v6998_v25  ;;  %7000 = vst [vmem:[#allocation46_spill] sm:$0xff] %v4853_v24  ;;  %v1526_v16 = vrot.slane %v1525_v56, 2  ;;  %v1585_v25 = vadd.f32 %v4835_v10, %v1584_v18  ;;  %v1535_v13 = vrot.slane %v1534_v22, 2  ;;  %v7007_v24 = vld [vmem:[#allocation19_spill] sm:$0xff] }
 0x209   :  { %6997 = vst [vmem:[#allocation45_spill] sm:$0xff] %v4847_v12  ;;  %v4855_v57 = vpop.eup %2589  ;;  %2615 = vpow2.f32 %v7002_v28  ;;  %v1560_v1 = vrot.slane %v1559_v60, 4  ;;  %v1577_v28 = vadd.f32 %v4817_v5, %v1576_v41  ;;  %v1518_v27 = vadd.f32 %v1517_v31, %v1516_v37  ;;  %v7012_v37 = vld [vmem:[#allocation20_spill] sm:$0xff] }
 0x20a   :  { %7001 = vst [vmem:[#allocation48_spill] sm:$0xff] %v4855_v57  ;;  %v4858_v35 = vpop.eup %2591  ;;  %2617 = vpow2.f32 %v7004_v30  ;;  %v1593_v8 = vadd.f32 %v4855_v57, %v4847_v12  ;;  %v1569_v30 = vrot.slane %v1568_v34, 4  ;;  %v4873_v18 = vmul.f32 %v7007_v24, %v4737_v58 }
 0x20b   :  { %7003 = vst [vmem:[#allocation49_spill] sm:$0xff] %v4858_v35  ;;  %v4864_v17 = vpop.eup %2593  ;;  %2619 = vpow2.f32 %v4509_v9  ;;  %v4877_v57 = vadd.f32 %v1510_v49, %v1509_v26  ;;  %v1544_v12 = vrot.slane %v1543_v21, 2  ;;  %v1552_v9 = vadd.f32 %v1551_v6, %v1550_v53 }
 0x20c   :  { %7005 = vst [vmem:[#allocation133_spill] sm:$0xff] %v4864_v17  ;;  %v4868_v47 = vpop.eup %2595  ;;  %2621 = vpow2.f32 %v4517_v14  ;;  %7008 = vst [vmem:[#allocation51_spill] sm:$0xff] %v4873_v18  ;;  %v1594_v36 = vadd.f32 %v4858_v35, %v1593_v8  ;;  %v1527_v41 = vadd.f32 %v1526_v16, %v1525_v56  ;;  %v1586_v14 = vadd.f32 %v4842_v15, %v1585_v25  ;;  %v7015_v56 = vld [vmem:[#allocation21_spill] sm:$0xff] }
 0x20d   :  { %7006 = vst [vmem:[#allocation50_spill] sm:$0xff] %v4868_v47  ;;  %v4875_v10 = vpop.eup %2597  ;;  %7010 = vst [vmem:[#allocation134_spill] sm:$0xff] %v4877_v57  ;;  %2623 = vpow2.f32 %v4522_v40  ;;  %v4886_v31 = vmul.f32 %v7012_v37, %v4708_v11  ;;  %v1536_v18 = vadd.f32 %v1535_v13, %v1534_v22  ;;  %v1561_v26 = vadd.f32 %v1560_v1, %v1559_v60 }
 0x20e   :  { %7009 = vst [vmem:[#allocation52_spill] sm:$0xff] %v4875_v10  ;;  %v4880_v33 = vpop.eup %2599  ;;  %v1578_v49 = vrot.slane %v1577_v28, 4  ;;  %v1602_v53 = vadd.f32 %v4875_v10, %v4868_v47  ;;  %2625 = vpow2.f32 %v4535_v44  ;;  %v1519_v40 = vrot.slane %v1518_v27, 1 }
 0x20f   :  { %7011 = vst [vmem:[#allocation54_spill] sm:$0xff] %v4880_v33  ;;  %7013 = vst [vmem:[#allocation56_spill] sm:$0xff] %v4886_v31  ;;  %v4888_v24 = vpop.eup %2601  ;;  %v1570_v16 = vadd.f32 %v1569_v30, %v1568_v34  ;;  %v4897_v25 = vmul.f32 %v7015_v56, %v4688_v29  ;;  %v1545_v37 = vadd.f32 %v1544_v12, %v1543_v21  ;;  %v1553_v57 = vrot.slane %v1552_v9, 2  ;;  %v7019_v34 = vld [vmem:[#allocation22_spill] sm:$0xff] }
 0x210   :  { %v4892_v6 = vpop.eup %2603  ;;  %v1595_v1 = vadd.f32 %v4864_v17, %v1594_v36  ;;  %v1603_v22 = vadd.f32 %v4880_v33, %v1602_v53  ;;  %v1528_v13 = vrot.slane %v1527_v41, 1  ;;  %v1587_v31 = vrot.slane %v1586_v14, 4  ;;  %v7022_v36 = vld [vmem:[#allocation23_spill] sm:$0xff] }
 0x211   :  { %7014 = vst [vmem:[#allocation57_spill] sm:$0xff] %v4892_v6  ;;  %7016 = vst [vmem:[#allocation135_spill] sm:$0xff] %v4897_v25  ;;  %v4899_v8 = vpop.eup %2605  ;;  %v4909_v30 = vmul.f32 %v7019_v34, %v4671_v46  ;;  %v1537_v10 = vrot.slane %v1536_v18, 1  ;;  %v1562_v12 = vrot.slane %v1561_v26, 2  ;;  %v1579_v21 = vadd.f32 %v1578_v49, %v1577_v28 }
 0x212   :  { %7017 = vst [vmem:[#allocation58_spill] sm:$0xff] %v4899_v8  ;;  %v4903_v60 = vpop.eup %2607  ;;  %v1611_v44 = vadd.f32 %v4899_v8, %v4892_v6  ;;  %v4915_v47 = vmul.f32 %v7022_v36, %v4737_v58  ;;  %v1571_v33 = vrot.slane %v1570_v16, 2  ;;  %v1604_v17 = vadd.f32 %v4888_v24, %v1603_v22  ;;  %v7025_v6 = vld [vmem:[#allocation24_spill] sm:$0xff] }
 0x213   :  { %7018 = vst [vmem:[#allocation59_spill] sm:$0xff] %v4903_v60  ;;  %7020 = vst [vmem:[#allocation60_spill] sm:$0xff] %v4909_v30  ;;  %v4911_v56 = vpop.eup %2609  ;;  %v4923_v34 = vmul.f32 %v7025_v6, %v4708_v11  ;;  %v4927_v25 = vadd.f32 %v1519_v40, %v1518_v27  ;;  %v1546_v28 = vrot.slane %v1545_v37, 1  ;;  %v1554_v49 = vadd.f32 %v1553_v57, %v1552_v9  ;;  %v7033_v40 = vld [vmem:[#allocation25_spill] sm:$0xff] }
 0x214   :  { %7021 = vst [vmem:[#allocation5_spill] sm:$0xff] %v4911_v56  ;;  %7023 = vst [vmem:[#allocation136_spill] sm:$0xff] %v4915_v47  ;;  %v4917_v53 = vpop.eup %2611  ;;  %v1612_v8 = vadd.f32 %v4903_v60, %v1611_v44  ;;  %v1596_v35 = vrot.slane %v1595_v1, 4  ;;  %v4931_v47 = vadd.f32 %v1528_v13, %v1527_v41  ;;  %v1588_v15 = vadd.f32 %v1587_v31, %v1586_v14  ;;  %v7035_v31 = vld [vmem:[#allocation26_spill] sm:$0xff] }
 0x215   :  { %7024 = vst [vmem:[#allocation63_spill] sm:$0xff] %v4917_v53  ;;  %7026 = vst [vmem:[#allocation14_spill] sm:$0xff] %v4923_v34  ;;  %v4925_v30 = vpop.eup %2613  ;;  %v4938_v6 = vadd.f32 %v1537_v10, %v1536_v18  ;;  %v1563_v34 = vadd.f32 %v1562_v12, %v1561_v26  ;;  %v1580_v27 = vrot.slane %v1579_v21, 2  ;;  %v4942_v57 = vmul.f32 %v7033_v40, %v4688_v29  ;;  %v7038_v12 = vld [vmem:[#allocation27_spill] sm:$0xff] }
 0x216   :  { %7027 = vst [vmem:[#allocation64_spill] sm:$0xff] %v4925_v30  ;;  %7028 = vst [vmem:[#allocation65_spill] sm:$0xff] %v4927_v25  ;;  %v4929_v36 = vpop.eup %2615  ;;  %v1613_v22 = vadd.f32 %v4911_v56, %v1612_v8  ;;  %v1620_v44 = vadd.f32 %v4925_v30, %v4917_v53  ;;  %v1572_v41 = vadd.f32 %v1571_v33, %v1570_v16  ;;  %v1605_v13 = vrot.slane %v1604_v17, 4 }
 0x217   :  { %7029 = vst [vmem:[#allocation15_spill] sm:$0xff] %v4929_v36  ;;  %7030 = vst [vmem:[#allocation66_spill] sm:$0xff] %v4931_v47  ;;  %v4936_v60 = vpop.eup %2617  ;;  %v4949_v8 = vmul.f32 %v7035_v31, %v4671_v46  ;;  %v4953_v10 = vadd.f32 %v1546_v28, %v1545_v37  ;;  %v1555_v18 = vrot.slane %v1554_v49, 1  ;;  %v1597_v26 = vadd.f32 %v1596_v35, %v1595_v1  ;;  %v7040_v37 = vld [vmem:[#allocation28_spill] sm:$0xff]  ;;  %v7042_v35 = vld [vmem:[#allocation29_spill] sm:$0xff] }
 0x218   :  { %7031 = vst [vmem:[#allocation67_spill] sm:$0xff] %v4936_v60  ;;  %7032 = vst [vmem:[#allocation16_spill] sm:$0xff] %v4938_v6  ;;  %v4944_v9 = vpop.eup %2619  ;;  %v1621_v14 = vadd.f32 %v4929_v36, %v1620_v44  ;;  %v4957_v40 = vmul.f32 %v7038_v12, %v4737_v58  ;;  %v1589_v6 = vrot.slane %v1588_v15, 2  ;;  %v1614_v25 = vrot.slane %v1613_v22, 4 }
 0x219   :  { %7034 = vst [vmem:[#allocation69_spill] sm:$0xff] %v4944_v9  ;;  %v4951_v47 = vpop.eup %2621  ;;  %7037 = vst [vmem:[#allocation72_spill] sm:$0xff] %v4953_v10  ;;  %v1564_v31 = vrot.slane %v1563_v34, 1  ;;  %v1581_v36 = vadd.f32 %v1580_v27, %v1579_v21  ;;  %v4966_v28 = vmul.f32 %v7040_v37, %v4708_v11  ;;  %v4970_v1 = vmul.f32 %v7042_v35, %v4688_v29  ;;  %v7046_v27 = vld [vmem:[#allocation33_spill] sm:$0xff] }
 0x21a   :  { %7036 = vst [vmem:[#allocation71_spill] sm:$0xff] %v4951_v47  ;;  %v1622_v33 = vadd.f32 %v4936_v60, %v1621_v14  ;;  %v1629_v16 = vadd.f32 %v4951_v47, %v4944_v9  ;;  %v4962_v44 = vpop.eup %2623  ;;  %v1573_v12 = vrot.slane %v1572_v41, 1  ;;  %v1606_v10 = vadd.f32 %v1605_v13, %v1604_v17  ;;  %v7043_v14 = vld [vmem:[#allocation31_spill] sm:$0xff]  ;;  %v7047_v35 = vld [vmem:[#allocation137_spill] sm:$0xff] }
 0x21b   :  { %7039 = vst [vmem:[#allocation73_spill] sm:$0xff] %v4962_v44  ;;  %7041 = vst [vmem:[#allocation74_spill] sm:$0xff] %v4966_v28  ;;  %v4975_v60 = vmul.f32 %v7043_v14, %v4671_v46  ;;  %v4977_v47 = vpop.eup %2625  ;;  %v4979_v9 = vadd.f32 %v1555_v18, %v1554_v49  ;;  %v1598_v21 = vrot.slane %v1597_v26, 2  ;;  %v4983_v37 = vmul.f32 %v7046_v27, %v4737_v58  ;;  %v7049_v49 = vld [vmem:[#allocation8_spill] sm:$0xff] }
 0x21c   :  { %v1630_v30 = vadd.f32 %v4962_v44, %v1629_v16  ;;  %7044 = vst [vmem:[#allocation75_spill] sm:$0xff] %v4977_v47  ;;  %v4987_v28 = vmul.f32 %v7047_v35, %v4708_v11  ;;  %v1590_v17 = vadd.f32 %v1589_v6, %v1588_v15  ;;  %v1615_v13 = vadd.f32 %v1614_v25, %v1613_v22  ;;  %v7052_v15 = vld [vmem:[#allocation96_spill] sm:$0xff] }
 0x21d   :  { %7045 = vst [vmem:[#allocation77_spill] sm:$0xff] %v4979_v9  ;;  %v1623_v16 = vrot.slane %v1622_v33, 4  ;;  %v4990_v14 = vadd.f32 %v1564_v31, %v1563_v34  ;;  %v1582_v53 = vrot.slane %v1581_v36, 1  ;;  %v4994_v18 = vmul.f32 %v7049_v49, %v4688_v29  ;;  %v7050_v9 = vld [vmem:[#allocation92_spill] sm:$0xff]  ;;  %v7055_v31 = vld [vmem:[#allocation105_spill] sm:$0xff] }
 0x21e   :  { %v1631_v44 = vadd.f32 %v4977_v47, %v1630_v30  ;;  %v4998_v27 = vmul.f32 %v7050_v9, %v4671_v46  ;;  %v5000_v56 = vadd.f32 %v1573_v12, %v1572_v41  ;;  %v1607_v35 = vrot.slane %v1606_v10, 2  ;;  %v7053_v30 = vld [vmem:[#allocation99_spill] sm:$0xff]  ;;  %v7056_v9 = vld [vmem:[#allocation37_spill] sm:$0xff] }
 0x21f   :  { %7048 = vst [vmem:[#allocation79_spill] sm:$0xff] %v4990_v14  ;;  %v5004_v25 = vmul.f32 %v7052_v15, %v4737_v58  ;;  %v5008_v34 = vmul.f32 %v7053_v30, %v4708_v11  ;;  %v1599_v22 = vadd.f32 %v1598_v21, %v1597_v26  ;;  %v5012_v49 = vmul.f32 %v7055_v31, %v4688_v29  ;;  %v7059_v21 = vld [vmem:[#allocation41_spill] sm:$0xff]  ;;  %v7060_v31 = vld [vmem:[#allocation43_spill] sm:$0xff] }
 0x220   :  { %7051 = vst [vmem:[#allocation6_spill] sm:$0xff] %v5000_v56  ;;  %v1632_v6 = vrot.slane %v1631_v44, 4  ;;  %v5016_v14 = vmul.f32 %v7056_v9, %v4671_v46  ;;  %v1591_v41 = vrot.slane %v1590_v17, 1  ;;  %v1616_v12 = vrot.slane %v1615_v13, 2 }
 0x221   :  { %7054 = vst [vmem:[#allocation17_spill] sm:$0xff] %v5008_v34  ;;  %v1624_v56 = vadd.f32 %v1623_v16, %v1622_v33  ;;  %v5020_v15 = vmul.f32 %v4173_v45, %v4737_v58  ;;  %v5022_v47 = vadd.f32 %v1582_v53, %v1581_v36  ;;  %v5026_v26 = vmul.f32 %v4190_v61, %v4708_v11  ;;  %v7061_v33 = vld [vmem:[#allocation47_spill] sm:$0xff]  ;;  %v7062_v61 = vld [vmem:[#allocation53_spill] sm:$0xff] }
 0x222   :  { %v5030_v30 = vmul.f32 %v7059_v21, %v4688_v29  ;;  %v5034_v9 = vmul.f32 %v7060_v31, %v4671_v46  ;;  %v1608_v34 = vadd.f32 %v1607_v35, %v1606_v10  ;;  %v5038_v16 = vmul.f32 %v7061_v33, %v4737_v58 }
 0x223   :  { %7057 = vst [vmem:[#allocation81_spill] sm:$0xff] %v5022_v47  ;;  %7058 = vst [vmem:[#allocation7_spill] sm:$0xff] %v5026_v26  ;;  %v5042_v45 = vmul.f32 %v4262_v54, %v4708_v11  ;;  %v5046_v53 = vmul.f32 %v7062_v61, %v4688_v29  ;;  %v1600_v36 = vrot.slane %v1599_v22, 1  ;;  %v1633_v21 = vadd.f32 %v1632_v6, %v1631_v44  ;;  %v7064_v47 = vld [vmem:[#allocation55_spill] sm:$0xff]  ;;  %v7068_v61 = vld [vmem:[#allocation61_spill] sm:$0xff] }
 0x224   :  { %v5050_v26 = vmul.f32 %v7064_v47, %v4671_v46  ;;  %v5054_v10 = vmul.f32 %v4313_v20, %v4737_v58  ;;  %v5056_v35 = vadd.f32 %v1591_v41, %v1590_v17  ;;  %v1617_v31 = vadd.f32 %v1616_v12, %v1615_v13  ;;  %v7069_v44 = vld [vmem:[#allocation62_spill] sm:$0xff] }
 0x225   :  { %7063 = vst [vmem:[#allocation83_spill] sm:$0xff] %v5046_v53  ;;  %v1625_v33 = vrot.slane %v1624_v56, 2  ;;  %v5060_v54 = vmul.f32 %v4325_v43, %v4708_v11  ;;  %v5064_v53 = vmul.f32 %v7068_v61, %v4688_v29  ;;  %v5068_v47 = vmul.f32 %v7069_v44, %v4671_v46  ;;  %v7072_v43 = vld [vmem:[#allocation68_spill] sm:$0xff]  ;;  %v7073_v41 = vld [vmem:[#allocation70_spill] sm:$0xff] }
 0x226   :  { %7065 = vst [vmem:[#allocation85_spill] sm:$0xff] %v5054_v10  ;;  %7066 = vst [vmem:[#allocation18_spill] sm:$0xff] %v5056_v35  ;;  %v5072_v20 = vmul.f32 %v4366_v52, %v4737_v58  ;;  %v5076_v17 = vmul.f32 %v4376_v0, %v4708_v11  ;;  %v1609_v13 = vrot.slane %v1608_v34, 1  ;;  %v5080_v6 = vmul.f32 %v7072_v43, %v4688_v29  ;;  %v7077_v35 = vld [vmem:[#allocation76_spill] sm:$0xff] }
 0x227   :  { %7067 = vst [vmem:[#allocation87_spill] sm:$0xff] %v5060_v54  ;;  %v5084_v12 = vmul.f32 %v7073_v41, %v4671_v46  ;;  %v5088_v61 = vmul.f32 %v4414_v50, %v4737_v58  ;;  %v5090_v44 = vadd.f32 %v1600_v36, %v1599_v22  ;;  %v1634_v52 = vrot.slane %v1633_v21, 2  ;;  %v7078_v41 = vld [vmem:[#allocation78_spill] sm:$0xff]  ;;  %v7079_v50 = vld [vmem:[#allocation80_spill] sm:$0xff] }
 0x228   :  { %7070 = vst [vmem:[#allocation88_spill] sm:$0xff] %v5072_v20  ;;  %7071 = vst [vmem:[#allocation19_spill] sm:$0xff] %v5076_v17  ;;  %v5094_v0 = vmul.f32 %v4424_v38, %v4708_v11  ;;  %v5098_v17 = vmul.f32 %v7077_v35, %v4688_v29  ;;  %v1618_v43 = vrot.slane %v1617_v31, 1  ;;  %v1626_v54 = vadd.f32 %v1625_v33, %v1624_v56  ;;  %v7081_v22 = vld [vmem:[#allocation82_spill] sm:$0xff]  ;;  %v7083_v38 = vld [vmem:[#allocation84_spill] sm:$0xff] }
 0x229   :  { %7074 = vst [vmem:[#allocation20_spill] sm:$0xff] %v5088_v61  ;;  %7075 = vst [vmem:[#allocation21_spill] sm:$0xff] %v5090_v44  ;;  %v5102_v20 = vmul.f32 %v7078_v41, %v4671_v46  ;;  %v5106_v61 = vmul.f32 %v7079_v50, %v4737_v58  ;;  %v5110_v36 = vmul.f32 %v7081_v22, %v4708_v11  ;;  %v7084_v35 = vld [vmem:[#allocation140_spill] sm:$0xff]  ;;  %v7088_v22 = vld [vmem:[#allocation9_spill] sm:$0xff] }
 0x22a   :  { %7076 = vst [vmem:[#allocation22_spill] sm:$0xff] %v5094_v0  ;;  %v5114_v44 = vmul.f32 %v7083_v38, %v4688_v29  ;;  %v5118_v0 = vmul.f32 %v7084_v35, %v4671_v46  ;;  %v5122_v56 = vmul.f32 %v4503_v2, %v4737_v58  ;;  %v5124_v33 = vadd.f32 %v1609_v13, %v1608_v34  ;;  %v7091_v2 = vld [vmem:[#allocation91_spill] sm:$0xff] }
 0x22b   :  { %7080 = vst [vmem:[#allocation23_spill] sm:$0xff] %v5106_v61  ;;  %7082 = vst [vmem:[#allocation24_spill] sm:$0xff] %v5110_v36  ;;  %v5128_v41 = vmul.f32 %v4511_v3, %v4708_v11  ;;  %v5132_v50 = vmul.f32 %v4524_v4, %v4688_v29  ;;  %v5136_v38 = vmul.f32 %v7088_v22, %v4671_v46  ;;  %v7089_v36 = vld [vmem:[#allocation89_spill] sm:$0xff]  ;;  %v7093_v3 = vld [vmem:[#allocation10_spill] sm:$0xff]  ;;  %v1627_v4 = vrot.slane %v1626_v54, 1 }
 0x22c   :  { %7085 = vst [vmem:[#allocation25_spill] sm:$0xff] %v5122_v56  ;;  %7086 = vst [vmem:[#allocation26_spill] sm:$0xff] %v5124_v33  ;;  %v1635_v35 = vadd.f32 %v1634_v52, %v1633_v21  ;;  %v5140_v61 = vmul.f32 %v7089_v36, %v4737_v58  ;;  %v5144_v34 = vmul.f32 %v7091_v2, %v4708_v11  ;;  %v7096_v21 = vld [vmem:[#allocation95_spill] sm:$0xff]  ;;  %v7098_v36 = vld [vmem:[#allocation97_spill] sm:$0xff] }
 0x22d   :  { %7087 = vst [vmem:[#allocation27_spill] sm:$0xff] %v5128_v41  ;;  %v5148_v13 = vmul.f32 %v7093_v3, %v4688_v29  ;;  %v5150_v33 = vadd.f32 %v1618_v43, %v1617_v31  ;;  %v7095_v41 = vld [vmem:[#allocation94_spill] sm:$0xff]  ;;  %v5158_v52 = vmul.f32 %v7096_v21, %v4737_v58  ;;  %v7100_v2 = vld [vmem:[#allocation100_spill] sm:$0xff]  ;;  %v7101_v31 = vld [vmem:[#allocation101_spill] sm:$0xff] }
 0x22e   :  { %7090 = vst [vmem:[#allocation28_spill] sm:$0xff] %v5140_v61  ;;  %7092 = vst [vmem:[#allocation29_spill] sm:$0xff] %v5144_v34  ;;  %v5154_v22 = vmul.f32 %v7095_v41, %v4671_v46  ;;  %v5162_v61 = vmul.f32 %v7098_v36, %v4708_v11  ;;  %v5166_v34 = vmul.f32 %v7100_v2, %v4688_v29  ;;  %v7103_v3 = vld [vmem:[#allocation103_spill] sm:$0xff]  ;;  %v7110_v56 = vld [vmem:[#allocation32_spill] sm:$0xff]  ;;  %v1636_v10 = vrot.slane %v1635_v35, 1 }
 0x22f   :  { %7094 = vst [vmem:[#allocation31_spill] sm:$0xff] %v5150_v33  ;;  %7097 = vst [vmem:[#allocation33_spill] sm:$0xff] %v5158_v52  ;;  %v5170_v43 = vmul.f32 %v7101_v31, %v4671_v46  ;;  %v5174_v41 = vmul.f32 %v7103_v3, %v4737_v58  ;;  %v7105_v33 = vld [vmem:[#allocation30_spill] sm:$0xff]  ;;  %v5190_v31 = vmul.f32 %v7110_v56, %v4737_v58  ;;  %v7112_v3 = vld [vmem:[#allocation141_spill] sm:$0xff] }
 0x230   :  { %7099 = vst [vmem:[#allocation137_spill] sm:$0xff] %v5162_v61  ;;  %v5178_v21 = vmul.f32 %v7105_v33, %v4708_v11  ;;  %v7107_v52 = vld [vmem:[#allocation106_spill] sm:$0xff]  ;;  %v7109_v61 = vld [vmem:[#allocation108_spill] sm:$0xff]  ;;  %v5212_v56 = vmul.f32 %v4633_v19, %v4708_v11 }
 0x231   :  { %7102 = vst [vmem:[#allocation8_spill] sm:$0xff] %v5170_v43  ;;  %7104 = vst [vmem:[#allocation92_spill] sm:$0xff] %v5174_v41  ;;  %v5182_v36 = vmul.f32 %v7107_v52, %v4688_v29  ;;  %v5186_v2 = vmul.f32 %v7109_v61, %v4671_v46  ;;  %v5194_v41 = vmul.f32 %v7112_v3, %v4708_v11  ;;  %v7114_v33 = vld [vmem:[#allocation110_spill] sm:$0xff]  ;;  %v7115_v52 = vld [vmem:[#allocation111_spill] sm:$0xff] }
 0x232   :  { %7106 = vst [vmem:[#allocation96_spill] sm:$0xff] %v5178_v21  ;;  %7111 = vst [vmem:[#allocation105_spill] sm:$0xff] %v5190_v31  ;;  %v5198_v21 = vmul.f32 %v7114_v33, %v4688_v29  ;;  %v5204_v43 = vadd.f32 %v1627_v4, %v1626_v54  ;;  %v5208_v61 = vmul.f32 %v4627_v59, %v4737_v58  ;;  %v7119_v33 = vld [vmem:[#allocation142_spill] sm:$0xff]  ;;  %v7122_v4 = vld [vmem:[#allocation35_spill] sm:$0xff] }
 0x233   :  { %7108 = vst [vmem:[#allocation99_spill] sm:$0xff] %v5182_v36  ;;  %7113 = vst [vmem:[#allocation37_spill] sm:$0xff] %v5194_v41  ;;  %v5202_v36 = vmul.f32 %v7115_v52, %v4671_v46  ;;  %v5216_v3 = vmul.f32 %v4637_v39, %v4688_v29  ;;  %v5220_v41 = vmul.f32 %v7119_v33, %v4671_v46  ;;  %v7120_v52 = vld [vmem:[#allocation114_spill] sm:$0xff] }
 0x234   :  { %7116 = vst [vmem:[#allocation41_spill] sm:$0xff] %v5204_v43  ;;  %7117 = vst [vmem:[#allocation43_spill] sm:$0xff] %v5208_v61  ;;  %v5224_v54 = vmul.f32 %v7120_v52, %v4737_v58  ;;  %v5228_v59 = vmul.f32 %v7122_v4, %v4708_v11  ;;  %v7124_v43 = vld [vmem:[#allocation115_spill] sm:$0xff]  ;;  %v5244_v52 = vmul.f32 %v4675_v48, %v4708_v11  ;;  %v7136_v48 = vld [vmem:[#allocation120_spill] sm:$0xff] }
 0x235   :  { %7118 = vst [vmem:[#allocation47_spill] sm:$0xff] %v5212_v56  ;;  %v5232_v19 = vmul.f32 %v7124_v43, %v4688_v29  ;;  %v7125_v56 = vld [vmem:[#allocation116_spill] sm:$0xff]  ;;  %v7127_v61 = vld [vmem:[#allocation143_spill] sm:$0xff] }
 0x236   :  { %7121 = vst [vmem:[#allocation53_spill] sm:$0xff] %v5224_v54  ;;  %7123 = vst [vmem:[#allocation55_spill] sm:$0xff] %v5228_v59  ;;  %v5236_v39 = vmul.f32 %v7125_v56, %v4671_v46  ;;  %v5240_v33 = vmul.f32 %v7127_v61, %v4737_v58  ;;  %v7130_v54 = vld [vmem:[#allocation118_spill] sm:$0xff]  ;;  %v5250_v59 = vadd.f32 %v1636_v10, %v1635_v35  ;;  %v7132_v43 = vld [vmem:[#allocation119_spill] sm:$0xff] }
 0x237   :  { %7129 = vst [vmem:[#allocation68_spill] sm:$0xff] %v5244_v52  ;;  %v5248_v4 = vmul.f32 %v7130_v54, %v4688_v29  ;;  %v5254_v31 = vmul.f32 %v7132_v43, %v4671_v46  ;;  %v7133_v56 = vld [vmem:[#allocation138_spill] sm:$0xff]  ;;  %v5262_v61 = vmul.f32 %v4692_v42, %v4708_v11  ;;  %v5266_v52 = vmul.f32 %v7136_v48, %v4688_v29  ;;  %v7137_v54 = vld [vmem:[#allocation121_spill] sm:$0xff] }
 0x238   :  { %7126 = vst [vmem:[#allocation61_spill] sm:$0xff] %v5236_v39  ;;  %7128 = vst [vmem:[#allocation62_spill] sm:$0xff] %v5240_v33  ;;  %v5258_v39 = vmul.f32 %v7133_v56, %v4737_v58  ;;  %v5270_v10 = vmul.f32 %v7137_v54, %v4671_v46  ;;  %v5274_v35 = vmul.f32 %v4706_v55, %v4737_v58  ;;  %v7140_v56 = vld [vmem:[#allocation124_spill] sm:$0xff]  ;;  %v7163_v33 = vld [vmem:[#allocation46_spill] sm:$0xff] }
 0x239   :  { %7131 = vst [vmem:[#allocation70_spill] sm:$0xff] %v5250_v59  ;;  %7135 = vst [vmem:[#allocation78_spill] sm:$0xff] %v5262_v61  ;;  %v5278_v43 = vmul.f32 %v4713_v51, %v4708_v11  ;;  %v5282_v42 = vmul.f32 %v4720_v23, %v4688_v29  ;;  %v5286_v48 = vmul.f32 %v7140_v56, %v4671_v46  ;;  %v7143_v59 = vld [vmem:[#allocation126_spill] sm:$0xff]  ;;  %v7148_v61 = vld [vmem:[#allocation129_spill] sm:$0xff] }
 0x23a   :  { %7134 = vst [vmem:[#allocation76_spill] sm:$0xff] %v5258_v39  ;;  %7138 = vst [vmem:[#allocation80_spill] sm:$0xff] %v5274_v35  ;;  %v5290_v54 = vmul.f32 %v4735_v7, %v4737_v58  ;;  %v5294_v55 = vmul.f32 %v4742_v63, %v4708_v11  ;;  %v5298_v51 = vmul.f32 %v4751_v62, %v4688_v29  ;;  %v7154_v35 = vld [vmem:[#allocation131_spill] sm:$0xff]  ;;  %v7161_v39 = vld [vmem:[#allocation90_spill] sm:$0xff] }
 0x23b   :  { %7139 = vst [vmem:[#allocation82_spill] sm:$0xff] %v5278_v43  ;;  %v5302_v23 = vmul.f32 %v7143_v59, %v4671_v46  ;;  %v7145_v43 = vld [vmem:[#allocation127_spill] sm:$0xff]  ;;  %v5310_v7 = vmul.f32 %v4768_v32, %v4708_v11  ;;  %v5314_v63 = vmul.f32 %v7148_v61, %v4688_v29 }
 0x23c   :  { %7141 = vst [vmem:[#allocation84_spill] sm:$0xff] %v5290_v54  ;;  %7142 = vst [vmem:[#allocation140_spill] sm:$0xff] %v5294_v55  ;;  %v5306_v56 = vmul.f32 %v7145_v43, %v4737_v58  ;;  %v7150_v55 = vld [vmem:[#allocation146_spill] sm:$0xff]  ;;  %v7152_v54 = vld [vmem:[#allocation11_spill] sm:$0xff]  ;;  %v5326_v43 = vmul.f32 %v7154_v35, %v4708_v11  ;;  %v5346_v35 = vmul.f32 %v4817_v5, %v4708_v11 }
 0x23d   :  { %7144 = vst [vmem:[#allocation9_spill] sm:$0xff] %v5302_v23  ;;  %7147 = vst [vmem:[#allocation91_spill] sm:$0xff] %v5310_v7  ;;  %v5318_v62 = vmul.f32 %v7150_v55, %v4671_v46  ;;  %v5322_v59 = vmul.f32 %v7152_v54, %v4737_v58  ;;  %v7158_v7 = vld [vmem:[#allocation13_spill] sm:$0xff]  ;;  %v7164_v54 = vld [vmem:[#allocation102_spill] sm:$0xff] }
 0x23e   :  { %7146 = vst [vmem:[#allocation89_spill] sm:$0xff] %v5306_v56  ;;  %7149 = vst [vmem:[#allocation10_spill] sm:$0xff] %v5314_v63  ;;  %v7156_v56 = vld [vmem:[#allocation98_spill] sm:$0xff]  ;;  %v5334_v61 = vmul.f32 %v7158_v7, %v4671_v46  ;;  %v7160_v63 = vld [vmem:[#allocation145_spill] sm:$0xff] }
 0x23f   :  { %7151 = vst [vmem:[#allocation94_spill] sm:$0xff] %v5318_v62  ;;  %7153 = vst [vmem:[#allocation95_spill] sm:$0xff] %v5322_v59  ;;  %v5330_v32 = vmul.f32 %v7156_v56, %v4688_v29  ;;  %v1766_v55 = vadd.f32 %v7161_v39, %v7160_v63  ;;  %v7162_v62 = vld [vmem:[#allocation38_spill] sm:$0xff]  ;;  %v5342_v59 = vmul.f32 %v7164_v54, %v4737_v58  ;;  %v7167_v56 = vld [vmem:[#allocation36_spill] sm:$0xff] }
 0x240   :  { %7155 = vst [vmem:[#allocation97_spill] sm:$0xff] %v5326_v43  ;;  %7159 = vst [vmem:[#allocation101_spill] sm:$0xff] %v5334_v61  ;;  %v1775_v23 = vadd.f32 %v7163_v33, %v7162_v62  ;;  %v5350_v43 = vmul.f32 %v7167_v56, %v4688_v29  ;;  %v7169_v7 = vld [vmem:[#allocation39_spill] sm:$0xff]  ;;  %v7171_v39 = vld [vmem:[#allocation40_spill] sm:$0xff] }
 0x241   :  { %7157 = vst [vmem:[#allocation100_spill] sm:$0xff] %v5330_v32  ;;  %7165 = vst [vmem:[#allocation103_spill] sm:$0xff] %v5342_v59  ;;  %v5354_v61 = vmul.f32 %v7169_v7, %v4671_v46  ;;  %v5358_v63 = vmul.f32 %v7171_v39, %v4737_v58  ;;  %v7173_v33 = vld [vmem:[#allocation44_spill] sm:$0xff]  ;;  %v7175_v54 = vld [vmem:[#allocation45_spill] sm:$0xff] }
 0x242   :  { %7166 = vst [vmem:[#allocation30_spill] sm:$0xff] %v5346_v35  ;;  %7168 = vst [vmem:[#allocation106_spill] sm:$0xff] %v5350_v43  ;;  %v5362_v62 = vmul.f32 %v7173_v33, %v4708_v11  ;;  %v5366_v5 = vmul.f32 %v7175_v54, %v4688_v29  ;;  %v7177_v35 = vld [vmem:[#allocation48_spill] sm:$0xff]  ;;  %v7179_v59 = vld [vmem:[#allocation49_spill] sm:$0xff]  ;;  %v1802_v33 = vadd.f32 %v4975_v60, %v4970_v1 }
 0x243   :  { %7170 = vst [vmem:[#allocation108_spill] sm:$0xff] %v5354_v61  ;;  %7172 = vst [vmem:[#allocation32_spill] sm:$0xff] %v5358_v63  ;;  %v5370_v56 = vmul.f32 %v7177_v35, %v4671_v46  ;;  %v5374_v7 = vmul.f32 %v7179_v59, %v4737_v58  ;;  %v7181_v61 = vld [vmem:[#allocation135_spill] sm:$0xff]  ;;  %v7182_v43 = vld [vmem:[#allocation60_spill] sm:$0xff]  ;;  %v1793_v63 = vadd.f32 %v4949_v8, %v4942_v57 }
 0x244   :  { %7174 = vst [vmem:[#allocation141_spill] sm:$0xff] %v5362_v62  ;;  %7176 = vst [vmem:[#allocation110_spill] sm:$0xff] %v5366_v5  ;;  %v1784_v39 = vadd.f32 %v7182_v43, %v7181_v61  ;;  %v7183_v54 = vld [vmem:[#allocation133_spill] sm:$0xff]  ;;  %v1811_v59 = vadd.f32 %v4998_v27, %v4994_v18  ;;  %v7188_v57 = vld [vmem:[#allocation52_spill] sm:$0xff]  ;;  %v1820_v60 = vadd.f32 %v5016_v14, %v5012_v49 }
 0x245   :  { %7178 = vst [vmem:[#allocation111_spill] sm:$0xff] %v5370_v56  ;;  %7180 = vst [vmem:[#allocation142_spill] sm:$0xff] %v5374_v7  ;;  %v5384_v62 = vmul.f32 %v7183_v54, %v4708_v11  ;;  %v7185_v5 = vld [vmem:[#allocation93_spill] sm:$0xff]  ;;  %v7186_v56 = vld [vmem:[#allocation51_spill] sm:$0xff]  ;;  %v5396_v8 = vmul.f32 %v7188_v57, %v4671_v46  ;;  %v1829_v1 = vadd.f32 %v5034_v9, %v5030_v30 }
 0x246   :  { %v1767_v35 = vadd.f32 %v1766_v55, %v7185_v5  ;;  %v1776_v32 = vadd.f32 %v1775_v23, %v7186_v56  ;;  %v7187_v7 = vld [vmem:[#allocation50_spill] sm:$0xff]  ;;  %v5408_v18 = vmul.f32 %v4888_v24, %v4708_v11  ;;  %v7192_v27 = vld [vmem:[#allocation57_spill] sm:$0xff]  ;;  %v7195_v14 = vld [vmem:[#allocation59_spill] sm:$0xff]  ;;  %v1803_v54 = vadd.f32 %v1802_v33, %v4983_v37 }
 0x247   :  { %7184 = vst [vmem:[#allocation114_spill] sm:$0xff] %v5384_v62  ;;  %v5392_v43 = vmul.f32 %v7187_v7, %v4688_v29  ;;  %v7189_v61 = vld [vmem:[#allocation54_spill] sm:$0xff]  ;;  %v5412_v55 = vmul.f32 %v7192_v27, %v4688_v29  ;;  %v5420_v49 = vmul.f32 %v7195_v14, %v4737_v58  ;;  %v7197_v30 = vld [vmem:[#allocation136_spill] sm:$0xff]  ;;  %v1794_v7 = vadd.f32 %v1793_v63, %v4957_v40  ;;  %v7198_v24 = vld [vmem:[#allocation5_spill] sm:$0xff] }
 0x248   :  { %v5404_v23 = vmul.f32 %v7189_v61, %v4737_v58  ;;  %7191 = vst [vmem:[#allocation115_spill] sm:$0xff] %v5408_v18  ;;  %v7193_v5 = vld [vmem:[#allocation58_spill] sm:$0xff]  ;;  %v1785_v9 = vadd.f32 %v1784_v39, %v7197_v30  ;;  %v5427_v57 = vmul.f32 %v7198_v24, %v4708_v11  ;;  %v7200_v61 = vld [vmem:[#allocation128_spill] sm:$0xff]  ;;  %v1821_v40 = vadd.f32 %v1820_v60, %v5020_v15  ;;  %v7206_v63 = vld [vmem:[#allocation15_spill] sm:$0xff] }
 0x249   :  { %v5416_v56 = vmul.f32 %v7193_v5, %v4671_v46  ;;  %7196 = vst [vmem:[#allocation143_spill] sm:$0xff] %v5420_v49  ;;  %v1768_v27 = vadd.f32 %v1767_v35, %v7200_v61  ;;  %v7201_v18 = vld [vmem:[#allocation56_spill] sm:$0xff]  ;;  %v1812_v5 = vadd.f32 %v1811_v59, %v5004_v25  ;;  %v1830_v37 = vadd.f32 %v1829_v1, %v5038_v16  ;;  %v7210_v25 = vld [vmem:[#allocation69_spill] sm:$0xff]  ;;  %v7216_v16 = vld [vmem:[#allocation14_spill] sm:$0xff] }
 0x24a   :  { %7190 = vst [vmem:[#allocation35_spill] sm:$0xff] %v5404_v23  ;;  %7199 = vst [vmem:[#allocation118_spill] sm:$0xff] %v5427_v57  ;;  %v1777_v62 = vadd.f32 %v1776_v32, %v7201_v18  ;;  %v7202_v23 = vld [vmem:[#allocation63_spill] sm:$0xff]  ;;  %v7204_v39 = vld [vmem:[#allocation64_spill] sm:$0xff]  ;;  %v5444_v33 = vmul.f32 %v7206_v63, %v4737_v58  ;;  %v5452_v59 = vmul.f32 %v7210_v25, %v4688_v29 }
 0x24b   :  { %7194 = vst [vmem:[#allocation116_spill] sm:$0xff] %v5416_v56  ;;  %v5434_v14 = vmul.f32 %v7202_v23, %v4688_v29  ;;  %v5438_v30 = vmul.f32 %v7204_v39, %v4671_v46  ;;  %v7208_v32 = vld [vmem:[#allocation67_spill] sm:$0xff]  ;;  %v7214_v15 = vld [vmem:[#allocation73_spill] sm:$0xff]  ;;  %v1786_v1 = vadd.f32 %v1785_v9, %v7216_v16  ;;  %v7217_v24 = vld [vmem:[#allocation74_spill] sm:$0xff]  ;;  %v1804_v39 = vadd.f32 %v1803_v54, %v4987_v28 }
 0x24c   :  { %7207 = vst [vmem:[#allocation120_spill] sm:$0xff] %v5444_v33  ;;  %v5448_v35 = vmul.f32 %v7208_v32, %v4708_v11  ;;  %7211 = vst [vmem:[#allocation124_spill] sm:$0xff] %v5452_v59  ;;  %v7212_v23 = vld [vmem:[#allocation71_spill] sm:$0xff]  ;;  %v5460_v60 = vmul.f32 %v7214_v15, %v4737_v58  ;;  %v1795_v61 = vadd.f32 %v1794_v7, %v7217_v24  ;;  %v1769_v29 = vrot.slane %v1768_v27, 4  ;;  %v7226_v24 = vld [vmem:[#allocation20_spill] sm:$0xff] }
 0x24d   :  { %7203 = vst [vmem:[#allocation119_spill] sm:$0xff] %v5434_v14  ;;  %7205 = vst [vmem:[#allocation138_spill] sm:$0xff] %v5438_v30  ;;  %v5456_v18 = vmul.f32 %v7212_v23, %v4671_v46  ;;  %v7218_v63 = vld [vmem:[#allocation75_spill] sm:$0xff]  ;;  %v1778_v25 = vrot.slane %v1777_v62, 4  ;;  %v1831_v33 = vadd.f32 %v1830_v37, %v5042_v45  ;;  %v1847_v9 = vadd.f32 %v5068_v47, %v5064_v53  ;;  %v7231_v49 = vld [vmem:[#allocation92_spill] sm:$0xff] }
 0x24e   :  { %7209 = vst [vmem:[#allocation121_spill] sm:$0xff] %v5448_v35  ;;  %7215 = vst [vmem:[#allocation127_spill] sm:$0xff] %v5460_v60  ;;  %v5467_v32 = vmul.f32 %v7218_v63, %v4708_v11  ;;  %v7220_v35 = vld [vmem:[#allocation17_spill] sm:$0xff]  ;;  %v7221_v46 = vld [vmem:[#allocation7_spill] sm:$0xff]  ;;  %v1856_v28 = vadd.f32 %v5084_v12, %v5080_v6  ;;  %v1865_v11 = vadd.f32 %v5102_v20, %v5098_v17  ;;  %v1796_v45 = vrot.slane %v1795_v61, 4 }
 0x24f   :  { %7213 = vst [vmem:[#allocation126_spill] sm:$0xff] %v5456_v18  ;;  %v1813_v57 = vadd.f32 %v1812_v5, %v7220_v35  ;;  %v1822_v23 = vadd.f32 %v1821_v40, %v7221_v46  ;;  %v7222_v58 = vld [vmem:[#allocation83_spill] sm:$0xff]  ;;  %v1874_v7 = vadd.f32 %v5118_v0, %v5114_v44  ;;  %v1883_v54 = vadd.f32 %v5136_v38, %v5132_v50  ;;  %v7223_v6 = vld [vmem:[#allocation8_spill] sm:$0xff]  ;;  %v7224_v17 = vld [vmem:[#allocation85_spill] sm:$0xff] }
 0x250   :  { %7219 = vst [vmem:[#allocation129_spill] sm:$0xff] %v5467_v32  ;;  %v1838_v15 = vadd.f32 %v5050_v26, %v7222_v58  ;;  %v1787_v5 = vrot.slane %v1786_v1, 4  ;;  %v1805_v40 = vrot.slane %v1804_v39, 4  ;;  %v1892_v26 = vadd.f32 %v5154_v22, %v5148_v13  ;;  %v7225_v44 = vld [vmem:[#allocation88_spill] sm:$0xff]  ;;  %v7227_v38 = vld [vmem:[#allocation23_spill] sm:$0xff]  ;;  %v7228_v46 = vld [vmem:[#allocation25_spill] sm:$0xff] }
 0x251   :  { %v1770_v37 = vadd.f32 %v1769_v29, %v1768_v27  ;;  %v1779_v53 = vadd.f32 %v1778_v25, %v1777_v62  ;;  %v1814_v47 = vrot.slane %v1813_v57, 4  ;;  %v1901_v12 = vadd.f32 %v7223_v6, %v5166_v34  ;;  %v7229_v32 = vld [vmem:[#allocation28_spill] sm:$0xff]  ;;  %v7230_v29 = vld [vmem:[#allocation33_spill] sm:$0xff] }
 0x252   :  { %v1823_v35 = vrot.slane %v1822_v23, 4  ;;  %v1832_v20 = vrot.slane %v1831_v33, 4  ;;  %v1839_v16 = vadd.f32 %v1838_v15, %v7224_v17  ;;  %v1848_v0 = vadd.f32 %v1847_v9, %v7225_v44  ;;  %v7232_v44 = vld [vmem:[#allocation87_spill] sm:$0xff] }
 0x253   :  { %v1857_v50 = vadd.f32 %v1856_v28, %v7226_v24  ;;  %v1866_v63 = vadd.f32 %v1865_v11, %v7227_v38  ;;  %v1875_v58 = vadd.f32 %v1874_v7, %v7228_v46  ;;  %v1884_v13 = vadd.f32 %v1883_v54, %v7229_v32  ;;  %v7233_v24 = vld [vmem:[#allocation19_spill] sm:$0xff]  ;;  %v7234_v38 = vld [vmem:[#allocation22_spill] sm:$0xff]  ;;  %v7235_v46 = vld [vmem:[#allocation24_spill] sm:$0xff] }
 0x254   :  { %v1788_v22 = vadd.f32 %v1787_v5, %v1786_v1  ;;  %v1797_v62 = vadd.f32 %v1796_v45, %v1795_v61  ;;  %v1806_v27 = vadd.f32 %v1805_v40, %v1804_v39  ;;  %v1893_v25 = vadd.f32 %v1892_v26, %v7230_v29  ;;  %v7236_v1 = vld [vmem:[#allocation27_spill] sm:$0xff]  ;;  %v7237_v39 = vld [vmem:[#allocation29_spill] sm:$0xff] }
 0x255   :  { %v1771_v34 = vrot.slane %v1770_v37, 2  ;;  %v1780_v6 = vrot.slane %v1779_v53, 2  ;;  %v1815_v60 = vadd.f32 %v1814_v47, %v1813_v57  ;;  %v1902_v15 = vadd.f32 %v1901_v12, %v7231_v49  ;;  %v7238_v57 = vld [vmem:[#allocation137_spill] sm:$0xff]  ;;  %v7239_v47 = vld [vmem:[#allocation96_spill] sm:$0xff] }
 0x256   :  { %v1824_v17 = vadd.f32 %v1823_v35, %v1822_v23  ;;  %v1833_v9 = vadd.f32 %v1832_v20, %v1831_v33  ;;  %v1840_v28 = vadd.f32 %v1839_v16, %v7232_v44  ;;  %v1849_v11 = vadd.f32 %v1848_v0, %v7233_v24 }
 0x257   :  { %v1858_v7 = vadd.f32 %v1857_v50, %v7234_v38  ;;  %v1867_v32 = vadd.f32 %v1866_v63, %v7235_v46  ;;  %v1876_v61 = vadd.f32 %v1875_v58, %v7236_v1  ;;  %v1885_v54 = vadd.f32 %v1884_v13, %v7237_v39 }
 0x258   :  { %v1789_v5 = vrot.slane %v1788_v22, 2  ;;  %v1798_v45 = vrot.slane %v1797_v62, 2  ;;  %v1807_v40 = vrot.slane %v1806_v27, 2  ;;  %v1894_v26 = vadd.f32 %v1893_v25, %v7238_v57 }
 0x259   :  { %v1772_v49 = vadd.f32 %v1771_v34, %v1770_v37  ;;  %v1781_v23 = vadd.f32 %v1780_v6, %v1779_v53  ;;  %v1816_v33 = vrot.slane %v1815_v60, 2  ;;  %v1903_v12 = vadd.f32 %v1902_v15, %v7239_v47 }
 0x25a   :  { %v1825_v35 = vrot.slane %v1824_v17, 2  ;;  %v1834_v20 = vrot.slane %v1833_v9, 2  ;;  %v1841_v16 = vrot.slane %v1840_v28, 4  ;;  %v1850_v0 = vrot.slane %v1849_v11, 4 }
 0x25b   :  { %v1859_v50 = vrot.slane %v1858_v7, 4  ;;  %v1868_v63 = vrot.slane %v1867_v32, 4  ;;  %v1877_v29 = vrot.slane %v1876_v61, 4  ;;  %v1886_v58 = vrot.slane %v1885_v54, 4 }
 0x25c   :  { %v1790_v44 = vadd.f32 %v1789_v5, %v1788_v22  ;;  %v1799_v13 = vadd.f32 %v1798_v45, %v1797_v62  ;;  %v1808_v24 = vadd.f32 %v1807_v40, %v1806_v27  ;;  %v1895_v38 = vrot.slane %v1894_v26, 4 }
 0x25d   :  { %v1773_v46 = vrot.slane %v1772_v49, 1  ;;  %v1782_v1 = vrot.slane %v1781_v23, 1  ;;  %v1817_v25 = vadd.f32 %v1816_v33, %v1815_v60  ;;  %v1904_v37 = vrot.slane %v1903_v12, 4  ;;  %v7240_v33 = vld [vmem:[#allocation99_spill] sm:$0xff] }
 0x25e   :  { %v1826_v53 = vadd.f32 %v1825_v35, %v1824_v17  ;;  %v1835_v34 = vadd.f32 %v1834_v20, %v1833_v9  ;;  %v1842_v6 = vadd.f32 %v1841_v16, %v1840_v28  ;;  %v1851_v15 = vadd.f32 %v1850_v0, %v1849_v11 }
 0x25f   :  { %v1860_v39 = vadd.f32 %v1859_v50, %v1858_v7  ;;  %v1869_v57 = vadd.f32 %v1868_v63, %v1867_v32  ;;  %v1878_v47 = vadd.f32 %v1877_v29, %v1876_v61  ;;  %v1887_v18 = vadd.f32 %v1886_v58, %v1885_v54 }
 0x260   :  { %v1791_v59 = vrot.slane %v1790_v44, 1  ;;  %v1800_v30 = vrot.slane %v1799_v13, 1  ;;  %v1809_v14 = vrot.slane %v1808_v24, 1  ;;  %v1896_v56 = vadd.f32 %v1895_v38, %v1894_v26  ;;  %v7243_v38 = vld [vmem:[#allocation43_spill] sm:$0xff] }
 0x261   :  { %v5504_v22 = vadd.f32 %v1773_v46, %v1772_v49  ;;  %v5506_v62 = vadd.f32 %v1782_v1, %v1781_v23  ;;  %v1818_v27 = vrot.slane %v1817_v25, 1  ;;  %v1905_v5 = vadd.f32 %v1904_v37, %v1903_v12 }
 0x262   :  { %v1827_v60 = vrot.slane %v1826_v53, 1  ;;  %v1836_v45 = vrot.slane %v1835_v34, 1  ;;  %v1843_v17 = vrot.slane %v1842_v6, 2  ;;  %v1852_v9 = vrot.slane %v1851_v15, 2 }
 0x263   :  { %v1861_v28 = vrot.slane %v1860_v39, 2  ;;  %v1870_v11 = vrot.slane %v1869_v57, 2  ;;  %v1879_v7 = vrot.slane %v1878_v47, 2  ;;  %v1888_v32 = vrot.slane %v1887_v18, 2 }
 0x264   :  { %v5508_v61 = vadd.f32 %v1791_v59, %v1790_v44  ;;  %v5510_v54 = vadd.f32 %v1800_v30, %v1799_v13  ;;  %v5512_v40 = vadd.f32 %v1809_v14, %v1808_v24  ;;  %v1897_v26 = vrot.slane %v1896_v56, 2  ;;  %v7241_v44 = vld [vmem:[#allocation61_spill] sm:$0xff] }
 0x265   :  { %v5514_v49 = vadd.f32 %v1818_v27, %v1817_v25  ;;  %v1906_v23 = vrot.slane %v1905_v5, 2  ;;  %v1910_v12 = vadd.f32 %v5186_v2, %v7240_v33  ;;  %v1919_v35 = vadd.f32 %v5202_v36, %v5198_v21  ;;  %v7242_v13 = vld [vmem:[#allocation105_spill] sm:$0xff] }
 0x266   :  { %v5520_v20 = vadd.f32 %v1827_v60, %v1826_v53  ;;  %v5522_v16 = vadd.f32 %v1836_v45, %v1835_v34  ;;  %v1844_v59 = vadd.f32 %v1843_v17, %v1842_v6  ;;  %v1853_v0 = vadd.f32 %v1852_v9, %v1851_v15  ;;  %v7245_v34 = vld [vmem:[#allocation53_spill] sm:$0xff]  ;;  %v7246_v15 = vld [vmem:[#allocation62_spill] sm:$0xff]  ;;  %v7251_v17 = vld [vmem:[#allocation84_spill] sm:$0xff] }
 0x267   :  { %v1862_v30 = vadd.f32 %v1861_v28, %v1860_v39  ;;  %v1871_v50 = vadd.f32 %v1870_v11, %v1869_v57  ;;  %v1880_v14 = vadd.f32 %v1879_v7, %v1878_v47  ;;  %v1889_v63 = vadd.f32 %v1888_v32, %v1887_v18  ;;  %v7247_v57 = vld [vmem:[#allocation76_spill] sm:$0xff]  ;;  %v7252_v28 = vld [vmem:[#allocation89_spill] sm:$0xff] }
 0x268   :  { %v1898_v29 = vadd.f32 %v1897_v26, %v1896_v56  ;;  %v1928_v58 = vadd.f32 %v5220_v41, %v5216_v3  ;;  %v1937_v2 = vadd.f32 %v7241_v44, %v5232_v19  ;;  %v1946_v21 = vadd.f32 %v5254_v31, %v5248_v4  ;;  %v7244_v41 = vld [vmem:[#allocation9_spill] sm:$0xff] }
 0x269   :  { %v1907_v36 = vadd.f32 %v1906_v23, %v1905_v5  ;;  %v1911_v24 = vadd.f32 %v1910_v12, %v7242_v13  ;;  %v1920_v46 = vadd.f32 %v1919_v35, %v7243_v38  ;;  %v1955_v1 = vadd.f32 %v5270_v10, %v5266_v52  ;;  %v7248_v10 = vld [vmem:[#allocation37_spill] sm:$0xff]  ;;  %v7249_v5 = vld [vmem:[#allocation47_spill] sm:$0xff] }
 0x26a   :  { %v1845_v25 = vrot.slane %v1844_v59, 1  ;;  %v1854_v18 = vrot.slane %v1853_v0, 1  ;;  %v1964_v56 = vadd.f32 %v5286_v48, %v5282_v42  ;;  %v1973_v3 = vadd.f32 %v7244_v41, %v5298_v51  ;;  %v7250_v42 = vld [vmem:[#allocation80_spill] sm:$0xff]  ;;  %v7254_v12 = vld [vmem:[#allocation55_spill] sm:$0xff]  ;;  %v7265_v41 = vld [vmem:[#allocation106_spill] sm:$0xff] }
 0x26b   :  { %v1863_v19 = vrot.slane %v1862_v30, 1  ;;  %v1872_v37 = vrot.slane %v1871_v50, 1  ;;  %v1881_v53 = vrot.slane %v1880_v14, 1  ;;  %v1890_v31 = vrot.slane %v1889_v63, 1 }
 0x26c   :  { %v1899_v4 = vrot.slane %v1898_v29, 1  ;;  %v1929_v6 = vadd.f32 %v1928_v58, %v7245_v34  ;;  %v1938_v39 = vadd.f32 %v1937_v2, %v7246_v15  ;;  %v1947_v47 = vadd.f32 %v1946_v21, %v7247_v57  ;;  %v7270_v57 = vld [vmem:[#allocation119_spill] sm:$0xff] }
 0x26d   :  { %v1908_v52 = vrot.slane %v1907_v36, 1  ;;  %v1912_v27 = vadd.f32 %v1911_v24, %v7248_v10  ;;  %v1921_v60 = vadd.f32 %v1920_v46, %v7249_v5  ;;  %v1956_v48 = vadd.f32 %v1955_v1, %v7250_v42  ;;  %v7262_v1 = vld [vmem:[#allocation94_spill] sm:$0xff]  ;;  %v7272_v5 = vld [vmem:[#allocation95_spill] sm:$0xff] }
 0x26e   :  { %v5544_v45 = vadd.f32 %v1845_v25, %v1844_v59  ;;  %v5546_v51 = vadd.f32 %v1854_v18, %v1853_v0  ;;  %v1965_v9 = vadd.f32 %v1964_v56, %v7251_v17  ;;  %v1974_v11 = vadd.f32 %v1973_v3, %v7252_v28  ;;  %v7255_v59 = vld [vmem:[#allocation68_spill] sm:$0xff]  ;;  %v7256_v0 = vld [vmem:[#allocation78_spill] sm:$0xff]  ;;  %v7264_v18 = vld [vmem:[#allocation101_spill] sm:$0xff] }
 0x26f   :  { %v5550_v7 = vadd.f32 %v1863_v19, %v1862_v30  ;;  %v5552_v32 = vadd.f32 %v1872_v37, %v1871_v50  ;;  %v5554_v26 = vadd.f32 %v1881_v53, %v1880_v14  ;;  %v5556_v23 = vadd.f32 %v1890_v31, %v1889_v63  ;;  %v7258_v30 = vld [vmem:[#allocation82_spill] sm:$0xff]  ;;  %v7259_v50 = vld [vmem:[#allocation140_spill] sm:$0xff]  ;;  %v7260_v14 = vld [vmem:[#allocation91_spill] sm:$0xff] }
 0x270   :  { %v5558_v33 = vadd.f32 %v1899_v4, %v1898_v29  ;;  %v1930_v35 = vadd.f32 %v1929_v6, %v7254_v12  ;;  %v1939_v58 = vadd.f32 %v1938_v39, %v7255_v59  ;;  %v1948_v44 = vadd.f32 %v1947_v47, %v7256_v0  ;;  %v7261_v63 = vld [vmem:[#allocation10_spill] sm:$0xff]  ;;  %v7263_v25 = vld [vmem:[#allocation100_spill] sm:$0xff] }
 0x271   :  { %v5563_v2 = vadd.f32 %v1908_v52, %v1907_v36  ;;  %v1913_v21 = vrot.slane %v1912_v27, 4  ;;  %v1922_v13 = vrot.slane %v1921_v60, 4  ;;  %v1957_v24 = vadd.f32 %v1956_v48, %v7258_v30  ;;  %v7266_v3 = vld [vmem:[#allocation108_spill] sm:$0xff]  ;;  %v7267_v37 = vld [vmem:[#allocation110_spill] sm:$0xff]  ;;  %v7268_v36 = vld [vmem:[#allocation111_spill] sm:$0xff] }
 0x272   :  { %7253 = vst [vmem:[#allocation146_spill] sm:$0xff] %v5558_v33  ;;  %v1966_v38 = vadd.f32 %v1965_v9, %v7259_v50  ;;  %v1975_v46 = vadd.f32 %v1974_v11, %v7260_v14  ;;  %v1982_v29 = vadd.f32 %v7262_v1, %v7261_v63  ;;  %v1991_v56 = vadd.f32 %v7264_v18, %v7263_v25  ;;  %v7269_v4 = vld [vmem:[#allocation116_spill] sm:$0xff]  ;;  %v7271_v47 = vld [vmem:[#allocation138_spill] sm:$0xff]  ;;  %v7273_v48 = vld [vmem:[#allocation103_spill] sm:$0xff] }
 0x273   :  { %7257 = vst [vmem:[#allocation11_spill] sm:$0xff] %v5563_v2  ;;  %v2000_v19 = vadd.f32 %v7266_v3, %v7265_v41  ;;  %v2009_v53 = vadd.f32 %v7268_v36, %v7267_v37  ;;  %v2018_v31 = vadd.f32 %v5396_v8, %v5392_v43  ;;  %v2027_v34 = vadd.f32 %v7269_v4, %v5412_v55  ;;  %v7274_v9 = vld [vmem:[#allocation124_spill] sm:$0xff]  ;;  %v7275_v28 = vld [vmem:[#allocation126_spill] sm:$0xff]  ;;  %v7278_v14 = vld [vmem:[#allocation35_spill] sm:$0xff] }
 0x274   :  { %v1931_v6 = vrot.slane %v1930_v35, 4  ;;  %v1940_v15 = vrot.slane %v1939_v58, 4  ;;  %v1949_v39 = vrot.slane %v1948_v44, 4  ;;  %v2036_v52 = vadd.f32 %v7271_v47, %v7270_v57  ;;  %v7276_v43 = vld [vmem:[#allocation32_spill] sm:$0xff]  ;;  %v7277_v0 = vld [vmem:[#allocation142_spill] sm:$0xff]  ;;  %v7279_v1 = vld [vmem:[#allocation143_spill] sm:$0xff] }
 0x275   :  { %v1958_v10 = vrot.slane %v1957_v24, 4  ;;  %v1983_v42 = vadd.f32 %v1982_v29, %v7272_v5  ;;  %v1992_v17 = vadd.f32 %v1991_v56, %v7273_v48  ;;  %v2045_v11 = vadd.f32 %v7275_v28, %v7274_v9  ;;  %v7280_v3 = vld [vmem:[#allocation120_spill] sm:$0xff]  ;;  %v7281_v36 = vld [vmem:[#allocation97_spill] sm:$0xff]  ;;  %v7285_v5 = vld [vmem:[#allocation114_spill] sm:$0xff] }
 0x276   :  { %v1914_v12 = vadd.f32 %v1913_v21, %v1912_v27  ;;  %v1923_v59 = vadd.f32 %v1922_v13, %v1921_v60  ;;  %v2001_v8 = vadd.f32 %v2000_v19, %v7276_v43  ;;  %v2010_v55 = vadd.f32 %v2009_v53, %v7277_v0  ;;  %v7282_v27 = vld [vmem:[#allocation30_spill] sm:$0xff]  ;;  %v7283_v21 = vld [vmem:[#allocation127_spill] sm:$0xff]  ;;  %v7284_v57 = vld [vmem:[#allocation141_spill] sm:$0xff] }
 0x277   :  { %v1967_v30 = vrot.slane %v1966_v38, 4  ;;  %v1976_v50 = vrot.slane %v1975_v46, 4  ;;  %v2019_v63 = vadd.f32 %v2018_v31, %v7278_v14  ;;  %v2028_v25 = vadd.f32 %v2027_v34, %v7279_v1  ;;  %v7289_v28 = vld [vmem:[#allocation129_spill] sm:$0xff] }
 0x278   :  { %v1932_v18 = vadd.f32 %v1931_v6, %v1930_v35  ;;  %v1941_v41 = vadd.f32 %v1940_v15, %v1939_v58  ;;  %v1950_v29 = vadd.f32 %v1949_v39, %v1948_v44  ;;  %v2037_v56 = vadd.f32 %v2036_v52, %v7280_v3  ;;  %v7286_v35 = vld [vmem:[#allocation115_spill] sm:$0xff]  ;;  %v7287_v44 = vld [vmem:[#allocation118_spill] sm:$0xff]  ;;  %v7288_v52 = vld [vmem:[#allocation121_spill] sm:$0xff] }
 0x279   :  { %v1959_v37 = vadd.f32 %v1958_v10, %v1957_v24  ;;  %v1984_v4 = vadd.f32 %v1983_v42, %v7281_v36  ;;  %v1993_v60 = vadd.f32 %v1992_v17, %v7282_v27  ;;  %v2046_v13 = vadd.f32 %v2045_v11, %v7283_v21 }
 0x27a   :  { %v1915_v19 = vrot.slane %v1914_v12, 2  ;;  %v1924_v53 = vrot.slane %v1923_v59, 2  ;;  %v2002_v47 = vadd.f32 %v2001_v8, %v7284_v57  ;;  %v2011_v31 = vadd.f32 %v2010_v55, %v7285_v5 }
 0x27b   :  { %v1968_v48 = vadd.f32 %v1967_v30, %v1966_v38  ;;  %v1977_v34 = vadd.f32 %v1976_v50, %v1975_v46  ;;  %v2020_v58 = vadd.f32 %v2019_v63, %v7286_v35  ;;  %v2029_v6 = vadd.f32 %v2028_v25, %v7287_v44 }
 0x27c   :  { %v1933_v15 = vrot.slane %v1932_v18, 2  ;;  %v1942_v24 = vrot.slane %v1941_v41, 2  ;;  %v1951_v39 = vrot.slane %v1950_v29, 2  ;;  %v2038_v10 = vadd.f32 %v2037_v56, %v7288_v52 }
 0x27d   :  { %v1960_v42 = vrot.slane %v1959_v37, 2  ;;  %v1985_v17 = vrot.slane %v1984_v4, 4  ;;  %v1994_v9 = vrot.slane %v1993_v60, 4  ;;  %v2047_v11 = vadd.f32 %v2046_v13, %v7289_v28  ;;  %v7290_v28 = vld [vmem:[#allocation107_spill] sm:$0xff] }
 0x27e   :  { %v1916_v43 = vadd.f32 %v1915_v19, %v1914_v12  ;;  %v1925_v8 = vadd.f32 %v1924_v53, %v1923_v59  ;;  %v2003_v0 = vrot.slane %v2002_v47, 4  ;;  %v2012_v55 = vrot.slane %v2011_v31, 4 }
 0x27f   :  { %v1969_v38 = vrot.slane %v1968_v48, 2  ;;  %v1978_v46 = vrot.slane %v1977_v34, 2  ;;  %v2021_v30 = vrot.slane %v2020_v58, 4  ;;  %v2030_v50 = vrot.slane %v2029_v6, 4 }
 0x280   :  { %v1934_v14 = vadd.f32 %v1933_v15, %v1932_v18  ;;  %v1943_v63 = vadd.f32 %v1942_v24, %v1941_v41  ;;  %v1952_v1 = vadd.f32 %v1951_v39, %v1950_v29  ;;  %v2039_v25 = vrot.slane %v2038_v10, 4  ;;  %v7292_v24 = vld [vmem:[#allocation112_spill] sm:$0xff] }
 0x281   :  { %v1961_v3 = vadd.f32 %v1960_v42, %v1959_v37  ;;  %v1986_v36 = vadd.f32 %v1985_v17, %v1984_v4  ;;  %v1995_v56 = vadd.f32 %v1994_v9, %v1993_v60  ;;  %v2048_v27 = vrot.slane %v2047_v11, 4  ;;  %v7291_v37 = vld [vmem:[#allocation109_spill] sm:$0xff] }
 0x282   :  { %v1917_v21 = vrot.slane %v1916_v43, 1  ;;  %v1926_v57 = vrot.slane %v1925_v8, 1  ;;  %v2004_v5 = vadd.f32 %v2003_v0, %v2002_v47  ;;  %v2013_v13 = vadd.f32 %v2012_v55, %v2011_v31 }
 0x283   :  { %v1970_v12 = vadd.f32 %v1969_v38, %v1968_v48  ;;  %v1979_v59 = vadd.f32 %v1978_v46, %v1977_v34  ;;  %v2022_v19 = vadd.f32 %v2021_v30, %v2020_v58  ;;  %v2031_v53 = vadd.f32 %v2030_v50, %v2029_v6  ;;  %v7293_v34 = vld [vmem:[#allocation113_spill] sm:$0xff]  ;;  %v7298_v46 = vld [vmem:[#allocation139_spill] sm:$0xff] }
 0x284   :  { %v1935_v35 = vrot.slane %v1934_v14, 1  ;;  %v1944_v44 = vrot.slane %v1943_v63, 1  ;;  %v2040_v52 = vadd.f32 %v2039_v25, %v2038_v10  ;;  %2627 = vrcp.f32 %v7290_v28  ;;  %v7296_v10 = vld [vmem:[#allocation34_spill] sm:$0xff] }
 0x285   :  { %v1987_v18 = vrot.slane %v1986_v36, 2  ;;  %v1996_v41 = vrot.slane %v1995_v56, 2  ;;  %v2049_v29 = vadd.f32 %v2048_v27, %v2047_v11  ;;  %2629 = vrcp.f32 %v7291_v37  ;;  %v7297_v11 = vld [vmem:[#allocation117_spill] sm:$0xff] }
 0x286   :  { %v1953_v4 = vrot.slane %v1952_v1, 1  ;;  %v2005_v60 = vrot.slane %v2004_v5, 2  ;;  %v2014_v15 = vrot.slane %v2013_v13, 2  ;;  %2631 = vrcp.f32 %v7292_v24 }
 0x287   :  { %v1962_v47 = vrot.slane %v1961_v3, 1  ;;  %v2023_v31 = vrot.slane %v2022_v19, 2  ;;  %v2032_v48 = vrot.slane %v2031_v53, 2  ;;  %2633 = vrcp.f32 %v7293_v34 }
 0x288   :  { %v5604_v58 = vadd.f32 %v1917_v21, %v1916_v43  ;;  %v5606_v6 = vadd.f32 %v1926_v57, %v1925_v8  ;;  %v2041_v39 = vrot.slane %v2040_v52, 2  ;;  %2635 = vrcp.f32 %v7296_v10  ;;  %v7299_v43 = vld [vmem:[#allocation144_spill] sm:$0xff] }
 0x289   :  { %v1988_v42 = vadd.f32 %v1987_v18, %v1986_v36  ;;  %v1997_v17 = vadd.f32 %v1996_v41, %v1995_v56  ;;  %v2050_v9 = vrot.slane %v2049_v29, 2  ;;  %2637 = vrcp.f32 %v7297_v11  ;;  %v7302_v36 = vld [vmem:[#allocation122_spill] sm:$0xff]  ;;  %v7303_v41 = vld [vmem:[#allocation123_spill] sm:$0xff] }
 0x28a   :  { %7294 = vst [vmem:[#allocation131_spill] sm:$0xff] %v5604_v58  ;;  %7295 = vst [vmem:[#allocation98_spill] sm:$0xff] %v5606_v6  ;;  %v1971_v0 = vrot.slane %v1970_v12, 1  ;;  %v2006_v55 = vadd.f32 %v2005_v60, %v2004_v5  ;;  %v2015_v38 = vadd.f32 %v2014_v15, %v2013_v13  ;;  %2639 = vrcp.f32 %v7298_v46 }
 0x28b   :  { %v1980_v30 = vrot.slane %v1979_v59, 1  ;;  %v2024_v50 = vadd.f32 %v2023_v31, %v2022_v19  ;;  %v2033_v25 = vadd.f32 %v2032_v48, %v2031_v53  ;;  %2641 = vrcp.f32 %v7299_v43  ;;  %v7305_v19 = vld [vmem:[#allocation86_spill] sm:$0xff] }
 0x28c   :  { %v5612_v8 = vadd.f32 %v1935_v35, %v1934_v14  ;;  %v5614_v27 = vadd.f32 %v1944_v44, %v1943_v63  ;;  %v2042_v21 = vadd.f32 %v2041_v39, %v2040_v52  ;;  %2643 = vrcp.f32 %v7302_v36  ;;  %v7307_v63 = vld [vmem:[#allocation125_spill] sm:$0xff]  ;;  %v7313_v39 = vld [vmem:[#allocation12_spill] sm:$0xff] }
 0x28d   :  { %v1989_v56 = vrot.slane %v1988_v42, 1  ;;  %v1998_v57 = vrot.slane %v1997_v17, 1  ;;  %v2051_v18 = vadd.f32 %v2050_v9, %v2049_v29  ;;  %2645 = vrcp.f32 %v7303_v41  ;;  %v7310_v29 = vld [vmem:[#allocation130_spill] sm:$0xff] }
 0x28e   :  { %7300 = vst [vmem:[#allocation13_spill] sm:$0xff] %v5612_v8  ;;  %7301 = vst [vmem:[#allocation145_spill] sm:$0xff] %v5614_v27  ;;  %v5618_v5 = vadd.f32 %v1953_v4, %v1952_v1  ;;  %v2007_v13 = vrot.slane %v2006_v55, 1  ;;  %v2016_v60 = vrot.slane %v2015_v38, 1  ;;  %2647 = vrcp.f32 %v7305_v19 }
 0x28f   :  { %v5621_v53 = vadd.f32 %v1962_v47, %v1961_v3  ;;  %v2025_v14 = vrot.slane %v2024_v50, 1  ;;  %v2034_v35 = vrot.slane %v2033_v25, 1  ;;  %2649 = vrcp.f32 %v7307_v63 }
 0x290   :  { %7304 = vst [vmem:[#allocation90_spill] sm:$0xff] %v5618_v5  ;;  %v5624_v44 = vadd.f32 %v1971_v0, %v1970_v12  ;;  %v5626_v52 = vadd.f32 %v1980_v30, %v1979_v59  ;;  %v2043_v15 = vrot.slane %v2042_v21, 1  ;;  %2651 = vrcp.f32 %v7310_v29  ;;  %v7316_v12 = vld [vmem:[#allocation132_spill] sm:$0xff] }
 0x291   :  { %7306 = vst [vmem:[#allocation38_spill] sm:$0xff] %v5621_v53  ;;  %v2628_v31 = vpop.eup %2627  ;;  %v5629_v1 = vadd.f32 %v1989_v56, %v1988_v42  ;;  %v5631_v4 = vadd.f32 %v1998_v57, %v1997_v17  ;;  %v2052_v48 = vrot.slane %v2051_v18, 1  ;;  %2653 = vrcp.f32 %v7313_v39  ;;  %v7319_v42 = vld [vmem:[#allocation104_spill] sm:$0xff] }
 0x292   :  { %7308 = vst [vmem:[#allocation46_spill] sm:$0xff] %v5624_v44  ;;  %7309 = vst [vmem:[#allocation102_spill] sm:$0xff] %v5626_v52  ;;  %v2630_v3 = vpop.eup %2629  ;;  %v5634_v47 = vadd.f32 %v2007_v13, %v2006_v55  ;;  %v5636_v9 = vadd.f32 %v2016_v60, %v2015_v38  ;;  %2655 = vrcp.f32 %v7316_v12  ;;  %v2086_v59 = vmul.f32 %v2628_v31, %v7290_v28  ;;  %v7321_v55 = vld [vmem:[#allocation42_spill] sm:$0xff] }
 0x293   :  { %7311 = vst [vmem:[#allocation36_spill] sm:$0xff] %v5629_v1  ;;  %7312 = vst [vmem:[#allocation39_spill] sm:$0xff] %v5631_v4  ;;  %v2632_v0 = vpop.eup %2631  ;;  %v5640_v30 = vadd.f32 %v2025_v14, %v2024_v50  ;;  %v5642_v52 = vadd.f32 %v2034_v35, %v2033_v25  ;;  %2657 = vrcp.f32 %v7319_v42  ;;  %v2087_v17 = vmul.f32 %v2630_v3, %v7291_v37  ;;  %v7323_v28 = vld [vmem:[#allocation134_spill] sm:$0xff]  ;;  %v7324_v35 = vld [vmem:[#allocation65_spill] sm:$0xff] }
 0x294   :  { %7314 = vst [vmem:[#allocation40_spill] sm:$0xff] %v5634_v47  ;;  %7315 = vst [vmem:[#allocation44_spill] sm:$0xff] %v5636_v9  ;;  %v2634_v56 = vpop.eup %2633  ;;  %v5646_v57 = vadd.f32 %v2043_v15, %v2042_v21  ;;  %2659 = vrcp.f32 %v7321_v55  ;;  %v2088_v38 = vmul.f32 %v2632_v0, %v7292_v24  ;;  %v2118_v13 = vsub.f32 2.0, %v2086_v59 }
 0x295   :  { %7317 = vst [vmem:[#allocation45_spill] sm:$0xff] %v5640_v30  ;;  %7318 = vst [vmem:[#allocation48_spill] sm:$0xff] %v5642_v52  ;;  %v2636_v60 = vpop.eup %2635  ;;  %v5650_v9 = vadd.f32 %v2052_v48, %v2051_v18  ;;  %2661 = vrcp.f32 %v7323_v28  ;;  %v2089_v50 = vmul.f32 %v2634_v56, %v7293_v34  ;;  %v2119_v25 = vsub.f32 2.0, %v2087_v17  ;;  %v7325_v52 = vld [vmem:[#allocation66_spill] sm:$0xff] }
 0x296   :  { %7320 = vst [vmem:[#allocation49_spill] sm:$0xff] %v5646_v57  ;;  %v2638_v14 = vpop.eup %2637  ;;  %2663 = vrcp.f32 %v7324_v35  ;;  %v2090_v37 = vmul.f32 %v2636_v60, %v7296_v10  ;;  %v2120_v21 = vsub.f32 2.0, %v2088_v38  ;;  %v5656_v15 = vmul.f32 %v2628_v31, %v2118_v13  ;;  %v7327_v38 = vld [vmem:[#allocation72_spill] sm:$0xff] }
 0x297   :  { %7322 = vst [vmem:[#allocation135_spill] sm:$0xff] %v5650_v9  ;;  %v2640_v57 = vpop.eup %2639  ;;  %2665 = vrcp.f32 %v7325_v52  ;;  %v2091_v24 = vmul.f32 %v2638_v14, %v7297_v11  ;;  %v2121_v18 = vsub.f32 2.0, %v2089_v50  ;;  %v5660_v48 = vmul.f32 %v2630_v3, %v2119_v25  ;;  %v7326_v9 = vld [vmem:[#allocation16_spill] sm:$0xff]  ;;  %v7328_v50 = vld [vmem:[#allocation77_spill] sm:$0xff] }
 0x298   :  { %v2642_v59 = vpop.eup %2641  ;;  %2667 = vrcp.f32 %v7326_v9  ;;  %v2092_v34 = vmul.f32 %v2640_v57, %v7298_v46  ;;  %v2122_v17 = vsub.f32 2.0, %v2090_v37  ;;  %v5664_v30 = vmul.f32 %v2632_v0, %v2120_v21  ;;  %v7329_v37 = vld [vmem:[#allocation79_spill] sm:$0xff] }
 0x299   :  { %v2644_v10 = vpop.eup %2643  ;;  %2669 = vrcp.f32 %v7327_v38  ;;  %v2093_v31 = vmul.f32 %v2642_v59, %v7299_v43  ;;  %v2123_v13 = vsub.f32 2.0, %v2091_v24  ;;  %v5668_v47 = vmul.f32 %v2634_v56, %v2121_v18  ;;  %v7330_v24 = vld [vmem:[#allocation6_spill] sm:$0xff] }
 0x29a   :  { %v2646_v11 = vpop.eup %2645  ;;  %2671 = vrcp.f32 %v7328_v50  ;;  %v2094_v3 = vmul.f32 %v2644_v10, %v7302_v36  ;;  %v2124_v25 = vsub.f32 2.0, %v2092_v34  ;;  %v5672_v4 = vmul.f32 %v2636_v60, %v2122_v17  ;;  %v7331_v34 = vld [vmem:[#allocation81_spill] sm:$0xff] }
 0x29b   :  { %v2648_v46 = vpop.eup %2647  ;;  %2673 = vrcp.f32 %v7329_v37  ;;  %v2095_v0 = vmul.f32 %v2646_v11, %v7303_v41  ;;  %v2125_v21 = vsub.f32 2.0, %v2093_v31  ;;  %v5676_v1 = vmul.f32 %v2638_v14, %v2123_v13  ;;  %v7332_v31 = vld [vmem:[#allocation18_spill] sm:$0xff] }
 0x29c   :  { %v2650_v43 = vpop.eup %2649  ;;  %2675 = vrcp.f32 %v7330_v24  ;;  %v2096_v56 = vmul.f32 %v2648_v46, %v7305_v19  ;;  %v2126_v18 = vsub.f32 2.0, %v2094_v3  ;;  %v5680_v44 = vmul.f32 %v2640_v57, %v2124_v25  ;;  %v7333_v3 = vld [vmem:[#allocation21_spill] sm:$0xff] }
 0x29d   :  { %v2652_v36 = vpop.eup %2651  ;;  %2677 = vrcp.f32 %v7331_v34  ;;  %v2097_v60 = vmul.f32 %v2650_v43, %v7307_v63  ;;  %v2127_v17 = vsub.f32 2.0, %v2095_v0  ;;  %v5684_v53 = vmul.f32 %v2642_v59, %v2125_v21  ;;  %v7334_v0 = vld [vmem:[#allocation26_spill] sm:$0xff] }
 0x29e   :  { %v2654_v41 = vpop.eup %2653  ;;  %2679 = vrcp.f32 %v7332_v31  ;;  %v2098_v14 = vmul.f32 %v2652_v36, %v7310_v29  ;;  %v2128_v13 = vsub.f32 2.0, %v2096_v56  ;;  %v5688_v5 = vmul.f32 %v2644_v10, %v2126_v18  ;;  %v7335_v56 = vld [vmem:[#allocation31_spill] sm:$0xff] }
 0x29f   :  { %v2656_v19 = vpop.eup %2655  ;;  %2681 = vrcp.f32 %v7333_v3  ;;  %v2099_v57 = vmul.f32 %v2654_v41, %v7313_v39  ;;  %v2129_v25 = vsub.f32 2.0, %v2097_v60  ;;  %v5692_v27 = vmul.f32 %v2646_v11, %v2127_v17  ;;  %v7336_v60 = vld [vmem:[#allocation41_spill] sm:$0xff] }
 0x2a0   :  { %v2658_v63 = vpop.eup %2657  ;;  %2683 = vrcp.f32 %v7334_v0  ;;  %v2100_v59 = vmul.f32 %v2656_v19, %v7316_v12  ;;  %v2130_v21 = vsub.f32 2.0, %v2098_v14  ;;  %v5696_v8 = vmul.f32 %v2648_v46, %v2128_v13  ;;  %v7337_v14 = vld [vmem:[#allocation70_spill] sm:$0xff] }
 0x2a1   :  { %v2660_v29 = vpop.eup %2659  ;;  %2685 = vrcp.f32 %v7335_v56  ;;  %v2101_v10 = vmul.f32 %v2658_v63, %v7319_v42  ;;  %v2131_v18 = vsub.f32 2.0, %v2099_v57  ;;  %v5700_v6 = vmul.f32 %v2650_v43, %v2129_v25 }
 0x2a2   :  { %v2662_v39 = vpop.eup %2661  ;;  %2687 = vrcp.f32 %v7336_v60  ;;  %v2102_v11 = vmul.f32 %v2660_v29, %v7321_v55  ;;  %v2132_v17 = vsub.f32 2.0, %v2100_v59  ;;  %v5704_v58 = vmul.f32 %v2652_v36, %v2130_v21 }
 0x2a3   :  { %v2664_v12 = vpop.eup %2663  ;;  %2689 = vrcp.f32 %v7337_v14  ;;  %v2103_v46 = vmul.f32 %v2662_v39, %v7323_v28  ;;  %v2133_v13 = vsub.f32 2.0, %v2101_v10  ;;  %v5708_v2 = vmul.f32 %v2654_v41, %v2131_v18 }
 0x2a4   :  { %v2666_v42 = vpop.eup %2665  ;;  %v2104_v43 = vmul.f32 %v2664_v12, %v7324_v35  ;;  %v2134_v57 = vsub.f32 2.0, %v2102_v11  ;;  %v5711_v25 = vmul.f32 %v2656_v19, %v2132_v17  ;;  %v5715_v55 = vmul.f32 %v5656_v15, %v5504_v22 }
 0x2a5   :  { %v2668_v36 = vpop.eup %2667  ;;  %v2105_v59 = vmul.f32 %v2666_v42, %v7325_v52  ;;  %v2135_v21 = vsub.f32 2.0, %v2103_v46  ;;  %v5718_v33 = vmul.f32 %v2658_v63, %v2133_v13  ;;  %v5722_v28 = vmul.f32 %v5660_v48, %v5506_v62 }
 0x2a6   :  { %v2670_v41 = vpop.eup %2669  ;;  %v2106_v35 = vmul.f32 %v2668_v36, %v7326_v9  ;;  %v2136_v10 = vsub.f32 2.0, %v2104_v43  ;;  %v5725_v19 = vmul.f32 %v2660_v29, %v2134_v57  ;;  %v5729_v22 = vmul.f32 %v5664_v30, %v5508_v61 }
 0x2a7   :  { %v2672_v15 = vpop.eup %2671  ;;  %v2107_v52 = vmul.f32 %v2670_v41, %v7327_v38  ;;  %v2137_v18 = vsub.f32 2.0, %v2105_v59  ;;  %v5732_v63 = vmul.f32 %v2662_v39, %v2135_v21  ;;  %v5736_v62 = vmul.f32 %v5668_v47, %v5510_v54 }
 0x2a8   :  { %v2674_v48 = vpop.eup %2673  ;;  %v2108_v9 = vmul.f32 %v2672_v15, %v7328_v50  ;;  %v2138_v11 = vsub.f32 2.0, %v2106_v35  ;;  %v2168_v29 = vmul.f32 %v2664_v12, %v2136_v10  ;;  %v5741_v17 = vmul.f32 %v5672_v4, %v5512_v40 }
 0x2a9   :  { %v2676_v61 = vpop.eup %2675  ;;  %v2109_v30 = vmul.f32 %v2674_v48, %v7329_v37  ;;  %v2139_v38 = vsub.f32 2.0, %v2107_v52  ;;  %v2169_v46 = vmul.f32 %v2666_v42, %v2137_v18  ;;  %v5746_v39 = vmul.f32 %v5676_v1, %v5514_v49 }
 0x2aa   :  { %v2678_v54 = vpop.eup %2677  ;;  %v2110_v47 = vmul.f32 %v2676_v61, %v7330_v24  ;;  %v2140_v13 = vsub.f32 2.0, %v2108_v9  ;;  %v2170_v50 = vmul.f32 %v2668_v36, %v2138_v11  ;;  %v5751_v12 = vmul.f32 %v5680_v44, %v5520_v20 }
 0x2ab   :  { %v2680_v40 = vpop.eup %2679  ;;  %v2111_v4 = vmul.f32 %v2678_v54, %v7331_v34  ;;  %v2141_v43 = vsub.f32 2.0, %v2109_v30  ;;  %v2171_v37 = vmul.f32 %v2670_v41, %v2139_v38  ;;  %v5756_v42 = vmul.f32 %v5684_v53, %v5522_v16  ;;  %v7341_v38 = vld [vmem:[#allocation98_spill] sm:$0xff] }
 0x2ac   :  { %v2682_v49 = vpop.eup %2681  ;;  %v2112_v1 = vmul.f32 %v2680_v40, %v7332_v31  ;;  %v2142_v57 = vsub.f32 2.0, %v2110_v47  ;;  %v2172_v24 = vmul.f32 %v2672_v15, %v2140_v13  ;;  %v2190_v36 = vmul.f32 %v5688_v5, %v5544_v45  ;;  %v7343_v13 = vld [vmem:[#allocation145_spill] sm:$0xff] }
 0x2ad   :  { %v2684_v59 = vpop.eup %2683  ;;  %v2113_v20 = vmul.f32 %v2682_v49, %v7333_v3  ;;  %v2143_v44 = vsub.f32 2.0, %v2111_v4  ;;  %v2173_v21 = vmul.f32 %v2674_v48, %v2141_v43  ;;  %v2191_v34 = vmul.f32 %v5692_v27, %v5546_v51  ;;  %v7344_v4 = vld [vmem:[#allocation90_spill] sm:$0xff] }
 0x2ae   :  { %v2686_v41 = vpop.eup %2685  ;;  %v2114_v16 = vmul.f32 %v2684_v59, %v7334_v0  ;;  %v2144_v53 = vsub.f32 2.0, %v2112_v1  ;;  %v2174_v35 = vmul.f32 %v2676_v61, %v2142_v57  ;;  %v2192_v31 = vmul.f32 %v5696_v8, %v5550_v7  ;;  %v7346_v1 = vld [vmem:[#allocation46_spill] sm:$0xff] }
 0x2af   :  { %v2688_v10 = vpop.eup %2687  ;;  %v2115_v45 = vmul.f32 %v2686_v41, %v7335_v56  ;;  %v2145_v5 = vsub.f32 2.0, %v2113_v20  ;;  %v2175_v3 = vmul.f32 %v2678_v54, %v2143_v44  ;;  %v2193_v15 = vmul.f32 %v5700_v6, %v5552_v32  ;;  %v7338_v6 = vld [vmem:[#allocation146_spill] sm:$0xff]  ;;  %v7348_v44 = vld [vmem:[#allocation36_spill] sm:$0xff] }
 0x2b0   :  { %v2690_v51 = vpop.eup %2689  ;;  %v2116_v27 = vmul.f32 %v2688_v10, %v7336_v60  ;;  %v2146_v52 = vsub.f32 2.0, %v2114_v16  ;;  %v2176_v0 = vmul.f32 %v2680_v40, %v2144_v53  ;;  %v2194_v18 = vmul.f32 %v5704_v58, %v5554_v26  ;;  %v7339_v60 = vld [vmem:[#allocation11_spill] sm:$0xff] }
 0x2b1   :  { %v2117_v7 = vmul.f32 %v2690_v51, %v7337_v14  ;;  %v2147_v8 = vsub.f32 2.0, %v2115_v45  ;;  %v2177_v48 = vmul.f32 %v2682_v49, %v2145_v5  ;;  %v2195_v56 = vmul.f32 %v5708_v2, %v5556_v23  ;;  %v7340_v58 = vld [vmem:[#allocation131_spill] sm:$0xff]  ;;  %v7342_v2 = vld [vmem:[#allocation13_spill] sm:$0xff]  ;;  %v7345_v49 = vld [vmem:[#allocation38_spill] sm:$0xff] }
 0x2b2   :  { %v2148_v9 = vsub.f32 2.0, %v2116_v27  ;;  %v2178_v32 = vmul.f32 %v2684_v59, %v2146_v52  ;;  %v2196_v11 = vmul.f32 %v5711_v25, %v7338_v6  ;;  %v2197_v61 = vmul.f32 %v5718_v33, %v7339_v60  ;;  %v7347_v59 = vld [vmem:[#allocation102_spill] sm:$0xff]  ;;  %v7355_v52 = vld [vmem:[#allocation135_spill] sm:$0xff] }
 0x2b3   :  { %v2149_v30 = vsub.f32 2.0, %v2117_v7  ;;  %v2179_v26 = vmul.f32 %v2686_v41, %v2147_v8  ;;  %v2198_v14 = vmul.f32 %v5725_v19, %v7340_v58  ;;  %v2199_v54 = vmul.f32 %v5732_v63, %v7341_v38  ;;  %v7349_v41 = vld [vmem:[#allocation39_spill] sm:$0xff]  ;;  %v7350_v63 = vld [vmem:[#allocation40_spill] sm:$0xff] }
 0x2b4   :  { %v2180_v23 = vmul.f32 %v2688_v10, %v2148_v9  ;;  %v2200_v47 = vmul.f32 %v2168_v29, %v7342_v2  ;;  %v2201_v40 = vmul.f32 %v2169_v46, %v7343_v13  ;;  %v2202_v25 = vmul.f32 %v2170_v50, %v7344_v4  ;;  %v7351_v10 = vld [vmem:[#allocation44_spill] sm:$0xff]  ;;  %v7352_v29 = vld [vmem:[#allocation45_spill] sm:$0xff] }
 0x2b5   :  { %v2181_v43 = vmul.f32 %v2690_v51, %v2149_v30  ;;  %v2203_v33 = vmul.f32 %v2171_v37, %v7345_v49  ;;  %v2204_v57 = vmul.f32 %v2172_v24, %v7346_v1  ;;  %v2205_v20 = vmul.f32 %v2173_v21, %v7347_v59  ;;  %v7353_v46 = vld [vmem:[#allocation48_spill] sm:$0xff]  ;;  %v7354_v50 = vld [vmem:[#allocation49_spill] sm:$0xff] }
 0x2b6   :  { %v2206_v19 = vmul.f32 %v2174_v35, %v7348_v44  ;;  %v2207_v16 = vmul.f32 %v2175_v3, %v7349_v41  ;;  %v2208_v53 = vmul.f32 %v2176_v0, %v7350_v63  ;;  %v2209_v45 = vmul.f32 %v2177_v48, %v7351_v10 }
 0x2b7   :  { %v2210_v5 = vmul.f32 %v2178_v32, %v7352_v29  ;;  %v2211_v27 = vmul.f32 %v2179_v26, %v7353_v46  ;;  %v2212_v51 = vmul.f32 %v2180_v23, %v7354_v50  ;;  %v2213_v37 = vmul.f32 %v2181_v43, %v7355_v52 }
 0x2b8   :  { %v2247_v24 = vsel %vm2246_vm1, %v5722_v28, %v5715_v55  ;;  %v2260_v21 = vsel %vm2246_vm1, %v2191_v34, %v2190_v36  ;;  %v2267_v35 = vsel %vm2246_vm1, %v2199_v54, %v2198_v14  ;;  %v2274_v3 = vsel %vm2246_vm1, %v2207_v16, %v2206_v19 }
 0x2b9   :  { %v2249_v0 = vsel %vm2248_vm2, %v5729_v22, %v2247_v24  ;;  %v2261_v7 = vsel %vm2248_vm2, %v2192_v31, %v2260_v21  ;;  %v2268_v8 = vsel %vm2248_vm2, %v2200_v47, %v2267_v35  ;;  %v2275_v48 = vsel %vm2248_vm2, %v2208_v53, %v2274_v3 }
 0x2ba   :  { %v2251_v9 = vsel %vm2250_vm3, %v5736_v62, %v2249_v0  ;;  %v2262_v55 = vsel %vm2250_vm3, %v2193_v15, %v2261_v7  ;;  %v2269_v28 = vsel %vm2250_vm3, %v2201_v40, %v2268_v8  ;;  %v2276_v36 = vsel %vm2250_vm3, %v2209_v45, %v2275_v48 }
 0x2bb   :  { %v2253_v22 = vsel %vm2252_vm4, %v5741_v17, %v2251_v9  ;;  %v2263_v34 = vsel %vm2252_vm4, %v2194_v18, %v2262_v55  ;;  %v2270_v31 = vsel %vm2252_vm4, %v2202_v25, %v2269_v28  ;;  %v2277_v32 = vsel %vm2252_vm4, %v2210_v5, %v2276_v36 }
 0x2bc   :  { %v2255_v62 = vsel %vm2254_vm5, %v5746_v39, %v2253_v22  ;;  %v2264_v15 = vsel %vm2254_vm5, %v2195_v56, %v2263_v34  ;;  %v2271_v6 = vsel %vm2254_vm5, %v2203_v33, %v2270_v31  ;;  %v2278_v60 = vsel %vm2254_vm5, %v2211_v27, %v2277_v32 }
 0x2bd   :  { %v2257_v30 = vsel %vm2256_vm6, %v5751_v12, %v2255_v62  ;;  %v2265_v17 = vsel %vm2256_vm6, %v2196_v11, %v2264_v15  ;;  %v2272_v18 = vsel %vm2256_vm6, %v2204_v57, %v2271_v6  ;;  %v2279_v26 = vsel %vm2256_vm6, %v2212_v51, %v2278_v60 }
 0x2be   :  { %v2259_v58 = vsel %vm2258_vm7, %v5756_v42, %v2257_v30  ;;  %v2266_v39 = vsel %vm2258_vm7, %v2197_v61, %v2265_v17  ;;  %v2273_v56 = vsel %vm2258_vm7, %v2205_v20, %v2272_v18  ;;  %v2280_v14 = vsel %vm2258_vm7, %v2213_v37, %v2279_v26 }
 0x2bf   :  { %2285 = vst [vmem:[#allocation2] sm:$0xff] %v2259_v58  ;;  %2286 = vst [vmem:[#allocation2 + $0x8] sm:$0xff] %v2266_v39 }
 0x2c0   :  { %2287 = vst [vmem:[#allocation2 + $0x10] sm:$0xff] %v2273_v56  ;;  %2288 = vst [vmem:[#allocation2 + $0x18] sm:$0xff] %v2280_v14 }
 0x2c1   :  { %2702 = shalt.err (!%p2699_p4)
}
 0x2c2   :  { %s2715_s14 = smov 128   ;;  %s2716_s15 = smov 8  }
 0x2c3   :  { %2300 = dma.vmem_to_hbm [thread:$0]  %s2295_s12, 512, %s5839_s2, [#allocation3], %s2715_s14, %s2715_s14, %s2716_s15  }
 0x2c4   :  { %2711 = dma.done.wait [#allocation3], 512  }
 0x2c5   :  { %2712 = vsyncadd [#allocation3], 4294966784 }
 0x2c6   :  { %2304 = vsyncpa [#allocation3], 1 }

</bundles_post_ra>
